<compile_context>
chip_gen: v5e
topology: v5e:2x2
jax: 0.10.0
libtpu: 0.0.40
codegen_flags: <defaults>
</compile_context>

<pallas_src>
import functools

import jax
import jax.numpy as jnp
from jax.experimental import pallas as pl
from jax.experimental.pallas import tpu as pltpu


_BF16 = jnp.bfloat16


def _query_vmem_cap():
    try:
        return int(pltpu.get_tpu_info().vmem_capacity_bytes)
    except Exception:
        return 64 * 1024 * 1024          # conservative (v7x-sized) fallback


_VMEM_CAP = _query_vmem_cap()
# Leave headroom: ~51 MiB on v7x (64 MiB physical), ~102 MiB on v5e/v6e (128 MiB).
_VMEM_LIMIT = int(_VMEM_CAP * 0.8)
# Bigger activation tiles on 128 MiB-VMEM parts (v5e/v6e), smaller on v7x.
_TT_PREF = 512 if _VMEM_CAP >= (96 << 20) else 256


# -----------------------------------------------------------------------------
# In-kernel helpers
# -----------------------------------------------------------------------------
def _layernorm(v, scale, shift, eps=1e-5):
    mean = jnp.mean(v, axis=-1, keepdims=True)
    var = jnp.mean((v - mean) ** 2, axis=-1, keepdims=True)   # unbiased=False
    return scale * ((v - mean) / jnp.sqrt(var + eps)) + shift


def _gelu_tanh(x):
    # TODO(synk): on v6e/v7x this polynomial could run in bf16 to halve VALU
    # pressure; kept in f32 so the same kernel is exact on v5e.
    return 0.5 * x * (1.0 + jnp.tanh(jnp.sqrt(2.0 / jnp.pi) *
                                     (x + 0.044715 * x ** 3)))


def _rep2(shape):
    z = tuple(0 for _ in shape)
    return pl.BlockSpec(shape, lambda i, j: z)


def _rep3(shape):
    z = tuple(0 for _ in shape)
    return pl.BlockSpec(shape, lambda i, j, k: z)


def _choose_tile(n, pref):
    if n <= pref:
        return n
    assert n % pref == 0, f"dim {n} must be a multiple of tile {pref}"
    return pref


def _choose_head_group(num_heads, head_dim):
    """Smallest head-group G (dividing H) with a 128-lane-aligned block width."""
    for g in range(1, num_heads + 1):
        if num_heads % g == 0 and (g * head_dim) % 128 == 0:
            return g
    return num_heads        # tiny models: one group = full D (valid block width)


def _choose_ffn_tile(h4):
    for th in (2048, 1536, 1024, 512, 256):
        if th < h4 and h4 % th == 0:
            return th
    return h4


# -----------------------------------------------------------------------------
# Kernel 1: LayerNorm1 + fused QKV projection (one (D, 3D) matmul)
# -----------------------------------------------------------------------------
def qkv_proj_kernel(x_ref, ln_s_ref, ln_b_ref, wqkv_ref, q_ref, k_ref, v_ref):
    d = q_ref.shape[-1]
    h = _layernorm(x_ref[0], ln_s_ref[0], ln_b_ref[0]).astype(_BF16)
    # Single wide-N matmul; 1/sqrt(head_dim) is folded into the Q columns.
    y = jnp.dot(h, wqkv_ref[...], preferred_element_type=jnp.float32)
    q_ref[0] = y[:, 0 * d:1 * d].astype(_BF16)
    k_ref[0] = y[:, 1 * d:2 * d].astype(_BF16)
    v_ref[0] = y[:, 2 * d:3 * d].astype(_BF16)


def run_qkv_proj(x, p, tt):
    B, T, D = x.shape
    D3 = p["wqkv"].shape[1]
    act_spec = pl.BlockSpec((1, tt, D), lambda b, t: (b, t, 0))
    out = jax.ShapeDtypeStruct((B, T, D), _BF16)
    # TODO(synk): grid-invariant weight specs are still double-buffered by the
    # pipeline; switch to pipeline_mode=pl.Buffered(1) (or tile K) for very
    # large D if VMEM becomes the binding constraint.
    return pl.pallas_call(
        qkv_proj_kernel,
        out_shape=(out, out, out),
        grid=(B, T // tt),
        in_specs=[act_spec, _rep2((1, D)), _rep2((1, D)), _rep2((D, D3))],
        out_specs=(act_spec, act_spec, act_spec),
        compiler_params=pltpu.CompilerParams(
            dimension_semantics=("parallel", "parallel"),
            vmem_limit_bytes=_VMEM_LIMIT),
    )(x, p["ln1_s"], p["ln1_b"], p["wqkv"])


# -----------------------------------------------------------------------------
# Kernel 2: causal flash attention over a lower-triangular (qi, ki) schedule.
#   grid = (B, head_groups, n_tri); the triangular axis is the last
#   ("arbitrary") axis so the online-softmax scratch carries correctly.
#   TQ == TK by construction (required by the diagonal-only masking).
# -----------------------------------------------------------------------------
def flash_attn_kernel(qi_tab_ref, ki_tab_ref, q_ref, k_ref, v_ref, o_ref,
                      m_sc, l_sc, acc_sc, *, G, hd):
    s_idx = pl.program_id(2)
    qi = qi_tab_ref[s_idx]
    ki = ki_tab_ref[s_idx]

    @pl.when(ki == 0)
    def _init():
        m_sc[...] = jnp.full(m_sc.shape, -jnp.inf, dtype=m_sc.dtype)
        l_sc[...] = jnp.zeros_like(l_sc)
        acc_sc[...] = jnp.zeros_like(acc_sc)

    q = q_ref[0]          # (TQ, G*hd) bf16, Q pre-scaled by 1/sqrt(hd)
    k = k_ref[0]          # (TK, G*hd) bf16
    v = v_ref[0]          # (TK, G*hd) bf16

    def update(masked):
        for g in range(G):
            lo, hi = g * hd, (g + 1) * hd
            qg, kg, vg = q[:, lo:hi], k[:, lo:hi], v[:, lo:hi]
            s = jnp.einsum("qd,kd->qk", qg, kg,
                           preferred_element_type=jnp.float32)
            if masked:                       # only built on the diagonal tile
                tq, tk = s.shape
                row = jax.lax.broadcasted_iota(jnp.int32, (tq, tk), 0)
                col = jax.lax.broadcasted_iota(jnp.int32, (tq, tk), 1)
                s = jnp.where(col <= row, s, -1e30)
            m_prev = m_sc[g]
            m_new = jnp.maximum(m_prev, jnp.max(s, axis=-1, keepdims=True))
            alpha = jnp.exp(m_prev - m_new)
            p = jnp.exp(s - m_new)
            l_sc[g] = alpha * l_sc[g] + jnp.sum(p, axis=-1, keepdims=True)
            acc_sc[g] = alpha * acc_sc[g] + jnp.einsum(
                "qk,kd->qd", p.astype(vg.dtype), vg,
                preferred_element_type=jnp.float32)
            m_sc[g] = m_new

    @pl.when(ki < qi)          # interior tiles: fully unmasked
    def _interior():
        update(False)

    @pl.when(ki == qi)         # diagonal tile: mask, then finalize this q row
    def _diag_and_finalize():
        update(True)
        parts = []
        for g in range(G):
            inv_l = pl.reciprocal(l_sc[g], approx=True)   # EUP slot
            parts.append((acc_sc[g] * inv_l).astype(o_ref.dtype))
        o_ref[0] = jnp.concatenate(parts, axis=-1)        # lane-dense store


def run_flash_attn(q, k, v, num_heads, group, tq):
    B, T, D = q.shape
    hd = D // num_heads
    W = group * hd                      # block lane width (multiple of 128 or D)
    HG = num_heads // group
    nq = T // tq

    # Lower-triangular (qi, ki) schedule, flattened (scalar-prefetched).
    qi_list, ki_list = [], []
    for qi in range(nq):
        for ki in range(qi + 1):
            qi_list.append(qi)
            ki_list.append(ki)
    qi_tab = jnp.asarray(qi_list, dtype=jnp.int32)
    ki_tab = jnp.asarray(ki_list, dtype=jnp.int32)
    n_tri = len(qi_list)

    q_spec = pl.BlockSpec((1, tq, W), lambda b, hg, s, qt, kt: (b, qt[s], hg))
    kv_spec = pl.BlockSpec((1, tq, W), lambda b, hg, s, qt, kt: (b, kt[s], hg))
    o_spec = pl.BlockSpec((1, tq, W), lambda b, hg, s, qt, kt: (b, qt[s], hg))

    kernel = functools.partial(flash_attn_kernel, G=group, hd=hd)
    return pl.pallas_call(
        kernel,
        out_shape=jax.ShapeDtypeStruct((B, T, D), _BF16),   # heads already merged
        grid_spec=pltpu.PrefetchScalarGridSpec(
            num_scalar_prefetch=2,
            grid=(B, HG, n_tri),
            in_specs=[q_spec, kv_spec, kv_spec],
            out_specs=o_spec,
            scratch_shapes=[pltpu.VMEM((group, tq, 1), jnp.float32),
                            pltpu.VMEM((group, tq, 1), jnp.float32),
                            pltpu.VMEM((group, tq, hd), jnp.float32)]),
        compiler_params=pltpu.CompilerParams(
            dimension_semantics=("parallel", "parallel", "arbitrary"),
            vmem_limit_bytes=_VMEM_LIMIT),
    )(qi_tab, ki_tab, q, k, v)


# -----------------------------------------------------------------------------
# Kernel 3: out-projection + residual + LayerNorm2 + FFN + residual, fused.
#   The FFN hidden dim is tiled (reduction grid axis) so resident weights fit
#   v7x's 64 MiB VMEM at large model widths.  Residual stream updated in place
#   via input_output_aliases.
# -----------------------------------------------------------------------------
def proj_ffn_kernel(ctx_ref, x_ref, wo_ref, bo_ref, ln2_s_ref, ln2_b_ref,
                    w1_ref, b1_ref, w2_ref, b2_ref, o_ref,
                    h_sc, xr_sc, acc_sc):
    kk = pl.program_id(2)
    nk = pl.num_programs(2)

    @pl.when(kk == 0)
    def _init():
        attn = jnp.dot(ctx_ref[0], wo_ref[...],
                       preferred_element_type=jnp.float32) + bo_ref[0]
        xr = x_ref[0] + attn                                   # residual 1
        xr_sc[...] = xr
        h_sc[...] = _layernorm(xr, ln2_s_ref[0], ln2_b_ref[0]).astype(_BF16)
        acc_sc[...] = jnp.zeros_like(acc_sc)

    f = jnp.dot(h_sc[...], w1_ref[...],
                preferred_element_type=jnp.float32) + b1_ref[0]
    f = _gelu_tanh(f).astype(_BF16)
    acc_sc[...] += jnp.dot(f, w2_ref[...], preferred_element_type=jnp.float32)

    @pl.when(kk == nk - 1)
    def _finalize():
        o_ref[0] = xr_sc[...] + acc_sc[...] + b2_ref[0]        # residual 2


def run_proj_ffn(ctx, x, p, tt, th):
    B, T, D = x.shape
    H4 = p["w1"].shape[1]
    act_spec = pl.BlockSpec((1, tt, D), lambda b, t, k: (b, t, 0))
    return pl.pallas_call(
        proj_ffn_kernel,
        out_shape=jax.ShapeDtypeStruct((B, T, D), jnp.float32),
        grid=(B, T // tt, H4 // th),
        in_specs=[act_spec, act_spec,
                  _rep3((D, D)), _rep3((1, D)),
                  _rep3((1, D)), _rep3((1, D)),
                  pl.BlockSpec((D, th), lambda b, t, k: (0, k)),
                  pl.BlockSpec((1, th), lambda b, t, k: (0, k)),
                  pl.BlockSpec((th, D), lambda b, t, k: (k, 0)),
                  _rep3((1, D))],
        out_specs=act_spec,
        scratch_shapes=[pltpu.VMEM((tt, D), _BF16),        # LN2 output
                        pltpu.VMEM((tt, D), jnp.float32),  # x + attn residual
                        pltpu.VMEM((tt, D), jnp.float32)], # FFN accumulator
        input_output_aliases={1: 0},       # residual stream updated in place
        compiler_params=pltpu.CompilerParams(
            dimension_semantics=("parallel", "parallel", "arbitrary"),
            vmem_limit_bytes=_VMEM_LIMIT),
    )(ctx, x, p["wo"], p["bo"], p["ln2_s"], p["ln2_b"],
      p["w1"], p["b1"], p["w2"], p["b2"])


# -----------------------------------------------------------------------------
# Kernel 4: final LayerNorm + vocab head.  Vocab axis OUTERMOST so every
# (D, tv) slice of w_out is DMA'd exactly once while token tiles stream by.
# -----------------------------------------------------------------------------
def final_head_kernel(x_ref, ln_s_ref, ln_b_ref, w_out_ref, o_ref):
    h = _layernorm(x_ref[0], ln_s_ref[0], ln_b_ref[0]).astype(_BF16)
    o_ref[0] = jnp.dot(h, w_out_ref[...], preferred_element_type=jnp.float32)


def run_final_head(x, ln_s, ln_b, w_out, tt, tv):
    B, T, D = x.shape
    V = w_out.shape[1]
    return pl.pallas_call(
        final_head_kernel,
        out_shape=jax.ShapeDtypeStruct((B, T, V), jnp.float32),
        grid=(V // tv, B, T // tt),                     # vocab axis outermost
        in_specs=[pl.BlockSpec((1, tt, D), lambda v, b, t: (b, t, 0)),
                  _rep3((1, D)), _rep3((1, D)),
                  pl.BlockSpec((D, tv), lambda v, b, t: (0, v))],
        out_specs=pl.BlockSpec((1, tt, tv), lambda v, b, t: (b, t, v)),
        compiler_params=pltpu.CompilerParams(
            dimension_semantics=("parallel", "parallel", "parallel"),
            vmem_limit_bytes=_VMEM_LIMIT),
    )(x, ln_s, ln_b, w_out)


# -----------------------------------------------------------------------------
# Full forward
# -----------------------------------------------------------------------------
def gpt_forward(in_idx, params, cfg):
    B, T = in_idx.shape
    D = cfg["emb_dim"]
    H = cfg["n_heads"]
    assert D % H == 0
    hd = D // H

    # Embedding gathers + positional add (data-dependent gather: plain JAX).
    tok = jnp.take(params["tok_emb"], in_idx, axis=0)            # (B, T, D)
    pos = params["pos_emb"][:T][None, :, :]
    x = (tok + pos).astype(jnp.float32)
    # TODO(synk): a bf16 residual stream would halve residual HBM traffic at
    # some accuracy cost; kept f32 to match the reference numerics.

    tt = _choose_tile(T, _TT_PREF)           # token tile (LN/proj/FFN/head)
    tq = _choose_tile(T, 256)                # query/KV tile (flash attention)
    tv = _choose_tile(params["w_out"].shape[1], 2048)            # vocab tile
    th = _choose_ffn_tile(4 * D)             # FFN hidden-dim tile
    grp = _choose_head_group(H, hd)          # heads per attention grid step

    for p in params["blocks"]:
        q, k, v = run_qkv_proj(x, p, tt)                 # (B, T, D) bf16 each
        ctx = run_flash_attn(q, k, v, H, grp, tq)        # (B, T, D) bf16, merged
        x = run_proj_ffn(ctx, x, p, tt, th)              # (B, T, D) f32

    return run_final_head(x, params["fn_s"], params["fn_b"],
                          params["w_out"], tt, tv)


# -----------------------------------------------------------------------------
# Pure-JAX reference (mirrors the bf16 matmul operands / f32 accumulation)
# -----------------------------------------------------------------------------
def gpt_forward_ref(in_idx, params, cfg):
    B, T = in_idx.shape
    D = cfg["emb_dim"]
    H = cfg["n_heads"]
    hd = D // H

    x = jnp.take(params["tok_emb"], in_idx, axis=0) + params["pos_emb"][:T][None]
    x = x.astype(jnp.float32)
    for p in params["blocks"]:
        h = _layernorm(x, p["ln1_s"][0], p["ln1_b"][0]).astype(_BF16)
        qkv = jnp.dot(h, p["wqkv"], preferred_element_type=jnp.float32).astype(_BF16)
        q, k, v = qkv[..., :D], qkv[..., D:2 * D], qkv[..., 2 * D:]
        q = q.reshape(B, T, H, hd)
        k = k.reshape(B, T, H, hd)
        v = v.reshape(B, T, H, hd)
        s = jnp.einsum("bqhd,bkhd->bhqk", q, k, preferred_element_type=jnp.float32)
        keep = jnp.tril(jnp.ones((T, T), bool))
        s = jnp.where(keep[None, None], s, -1e30)
        m = jnp.max(s, axis=-1, keepdims=True)
        e = jnp.exp(s - m)
        l = jnp.sum(e, axis=-1, keepdims=True)
        ctx = jnp.einsum("bhqk,bkhd->bhqd", e.astype(_BF16), v,
                         preferred_element_type=jnp.float32) / l
        ctx = ctx.transpose(0, 2, 1, 3).reshape(B, T, D).astype(_BF16)
        x = x + (jnp.dot(ctx, p["wo"], preferred_element_type=jnp.float32)
                 + p["bo"][0])
        h2 = _layernorm(x, p["ln2_s"][0], p["ln2_b"][0]).astype(_BF16)
        f = jnp.dot(h2, p["w1"], preferred_element_type=jnp.float32) + p["b1"][0]
        f = _gelu_tanh(f).astype(_BF16)
        x = x + (jnp.dot(f, p["w2"], preferred_element_type=jnp.float32)
                 + p["b2"][0])
    h = _layernorm(x, params["fn_s"][0], params["fn_b"][0]).astype(_BF16)
    return jnp.dot(h, params["w_out"], preferred_element_type=jnp.float32)


# -----------------------------------------------------------------------------
# Deterministic parameter init (matmul weights stored in bf16, QKV fused,
# 1/sqrt(head_dim) folded into the Q columns of wqkv)
# -----------------------------------------------------------------------------
def init_params(key, cfg):
    D, V, C, L, H = (cfg["emb_dim"], cfg["vocab_size"], cfg["context_length"],
                     cfg["n_layers"], cfg["n_heads"])
    H4 = 4 * D
    hd = D // H
    inv_sqrt_hd = 1.0 / (hd ** 0.5)
    keys = iter(jax.random.split(key, 3 + 6 * L))

    def nrm(shape, scale=0.02):
        return scale * jax.random.normal(next(keys), shape)

    params = {
        "tok_emb": nrm((V, D), 1.0).astype(jnp.float32),
        "pos_emb": nrm((C, D), 1.0).astype(jnp.float32),
        "fn_s": jnp.ones((1, D), jnp.float32),
        "fn_b": jnp.zeros((1, D), jnp.float32),
        "w_out": nrm((D, V)).astype(_BF16),
        "blocks": [],
    }
    for _ in range(L):
        wq = nrm((D, D)) * inv_sqrt_hd          # fold attention scale into W_q
        wk = nrm((D, D))
        wv = nrm((D, D))
        params["blocks"].append({
            "ln1_s": jnp.ones((1, D), jnp.float32),
            "ln1_b": jnp.zeros((1, D), jnp.float32),
            "wqkv": jnp.concatenate([wq, wk, wv], axis=1).astype(_BF16),
            "wo": nrm((D, D)).astype(_BF16),
            "bo": jnp.zeros((1, D), jnp.float32),
            "ln2_s": jnp.ones((1, D), jnp.float32),
            "ln2_b": jnp.zeros((1, D), jnp.float32),
            "w1": nrm((D, H4)).astype(_BF16),
            "b1": jnp.zeros((1, H4), jnp.float32),
            "w2": nrm((H4, D)).astype(_BF16),
            "b2": jnp.zeros((1, D), jnp.float32),
        })
    return params


# -----------------------------------------------------------------------------
if __name__ == "__main__":
    cfg = dict(vocab_size=128, context_length=16, emb_dim=32,
               n_heads=4, n_layers=2, drop_rate=0.0, qkv_bias=False)

    key = jax.random.PRNGKey(0)
    k_param, k_idx = jax.random.split(key)
    params = init_params(k_param, cfg)

    B, T = 2, 8
    in_idx = jax.random.randint(k_idx, (B, T), 0, cfg["vocab_size"],
                                dtype=jnp.int32)

    fwd = jax.jit(lambda idx, p: gpt_forward(idx, p, cfg))
    logits = jax.block_until_ready(fwd(in_idx, params))

    ref = gpt_forward_ref(in_idx, params, cfg)
    assert logits.shape == (B, T, cfg["vocab_size"])
    # bf16 MXU operands + approximate EUP reciprocal -> compare at bf16-level
    # tolerance against a reference that mirrors the same casts.
    assert jnp.allclose(logits, ref, atol=1e-2, rtol=1e-2), "mismatch vs reference"

    print("KERNEL_OK")
</pallas_src>

<mosaic_0001>
module attributes {stable_mosaic.version = 11 : i64} {
  func.func @flash_attn_kernel(%arg0: i32, %arg1: i32, %arg2: i32, %arg3: memref<1xi32, #tpu.memory_space<smem>>, %arg4: memref<1xi32, #tpu.memory_space<smem>>, %arg5: memref<1x8x32xbf16, #tpu.memory_space<vmem>>, %arg6: memref<1x8x32xbf16, #tpu.memory_space<vmem>>, %arg7: memref<1x8x32xbf16, #tpu.memory_space<vmem>>, %arg8: memref<1x8x32xbf16, #tpu.memory_space<vmem>>, %arg9: memref<4x8x1xf32, #tpu.memory_space<vmem>>, %arg10: memref<4x8x1xf32, #tpu.memory_space<vmem>>, %arg11: memref<4x8x8xf32, #tpu.memory_space<vmem>>) attributes {dimension_semantics = [#tpu.dimension_semantics<parallel>, #tpu.dimension_semantics<parallel>, #tpu.dimension_semantics<arbitrary>], iteration_bounds = array<i64: 2, 1, 1>, scalar_prefetch = 2 : i64, scratch_operands = 3 : i64, tpu.core_type = #tpu.core_type<tc>, window_params = [{transform_indices = @transform_0, window_bounds = array<i64: 1, 8, 32>}, {transform_indices = @transform_1, window_bounds = array<i64: 1, 8, 32>}, {transform_indices = @transform_2, window_bounds = array<i64: 1, 8, 32>}, {transform_indices = @transform_3, window_bounds = array<i64: 1, 8, 32>}]} {
    %0 = arith.index_cast %arg2 : i32 to index
    %1 = memref.load %arg3[%0] : memref<1xi32, #tpu.memory_space<smem>>
    %2 = arith.index_cast %arg2 : i32 to index
    %3 = memref.load %arg4[%2] : memref<1xi32, #tpu.memory_space<smem>>
    %c0_i32 = arith.constant 0 : i32
    %4 = arith.cmpi eq, %3, %c0_i32 : i32
    %5 = arith.extui %4 : i1 to i32
    %c0_i32_0 = arith.constant 0 : i32
    %6 = arith.cmpi ne, %5, %c0_i32_0 : i32
    scf.if %6 {
      %cst = arith.constant 0xFF800000 : f32
      %19 = vector.broadcast %cst : f32 to vector<4x8x1xf32>
      %c0_11 = arith.constant 0 : index
      %c0_12 = arith.constant 0 : index
      %c0_13 = arith.constant 0 : index
      %20 = vector.load %arg9[%c0_11, %c0_12, %c0_13] : memref<4x8x1xf32, #tpu.memory_space<vmem>>, vector<4x8x1xf32>
      tpu.vector_store %arg9[%c0_11, %c0_12, %c0_13], %19 {strides = array<i32>} : memref<4x8x1xf32, #tpu.memory_space<vmem>>, vector<4x8x1xf32>,
      %cst_14 = arith.constant 0.000000e+00 : f32
      %21 = vector.broadcast %cst_14 : f32 to vector<4x8x1xf32>
      %c0_15 = arith.constant 0 : index
      %c0_16 = arith.constant 0 : index
      %c0_17 = arith.constant 0 : index
      %22 = vector.load %arg10[%c0_15, %c0_16, %c0_17] : memref<4x8x1xf32, #tpu.memory_space<vmem>>, vector<4x8x1xf32>
      tpu.vector_store %arg10[%c0_15, %c0_16, %c0_17], %21 {strides = array<i32>} : memref<4x8x1xf32, #tpu.memory_space<vmem>>, vector<4x8x1xf32>,
      %cst_18 = arith.constant 0.000000e+00 : f32
      %23 = vector.broadcast %cst_18 : f32 to vector<4x8x8xf32>
      %c0_19 = arith.constant 0 : index
      %c0_20 = arith.constant 0 : index
      %c0_21 = arith.constant 0 : index
      %24 = vector.load %arg11[%c0_19, %c0_20, %c0_21] : memref<4x8x8xf32, #tpu.memory_space<vmem>>, vector<4x8x8xf32>
      tpu.vector_store %arg11[%c0_19, %c0_20, %c0_21], %23 {strides = array<i32>} : memref<4x8x8xf32, #tpu.memory_space<vmem>>, vector<4x8x8xf32>,
    } else {
    }
    %c0 = arith.constant 0 : index
    %c0_1 = arith.constant 0 : index
    %c0_2 = arith.constant 0 : index
    %7 = vector.load %arg5[%c0, %c0_1, %c0_2] : memref<1x8x32xbf16, #tpu.memory_space<vmem>>, vector<1x8x32xbf16>
    %8 = vector.shape_cast %7 : vector<1x8x32xbf16> to vector<8x32xbf16>
    %c0_3 = arith.constant 0 : index
    %c0_4 = arith.constant 0 : index
    %c0_5 = arith.constant 0 : index
    %9 = vector.load %arg6[%c0_3, %c0_4, %c0_5] : memref<1x8x32xbf16, #tpu.memory_space<vmem>>, vector<1x8x32xbf16>
    %10 = vector.shape_cast %9 : vector<1x8x32xbf16> to vector<8x32xbf16>
    %c0_6 = arith.constant 0 : index
    %c0_7 = arith.constant 0 : index
    %c0_8 = arith.constant 0 : index
    %11 = vector.load %arg7[%c0_6, %c0_7, %c0_8] : memref<1x8x32xbf16, #tpu.memory_space<vmem>>, vector<1x8x32xbf16>
    %12 = vector.shape_cast %11 : vector<1x8x32xbf16> to vector<8x32xbf16>
    %13 = arith.cmpi slt, %3, %1 : i32
    %14 = arith.extui %13 : i1 to i32
    %c0_i32_9 = arith.constant 0 : i32
    %15 = arith.cmpi ne, %14, %c0_i32_9 : i32
    scf.if %15 {
      %19 = vector.extract_strided_slice %8 {offsets = [0, 0], sizes = [8, 8], strides = [1, 1]} : vector<8x32xbf16> to vector<8x8xbf16>
      %20 = vector.extract_strided_slice %10 {offsets = [0, 0], sizes = [8, 8], strides = [1, 1]} : vector<8x32xbf16> to vector<8x8xbf16>
      %21 = vector.extract_strided_slice %12 {offsets = [0, 0], sizes = [8, 8], strides = [1, 1]} : vector<8x32xbf16> to vector<8x8xbf16>
      "tpu.trace_start"() <{level = 10 : i32, message = "qd,kd->qk"}> : () -> ()
      %cst = arith.constant dense<0.000000e+00> : vector<8x8xf32>
      %22 = tpu.matmul %19, %20, %cst {dimension_numbers = #tpu.dot_dimension_numbers<[1], [1], [0], [0], [0, 0, 1, 0], [], []>} : vector<8x8xbf16>, vector<8x8xbf16>, vector<8x8xf32> -> vector<8x8xf32>
      "tpu.trace_stop"() : () -> ()
      %c0_11 = arith.constant 0 : index
      %c0_12 = arith.constant 0 : index
      %c0_13 = arith.constant 0 : index
      %23 = vector.load %arg9[%c0_11, %c0_12, %c0_13] : memref<4x8x1xf32, #tpu.memory_space<vmem>>, vector<1x8x1xf32>
      %24 = vector.shape_cast %23 : vector<1x8x1xf32> to vector<8x1xf32>
      %cst_14 = arith.constant dense<0xFF800000> : vector<8xf32>
      %25 = vector.multi_reduction <maximumf>, %22, %cst_14 [1] : vector<8x8xf32> to vector<8xf32>
      %26 = vector.shape_cast %25 : vector<8xf32> to vector<8x1xf32>
      %27 = arith.maximumf %24, %26 : vector<8x1xf32>
      %28 = arith.subf %24, %27 : vector<8x1xf32>
      %29 = math.exp %28 : vector<8x1xf32>
      %30 = vector.broadcast %27 : vector<8x1xf32> to vector<8x8xf32>
      %31 = arith.subf %22, %30 : vector<8x8xf32>
      %32 = math.exp %31 : vector<8x8xf32>
      %c0_15 = arith.constant 0 : index
      %c0_16 = arith.constant 0 : index
      %c0_17 = arith.constant 0 : index
      %33 = vector.load %arg10[%c0_15, %c0_16, %c0_17] : memref<4x8x1xf32, #tpu.memory_space<vmem>>, vector<1x8x1xf32>
      %34 = vector.shape_cast %33 : vector<1x8x1xf32> to vector<8x1xf32>
      %35 = arith.mulf %29, %34 : vector<8x1xf32>
      %cst_18 = arith.constant dense<0.000000e+00> : vector<8xf32>
      %36 = vector.multi_reduction <add>, %32, %cst_18 [1] : vector<8x8xf32> to vector<8xf32>
      %37 = vector.shape_cast %36 : vector<8xf32> to vector<8x1xf32>
      %38 = arith.addf %35, %37 : vector<8x1xf32>
      %c0_19 = arith.constant 0 : index
      %c0_20 = arith.constant 0 : index
      %c0_21 = arith.constant 0 : index
      %39 = vector.load %arg10[%c0_19, %c0_20, %c0_21] : memref<4x8x1xf32, #tpu.memory_space<vmem>>, vector<1x8x1xf32>
      %40 = vector.shape_cast %39 : vector<1x8x1xf32> to vector<8x1xf32>
      %41 = vector.shape_cast %38 : vector<8x1xf32> to vector<1x8x1xf32>
      tpu.vector_store %arg10[%c0_19, %c0_20, %c0_21], %41 {strides = array<i32>} : memref<4x8x1xf32, #tpu.memory_space<vmem>>, vector<1x8x1xf32>,
      %c0_22 = arith.constant 0 : index
      %c0_23 = arith.constant 0 : index
      %c0_24 = arith.constant 0 : index
      %42 = vector.load %arg11[%c0_22, %c0_23, %c0_24] : memref<4x8x8xf32, #tpu.memory_space<vmem>>, vector<1x8x8xf32>
      %43 = vector.shape_cast %42 : vector<1x8x8xf32> to vector<8x8xf32>
      %44 = vector.broadcast %29 : vector<8x1xf32> to vector<8x8xf32>
      %45 = arith.mulf %44, %43 : vector<8x8xf32>
      %46 = arith.truncf %32 : vector<8x8xf32> to vector<8x8xbf16>
      "tpu.trace_start"() <{level = 10 : i32, message = "qk,kd->qd"}> : () -> ()
      %cst_25 = arith.constant dense<0.000000e+00> : vector<8x8xf32>
      %47 = tpu.matmul %46, %21, %cst_25 {dimension_numbers = #tpu.dot_dimension_numbers<[1], [0], [0], [1], [0, 0, 1, 1], [], []>} : vector<8x8xbf16>, vector<8x8xbf16>, vector<8x8xf32> -> vector<8x8xf32>
      "tpu.trace_stop"() : () -> ()
      %48 = arith.addf %45, %47 : vector<8x8xf32>
      %c0_26 = arith.constant 0 : index
      %c0_27 = arith.constant 0 : index
      %c0_28 = arith.constant 0 : index
      %49 = vector.load %arg11[%c0_26, %c0_27, %c0_28] : memref<4x8x8xf32, #tpu.memory_space<vmem>>, vector<1x8x8xf32>
      %50 = vector.shape_cast %49 : vector<1x8x8xf32> to vector<8x8xf32>
      %51 = vector.shape_cast %48 : vector<8x8xf32> to vector<1x8x8xf32>
      tpu.vector_store %arg11[%c0_26, %c0_27, %c0_28], %51 {strides = array<i32>} : memref<4x8x8xf32, #tpu.memory_space<vmem>>, vector<1x8x8xf32>,
      %c0_29 = arith.constant 0 : index
      %c0_30 = arith.constant 0 : index
      %c0_31 = arith.constant 0 : index
      %52 = vector.load %arg9[%c0_29, %c0_30, %c0_31] : memref<4x8x1xf32, #tpu.memory_space<vmem>>, vector<1x8x1xf32>
      %53 = vector.shape_cast %52 : vector<1x8x1xf32> to vector<8x1xf32>
      %54 = vector.shape_cast %27 : vector<8x1xf32> to vector<1x8x1xf32>
      tpu.vector_store %arg9[%c0_29, %c0_30, %c0_31], %54 {strides = array<i32>} : memref<4x8x1xf32, #tpu.memory_space<vmem>>, vector<1x8x1xf32>,
      %55 = vector.extract_strided_slice %8 {offsets = [0, 8], sizes = [8, 8], strides = [1, 1]} : vector<8x32xbf16> to vector<8x8xbf16>
      %56 = vector.extract_strided_slice %10 {offsets = [0, 8], sizes = [8, 8], strides = [1, 1]} : vector<8x32xbf16> to vector<8x8xbf16>
      %57 = vector.extract_strided_slice %12 {offsets = [0, 8], sizes = [8, 8], strides = [1, 1]} : vector<8x32xbf16> to vector<8x8xbf16>
      "tpu.trace_start"() <{level = 10 : i32, message = "qd,kd->qk"}> : () -> ()
      %cst_32 = arith.constant dense<0.000000e+00> : vector<8x8xf32>
      %58 = tpu.matmul %55, %56, %cst_32 {dimension_numbers = #tpu.dot_dimension_numbers<[1], [1], [0], [0], [0, 0, 1, 0], [], []>} : vector<8x8xbf16>, vector<8x8xbf16>, vector<8x8xf32> -> vector<8x8xf32>
      "tpu.trace_stop"() : () -> ()
      %c1 = arith.constant 1 : index
      %c0_33 = arith.constant 0 : index
      %c0_34 = arith.constant 0 : index
      %59 = vector.load %arg9[%c1, %c0_33, %c0_34] : memref<4x8x1xf32, #tpu.memory_space<vmem>>, vector<1x8x1xf32>
      %60 = vector.shape_cast %59 : vector<1x8x1xf32> to vector<8x1xf32>
      %cst_35 = arith.constant dense<0xFF800000> : vector<8xf32>
      %61 = vector.multi_reduction <maximumf>, %58, %cst_35 [1] : vector<8x8xf32> to vector<8xf32>
      %62 = vector.shape_cast %61 : vector<8xf32> to vector<8x1xf32>
      %63 = arith.maximumf %60, %62 : vector<8x1xf32>
      %64 = arith.subf %60, %63 : vector<8x1xf32>
      %65 = math.exp %64 : vector<8x1xf32>
      %66 = vector.broadcast %63 : vector<8x1xf32> to vector<8x8xf32>
      %67 = arith.subf %58, %66 : vector<8x8xf32>
      %68 = math.exp %67 : vector<8x8xf32>
      %c1_36 = arith.constant 1 : index
      %c0_37 = arith.constant 0 : index
      %c0_38 = arith.constant 0 : index
      %69 = vector.load %arg10[%c1_36, %c0_37, %c0_38] : memref<4x8x1xf32, #tpu.memory_space<vmem>>, vector<1x8x1xf32>
      %70 = vector.shape_cast %69 : vector<1x8x1xf32> to vector<8x1xf32>
      %71 = arith.mulf %65, %70 : vector<8x1xf32>
      %cst_39 = arith.constant dense<0.000000e+00> : vector<8xf32>
      %72 = vector.multi_reduction <add>, %68, %cst_39 [1] : vector<8x8xf32> to vector<8xf32>
      %73 = vector.shape_cast %72 : vector<8xf32> to vector<8x1xf32>
      %74 = arith.addf %71, %73 : vector<8x1xf32>
      %c1_40 = arith.constant 1 : index
      %c0_41 = arith.constant 0 : index
      %c0_42 = arith.constant 0 : index
      %75 = vector.load %arg10[%c1_40, %c0_41, %c0_42] : memref<4x8x1xf32, #tpu.memory_space<vmem>>, vector<1x8x1xf32>
      %76 = vector.shape_cast %75 : vector<1x8x1xf32> to vector<8x1xf32>
      %77 = vector.shape_cast %74 : vector<8x1xf32> to vector<1x8x1xf32>
      tpu.vector_store %arg10[%c1_40, %c0_41, %c0_42], %77 {strides = array<i32>} : memref<4x8x1xf32, #tpu.memory_space<vmem>>, vector<1x8x1xf32>,
      %c1_43 = arith.constant 1 : index
      %c0_44 = arith.constant 0 : index
      %c0_45 = arith.constant 0 : index
      %78 = vector.load %arg11[%c1_43, %c0_44, %c0_45] : memref<4x8x8xf32, #tpu.memory_space<vmem>>, vector<1x8x8xf32>
      %79 = vector.shape_cast %78 : vector<1x8x8xf32> to vector<8x8xf32>
      %80 = vector.broadcast %65 : vector<8x1xf32> to vector<8x8xf32>
      %81 = arith.mulf %80, %79 : vector<8x8xf32>
      %82 = arith.truncf %68 : vector<8x8xf32> to vector<8x8xbf16>
      "tpu.trace_start"() <{level = 10 : i32, message = "qk,kd->qd"}> : () -> ()
      %cst_46 = arith.constant dense<0.000000e+00> : vector<8x8xf32>
      %83 = tpu.matmul %82, %57, %cst_46 {dimension_numbers = #tpu.dot_dimension_numbers<[1], [0], [0], [1], [0, 0, 1, 1], [], []>} : vector<8x8xbf16>, vector<8x8xbf16>, vector<8x8xf32> -> vector<8x8xf32>
      "tpu.trace_stop"() : () -> ()
      %84 = arith.addf %81, %83 : vector<8x8xf32>
      %c1_47 = arith.constant 1 : index
      %c0_48 = arith.constant 0 : index
      %c0_49 = arith.constant 0 : index
      %85 = vector.load %arg11[%c1_47, %c0_48, %c0_49] : memref<4x8x8xf32, #tpu.memory_space<vmem>>, vector<1x8x8xf32>
      %86 = vector.shape_cast %85 : vector<1x8x8xf32> to vector<8x8xf32>
      %87 = vector.shape_cast %84 : vector<8x8xf32> to vector<1x8x8xf32>
      tpu.vector_store %arg11[%c1_47, %c0_48, %c0_49], %87 {strides = array<i32>} : memref<4x8x8xf32, #tpu.memory_space<vmem>>, vector<1x8x8xf32>,
      %c1_50 = arith.constant 1 : index
      %c0_51 = arith.constant 0 : index
      %c0_52 = arith.constant 0 : index
      %88 = vector.load %arg9[%c1_50, %c0_51, %c0_52] : memref<4x8x1xf32, #tpu.memory_space<vmem>>, vector<1x8x1xf32>
      %89 = vector.shape_cast %88 : vector<1x8x1xf32> to vector<8x1xf32>
      %90 = vector.shape_cast %63 : vector<8x1xf32> to vector<1x8x1xf32>
      tpu.vector_store %arg9[%c1_50, %c0_51, %c0_52], %90 {strides = array<i32>} : memref<4x8x1xf32, #tpu.memory_space<vmem>>, vector<1x8x1xf32>,
      %91 = vector.extract_strided_slice %8 {offsets = [0, 16], sizes = [8, 8], strides = [1, 1]} : vector<8x32xbf16> to vector<8x8xbf16>
      %92 = vector.extract_strided_slice %10 {offsets = [0, 16], sizes = [8, 8], strides = [1, 1]} : vector<8x32xbf16> to vector<8x8xbf16>
      %93 = vector.extract_strided_slice %12 {offsets = [0, 16], sizes = [8, 8], strides = [1, 1]} : vector<8x32xbf16> to vector<8x8xbf16>
      "tpu.trace_start"() <{level = 10 : i32, message = "qd,kd->qk"}> : () -> ()
      %cst_53 = arith.constant dense<0.000000e+00> : vector<8x8xf32>
      %94 = tpu.matmul %91, %92, %cst_53 {dimension_numbers = #tpu.dot_dimension_numbers<[1], [1], [0], [0], [0, 0, 1, 0], [], []>} : vector<8x8xbf16>, vector<8x8xbf16>, vector<8x8xf32> -> vector<8x8xf32>
      "tpu.trace_stop"() : () -> ()
      %c2 = arith.constant 2 : index
      %c0_54 = arith.constant 0 : index
      %c0_55 = arith.constant 0 : index
      %95 = vector.load %arg9[%c2, %c0_54, %c0_55] : memref<4x8x1xf32, #tpu.memory_space<vmem>>, vector<1x8x1xf32>
      %96 = vector.shape_cast %95 : vector<1x8x1xf32> to vector<8x1xf32>
      %cst_56 = arith.constant dense<0xFF800000> : vector<8xf32>
      %97 = vector.multi_reduction <maximumf>, %94, %cst_56 [1] : vector<8x8xf32> to vector<8xf32>
      %98 = vector.shape_cast %97 : vector<8xf32> to vector<8x1xf32>
      %99 = arith.maximumf %96, %98 : vector<8x1xf32>
      %100 = arith.subf %96, %99 : vector<8x1xf32>
      %101 = math.exp %100 : vector<8x1xf32>
      %102 = vector.broadcast %99 : vector<8x1xf32> to vector<8x8xf32>
      %103 = arith.subf %94, %102 : vector<8x8xf32>
      %104 = math.exp %103 : vector<8x8xf32>
      %c2_57 = arith.constant 2 : index
      %c0_58 = arith.constant 0 : index
      %c0_59 = arith.constant 0 : index
      %105 = vector.load %arg10[%c2_57, %c0_58, %c0_59] : memref<4x8x1xf32, #tpu.memory_space<vmem>>, vector<1x8x1xf32>
      %106 = vector.shape_cast %105 : vector<1x8x1xf32> to vector<8x1xf32>
      %107 = arith.mulf %101, %106 : vector<8x1xf32>
      %cst_60 = arith.constant dense<0.000000e+00> : vector<8xf32>
      %108 = vector.multi_reduction <add>, %104, %cst_60 [1] : vector<8x8xf32> to vector<8xf32>
      %109 = vector.shape_cast %108 : vector<8xf32> to vector<8x1xf32>
      %110 = arith.addf %107, %109 : vector<8x1xf32>
      %c2_61 = arith.constant 2 : index
      %c0_62 = arith.constant 0 : index
      %c0_63 = arith.constant 0 : index
      %111 = vector.load %arg10[%c2_61, %c0_62, %c0_63] : memref<4x8x1xf32, #tpu.memory_space<vmem>>, vector<1x8x1xf32>
      %112 = vector.shape_cast %111 : vector<1x8x1xf32> to vector<8x1xf32>
      %113 = vector.shape_cast %110 : vector<8x1xf32> to vector<1x8x1xf32>
      tpu.vector_store %arg10[%c2_61, %c0_62, %c0_63], %113 {strides = array<i32>} : memref<4x8x1xf32, #tpu.memory_space<vmem>>, vector<1x8x1xf32>,
      %c2_64 = arith.constant 2 : index
      %c0_65 = arith.constant 0 : index
      %c0_66 = arith.constant 0 : index
      %114 = vector.load %arg11[%c2_64, %c0_65, %c0_66] : memref<4x8x8xf32, #tpu.memory_space<vmem>>, vector<1x8x8xf32>
      %115 = vector.shape_cast %114 : vector<1x8x8xf32> to vector<8x8xf32>
      %116 = vector.broadcast %101 : vector<8x1xf32> to vector<8x8xf32>
      %117 = arith.mulf %116, %115 : vector<8x8xf32>
      %118 = arith.truncf %104 : vector<8x8xf32> to vector<8x8xbf16>
      "tpu.trace_start"() <{level = 10 : i32, message = "qk,kd->qd"}> : () -> ()
      %cst_67 = arith.constant dense<0.000000e+00> : vector<8x8xf32>
      %119 = tpu.matmul %118, %93, %cst_67 {dimension_numbers = #tpu.dot_dimension_numbers<[1], [0], [0], [1], [0, 0, 1, 1], [], []>} : vector<8x8xbf16>, vector<8x8xbf16>, vector<8x8xf32> -> vector<8x8xf32>
      "tpu.trace_stop"() : () -> ()
      %120 = arith.addf %117, %119 : vector<8x8xf32>
      %c2_68 = arith.constant 2 : index
      %c0_69 = arith.constant 0 : index
      %c0_70 = arith.constant 0 : index
      %121 = vector.load %arg11[%c2_68, %c0_69, %c0_70] : memref<4x8x8xf32, #tpu.memory_space<vmem>>, vector<1x8x8xf32>
      %122 = vector.shape_cast %121 : vector<1x8x8xf32> to vector<8x8xf32>
      %123 = vector.shape_cast %120 : vector<8x8xf32> to vector<1x8x8xf32>
      tpu.vector_store %arg11[%c2_68, %c0_69, %c0_70], %123 {strides = array<i32>} : memref<4x8x8xf32, #tpu.memory_space<vmem>>, vector<1x8x8xf32>,
      %c2_71 = arith.constant 2 : index
      %c0_72 = arith.constant 0 : index
      %c0_73 = arith.constant 0 : index
      %124 = vector.load %arg9[%c2_71, %c0_72, %c0_73] : memref<4x8x1xf32, #tpu.memory_space<vmem>>, vector<1x8x1xf32>
      %125 = vector.shape_cast %124 : vector<1x8x1xf32> to vector<8x1xf32>
      %126 = vector.shape_cast %99 : vector<8x1xf32> to vector<1x8x1xf32>
      tpu.vector_store %arg9[%c2_71, %c0_72, %c0_73], %126 {strides = array<i32>} : memref<4x8x1xf32, #tpu.memory_space<vmem>>, vector<1x8x1xf32>,
      %127 = vector.extract_strided_slice %8 {offsets = [0, 24], sizes = [8, 8], strides = [1, 1]} : vector<8x32xbf16> to vector<8x8xbf16>
      %128 = vector.extract_strided_slice %10 {offsets = [0, 24], sizes = [8, 8], strides = [1, 1]} : vector<8x32xbf16> to vector<8x8xbf16>
      %129 = vector.extract_strided_slice %12 {offsets = [0, 24], sizes = [8, 8], strides = [1, 1]} : vector<8x32xbf16> to vector<8x8xbf16>
      "tpu.trace_start"() <{level = 10 : i32, message = "qd,kd->qk"}> : () -> ()
      %cst_74 = arith.constant dense<0.000000e+00> : vector<8x8xf32>
      %130 = tpu.matmul %127, %128, %cst_74 {dimension_numbers = #tpu.dot_dimension_numbers<[1], [1], [0], [0], [0, 0, 1, 0], [], []>} : vector<8x8xbf16>, vector<8x8xbf16>, vector<8x8xf32> -> vector<8x8xf32>
      "tpu.trace_stop"() : () -> ()
      %c3 = arith.constant 3 : index
      %c0_75 = arith.constant 0 : index
      %c0_76 = arith.constant 0 : index
      %131 = vector.load %arg9[%c3, %c0_75, %c0_76] : memref<4x8x1xf32, #tpu.memory_space<vmem>>, vector<1x8x1xf32>
      %132 = vector.shape_cast %131 : vector<1x8x1xf32> to vector<8x1xf32>
      %cst_77 = arith.constant dense<0xFF800000> : vector<8xf32>
      %133 = vector.multi_reduction <maximumf>, %130, %cst_77 [1] : vector<8x8xf32> to vector<8xf32>
      %134 = vector.shape_cast %133 : vector<8xf32> to vector<8x1xf32>
      %135 = arith.maximumf %132, %134 : vector<8x1xf32>
      %136 = arith.subf %132, %135 : vector<8x1xf32>
      %137 = math.exp %136 : vector<8x1xf32>
      %138 = vector.broadcast %135 : vector<8x1xf32> to vector<8x8xf32>
      %139 = arith.subf %130, %138 : vector<8x8xf32>
      %140 = math.exp %139 : vector<8x8xf32>
      %c3_78 = arith.constant 3 : index
      %c0_79 = arith.constant 0 : index
      %c0_80 = arith.constant 0 : index
      %141 = vector.load %arg10[%c3_78, %c0_79, %c0_80] : memref<4x8x1xf32, #tpu.memory_space<vmem>>, vector<1x8x1xf32>
      %142 = vector.shape_cast %141 : vector<1x8x1xf32> to vector<8x1xf32>
      %143 = arith.mulf %137, %142 : vector<8x1xf32>
      %cst_81 = arith.constant dense<0.000000e+00> : vector<8xf32>
      %144 = vector.multi_reduction <add>, %140, %cst_81 [1] : vector<8x8xf32> to vector<8xf32>
      %145 = vector.shape_cast %144 : vector<8xf32> to vector<8x1xf32>
      %146 = arith.addf %143, %145 : vector<8x1xf32>
      %c3_82 = arith.constant 3 : index
      %c0_83 = arith.constant 0 : index
      %c0_84 = arith.constant 0 : index
      %147 = vector.load %arg10[%c3_82, %c0_83, %c0_84] : memref<4x8x1xf32, #tpu.memory_space<vmem>>, vector<1x8x1xf32>
      %148 = vector.shape_cast %147 : vector<1x8x1xf32> to vector<8x1xf32>
      %149 = vector.shape_cast %146 : vector<8x1xf32> to vector<1x8x1xf32>
      tpu.vector_store %arg10[%c3_82, %c0_83, %c0_84], %149 {strides = array<i32>} : memref<4x8x1xf32, #tpu.memory_space<vmem>>, vector<1x8x1xf32>,
      %c3_85 = arith.constant 3 : index
      %c0_86 = arith.constant 0 : index
      %c0_87 = arith.constant 0 : index
      %150 = vector.load %arg11[%c3_85, %c0_86, %c0_87] : memref<4x8x8xf32, #tpu.memory_space<vmem>>, vector<1x8x8xf32>
      %151 = vector.shape_cast %150 : vector<1x8x8xf32> to vector<8x8xf32>
      %152 = vector.broadcast %137 : vector<8x1xf32> to vector<8x8xf32>
      %153 = arith.mulf %152, %151 : vector<8x8xf32>
      %154 = arith.truncf %140 : vector<8x8xf32> to vector<8x8xbf16>
      "tpu.trace_start"() <{level = 10 : i32, message = "qk,kd->qd"}> : () -> ()
      %cst_88 = arith.constant dense<0.000000e+00> : vector<8x8xf32>
      %155 = tpu.matmul %154, %129, %cst_88 {dimension_numbers = #tpu.dot_dimension_numbers<[1], [0], [0], [1], [0, 0, 1, 1], [], []>} : vector<8x8xbf16>, vector<8x8xbf16>, vector<8x8xf32> -> vector<8x8xf32>
      "tpu.trace_stop"() : () -> ()
      %156 = arith.addf %153, %155 : vector<8x8xf32>
      %c3_89 = arith.constant 3 : index
      %c0_90 = arith.constant 0 : index
      %c0_91 = arith.constant 0 : index
      %157 = vector.load %arg11[%c3_89, %c0_90, %c0_91] : memref<4x8x8xf32, #tpu.memory_space<vmem>>, vector<1x8x8xf32>
      %158 = vector.shape_cast %157 : vector<1x8x8xf32> to vector<8x8xf32>
      %159 = vector.shape_cast %156 : vector<8x8xf32> to vector<1x8x8xf32>
      tpu.vector_store %arg11[%c3_89, %c0_90, %c0_91], %159 {strides = array<i32>} : memref<4x8x8xf32, #tpu.memory_space<vmem>>, vector<1x8x8xf32>,
      %c3_92 = arith.constant 3 : index
      %c0_93 = arith.constant 0 : index
      %c0_94 = arith.constant 0 : index
      %160 = vector.load %arg9[%c3_92, %c0_93, %c0_94] : memref<4x8x1xf32, #tpu.memory_space<vmem>>, vector<1x8x1xf32>
      %161 = vector.shape_cast %160 : vector<1x8x1xf32> to vector<8x1xf32>
      %162 = vector.shape_cast %135 : vector<8x1xf32> to vector<1x8x1xf32>
      tpu.vector_store %arg9[%c3_92, %c0_93, %c0_94], %162 {strides = array<i32>} : memref<4x8x1xf32, #tpu.memory_space<vmem>>, vector<1x8x1xf32>,
    } else {
    }
    %16 = arith.cmpi eq, %3, %1 : i32
    %17 = arith.extui %16 : i1 to i32
    %c0_i32_10 = arith.constant 0 : i32
    %18 = arith.cmpi ne, %17, %c0_i32_10 : i32
    scf.if %18 {
      %19 = vector.extract_strided_slice %8 {offsets = [0, 0], sizes = [8, 8], strides = [1, 1]} : vector<8x32xbf16> to vector<8x8xbf16>
      %20 = vector.extract_strided_slice %10 {offsets = [0, 0], sizes = [8, 8], strides = [1, 1]} : vector<8x32xbf16> to vector<8x8xbf16>
      %21 = vector.extract_strided_slice %12 {offsets = [0, 0], sizes = [8, 8], strides = [1, 1]} : vector<8x32xbf16> to vector<8x8xbf16>
      "tpu.trace_start"() <{level = 10 : i32, message = "qd,kd->qk"}> : () -> ()
      %cst = arith.constant dense<0.000000e+00> : vector<8x8xf32>
      %22 = tpu.matmul %19, %20, %cst {dimension_numbers = #tpu.dot_dimension_numbers<[1], [1], [0], [0], [0, 0, 1, 0], [], []>} : vector<8x8xbf16>, vector<8x8xbf16>, vector<8x8xf32> -> vector<8x8xf32>
      "tpu.trace_stop"() : () -> ()
      %23 = tpu.iota {dimensions = array<i32: 0>} : vector<8x8xi32>
      %24 = tpu.iota {dimensions = array<i32: 1>} : vector<8x8xi32>
      %25 = arith.cmpi sle, %24, %23 : vector<8x8xi32>
      %cst_11 = arith.constant -1.000000e+30 : f32
      %26 = vector.broadcast %cst_11 : f32 to vector<8x8xf32>
      %27 = arith.select %25, %22, %26 : vector<8x8xi1>, vector<8x8xf32>
      %c0_12 = arith.constant 0 : index
      %c0_13 = arith.constant 0 : index
      %c0_14 = arith.constant 0 : index
      %28 = vector.load %arg9[%c0_12, %c0_13, %c0_14] : memref<4x8x1xf32, #tpu.memory_space<vmem>>, vector<1x8x1xf32>
      %29 = vector.shape_cast %28 : vector<1x8x1xf32> to vector<8x1xf32>
      %cst_15 = arith.constant dense<0xFF800000> : vector<8xf32>
      %30 = vector.multi_reduction <maximumf>, %27, %cst_15 [1] : vector<8x8xf32> to vector<8xf32>
      %31 = vector.shape_cast %30 : vector<8xf32> to vector<8x1xf32>
      %32 = arith.maximumf %29, %31 : vector<8x1xf32>
      %33 = arith.subf %29, %32 : vector<8x1xf32>
      %34 = math.exp %33 : vector<8x1xf32>
      %35 = vector.broadcast %32 : vector<8x1xf32> to vector<8x8xf32>
      %36 = arith.subf %27, %35 : vector<8x8xf32>
      %37 = math.exp %36 : vector<8x8xf32>
      %c0_16 = arith.constant 0 : index
      %c0_17 = arith.constant 0 : index
      %c0_18 = arith.constant 0 : index
      %38 = vector.load %arg10[%c0_16, %c0_17, %c0_18] : memref<4x8x1xf32, #tpu.memory_space<vmem>>, vector<1x8x1xf32>
      %39 = vector.shape_cast %38 : vector<1x8x1xf32> to vector<8x1xf32>
      %40 = arith.mulf %34, %39 : vector<8x1xf32>
      %cst_19 = arith.constant dense<0.000000e+00> : vector<8xf32>
      %41 = vector.multi_reduction <add>, %37, %cst_19 [1] : vector<8x8xf32> to vector<8xf32>
      %42 = vector.shape_cast %41 : vector<8xf32> to vector<8x1xf32>
      %43 = arith.addf %40, %42 : vector<8x1xf32>
      %c0_20 = arith.constant 0 : index
      %c0_21 = arith.constant 0 : index
      %c0_22 = arith.constant 0 : index
      %44 = vector.load %arg10[%c0_20, %c0_21, %c0_22] : memref<4x8x1xf32, #tpu.memory_space<vmem>>, vector<1x8x1xf32>
      %45 = vector.shape_cast %44 : vector<1x8x1xf32> to vector<8x1xf32>
      %46 = vector.shape_cast %43 : vector<8x1xf32> to vector<1x8x1xf32>
      tpu.vector_store %arg10[%c0_20, %c0_21, %c0_22], %46 {strides = array<i32>} : memref<4x8x1xf32, #tpu.memory_space<vmem>>, vector<1x8x1xf32>,
      %c0_23 = arith.constant 0 : index
      %c0_24 = arith.constant 0 : index
      %c0_25 = arith.constant 0 : index
      %47 = vector.load %arg11[%c0_23, %c0_24, %c0_25] : memref<4x8x8xf32, #tpu.memory_space<vmem>>, vector<1x8x8xf32>
      %48 = vector.shape_cast %47 : vector<1x8x8xf32> to vector<8x8xf32>
      %49 = vector.broadcast %34 : vector<8x1xf32> to vector<8x8xf32>
      %50 = arith.mulf %49, %48 : vector<8x8xf32>
      %51 = arith.truncf %37 : vector<8x8xf32> to vector<8x8xbf16>
      "tpu.trace_start"() <{level = 10 : i32, message = "qk,kd->qd"}> : () -> ()
      %cst_26 = arith.constant dense<0.000000e+00> : vector<8x8xf32>
      %52 = tpu.matmul %51, %21, %cst_26 {dimension_numbers = #tpu.dot_dimension_numbers<[1], [0], [0], [1], [0, 0, 1, 1], [], []>} : vector<8x8xbf16>, vector<8x8xbf16>, vector<8x8xf32> -> vector<8x8xf32>
      "tpu.trace_stop"() : () -> ()
      %53 = arith.addf %50, %52 : vector<8x8xf32>
      %c0_27 = arith.constant 0 : index
      %c0_28 = arith.constant 0 : index
      %c0_29 = arith.constant 0 : index
      %54 = vector.load %arg11[%c0_27, %c0_28, %c0_29] : memref<4x8x8xf32, #tpu.memory_space<vmem>>, vector<1x8x8xf32>
      %55 = vector.shape_cast %54 : vector<1x8x8xf32> to vector<8x8xf32>
      %56 = vector.shape_cast %53 : vector<8x8xf32> to vector<1x8x8xf32>
      tpu.vector_store %arg11[%c0_27, %c0_28, %c0_29], %56 {strides = array<i32>} : memref<4x8x8xf32, #tpu.memory_space<vmem>>, vector<1x8x8xf32>,
      %c0_30 = arith.constant 0 : index
      %c0_31 = arith.constant 0 : index
      %c0_32 = arith.constant 0 : index
      %57 = vector.load %arg9[%c0_30, %c0_31, %c0_32] : memref<4x8x1xf32, #tpu.memory_space<vmem>>, vector<1x8x1xf32>
      %58 = vector.shape_cast %57 : vector<1x8x1xf32> to vector<8x1xf32>
      %59 = vector.shape_cast %32 : vector<8x1xf32> to vector<1x8x1xf32>
      tpu.vector_store %arg9[%c0_30, %c0_31, %c0_32], %59 {strides = array<i32>} : memref<4x8x1xf32, #tpu.memory_space<vmem>>, vector<1x8x1xf32>,
      %60 = vector.extract_strided_slice %8 {offsets = [0, 8], sizes = [8, 8], strides = [1, 1]} : vector<8x32xbf16> to vector<8x8xbf16>
      %61 = vector.extract_strided_slice %10 {offsets = [0, 8], sizes = [8, 8], strides = [1, 1]} : vector<8x32xbf16> to vector<8x8xbf16>
      %62 = vector.extract_strided_slice %12 {offsets = [0, 8], sizes = [8, 8], strides = [1, 1]} : vector<8x32xbf16> to vector<8x8xbf16>
      "tpu.trace_start"() <{level = 10 : i32, message = "qd,kd->qk"}> : () -> ()
      %cst_33 = arith.constant dense<0.000000e+00> : vector<8x8xf32>
      %63 = tpu.matmul %60, %61, %cst_33 {dimension_numbers = #tpu.dot_dimension_numbers<[1], [1], [0], [0], [0, 0, 1, 0], [], []>} : vector<8x8xbf16>, vector<8x8xbf16>, vector<8x8xf32> -> vector<8x8xf32>
      "tpu.trace_stop"() : () -> ()
      %64 = tpu.iota {dimensions = array<i32: 0>} : vector<8x8xi32>
      %65 = tpu.iota {dimensions = array<i32: 1>} : vector<8x8xi32>
      %66 = arith.cmpi sle, %65, %64 : vector<8x8xi32>
      %cst_34 = arith.constant -1.000000e+30 : f32
      %67 = vector.broadcast %cst_34 : f32 to vector<8x8xf32>
      %68 = arith.select %66, %63, %67 : vector<8x8xi1>, vector<8x8xf32>
      %c1 = arith.constant 1 : index
      %c0_35 = arith.constant 0 : index
      %c0_36 = arith.constant 0 : index
      %69 = vector.load %arg9[%c1, %c0_35, %c0_36] : memref<4x8x1xf32, #tpu.memory_space<vmem>>, vector<1x8x1xf32>
      %70 = vector.shape_cast %69 : vector<1x8x1xf32> to vector<8x1xf32>
      %cst_37 = arith.constant dense<0xFF800000> : vector<8xf32>
      %71 = vector.multi_reduction <maximumf>, %68, %cst_37 [1] : vector<8x8xf32> to vector<8xf32>
      %72 = vector.shape_cast %71 : vector<8xf32> to vector<8x1xf32>
      %73 = arith.maximumf %70, %72 : vector<8x1xf32>
      %74 = arith.subf %70, %73 : vector<8x1xf32>
      %75 = math.exp %74 : vector<8x1xf32>
      %76 = vector.broadcast %73 : vector<8x1xf32> to vector<8x8xf32>
      %77 = arith.subf %68, %76 : vector<8x8xf32>
      %78 = math.exp %77 : vector<8x8xf32>
      %c1_38 = arith.constant 1 : index
      %c0_39 = arith.constant 0 : index
      %c0_40 = arith.constant 0 : index
      %79 = vector.load %arg10[%c1_38, %c0_39, %c0_40] : memref<4x8x1xf32, #tpu.memory_space<vmem>>, vector<1x8x1xf32>
      %80 = vector.shape_cast %79 : vector<1x8x1xf32> to vector<8x1xf32>
      %81 = arith.mulf %75, %80 : vector<8x1xf32>
      %cst_41 = arith.constant dense<0.000000e+00> : vector<8xf32>
      %82 = vector.multi_reduction <add>, %78, %cst_41 [1] : vector<8x8xf32> to vector<8xf32>
      %83 = vector.shape_cast %82 : vector<8xf32> to vector<8x1xf32>
      %84 = arith.addf %81, %83 : vector<8x1xf32>
      %c1_42 = arith.constant 1 : index
      %c0_43 = arith.constant 0 : index
      %c0_44 = arith.constant 0 : index
      %85 = vector.load %arg10[%c1_42, %c0_43, %c0_44] : memref<4x8x1xf32, #tpu.memory_space<vmem>>, vector<1x8x1xf32>
      %86 = vector.shape_cast %85 : vector<1x8x1xf32> to vector<8x1xf32>
      %87 = vector.shape_cast %84 : vector<8x1xf32> to vector<1x8x1xf32>
      tpu.vector_store %arg10[%c1_42, %c0_43, %c0_44], %87 {strides = array<i32>} : memref<4x8x1xf32, #tpu.memory_space<vmem>>, vector<1x8x1xf32>,
      %c1_45 = arith.constant 1 : index
      %c0_46 = arith.constant 0 : index
      %c0_47 = arith.constant 0 : index
      %88 = vector.load %arg11[%c1_45, %c0_46, %c0_47] : memref<4x8x8xf32, #tpu.memory_space<vmem>>, vector<1x8x8xf32>
      %89 = vector.shape_cast %88 : vector<1x8x8xf32> to vector<8x8xf32>
      %90 = vector.broadcast %75 : vector<8x1xf32> to vector<8x8xf32>
      %91 = arith.mulf %90, %89 : vector<8x8xf32>
      %92 = arith.truncf %78 : vector<8x8xf32> to vector<8x8xbf16>
      "tpu.trace_start"() <{level = 10 : i32, message = "qk,kd->qd"}> : () -> ()
      %cst_48 = arith.constant dense<0.000000e+00> : vector<8x8xf32>
      %93 = tpu.matmul %92, %62, %cst_48 {dimension_numbers = #tpu.dot_dimension_numbers<[1], [0], [0], [1], [0, 0, 1, 1], [], []>} : vector<8x8xbf16>, vector<8x8xbf16>, vector<8x8xf32> -> vector<8x8xf32>
      "tpu.trace_stop"() : () -> ()
      %94 = arith.addf %91, %93 : vector<8x8xf32>
      %c1_49 = arith.constant 1 : index
      %c0_50 = arith.constant 0 : index
      %c0_51 = arith.constant 0 : index
      %95 = vector.load %arg11[%c1_49, %c0_50, %c0_51] : memref<4x8x8xf32, #tpu.memory_space<vmem>>, vector<1x8x8xf32>
      %96 = vector.shape_cast %95 : vector<1x8x8xf32> to vector<8x8xf32>
      %97 = vector.shape_cast %94 : vector<8x8xf32> to vector<1x8x8xf32>
      tpu.vector_store %arg11[%c1_49, %c0_50, %c0_51], %97 {strides = array<i32>} : memref<4x8x8xf32, #tpu.memory_space<vmem>>, vector<1x8x8xf32>,
      %c1_52 = arith.constant 1 : index
      %c0_53 = arith.constant 0 : index
      %c0_54 = arith.constant 0 : index
      %98 = vector.load %arg9[%c1_52, %c0_53, %c0_54] : memref<4x8x1xf32, #tpu.memory_space<vmem>>, vector<1x8x1xf32>
      %99 = vector.shape_cast %98 : vector<1x8x1xf32> to vector<8x1xf32>
      %100 = vector.shape_cast %73 : vector<8x1xf32> to vector<1x8x1xf32>
      tpu.vector_store %arg9[%c1_52, %c0_53, %c0_54], %100 {strides = array<i32>} : memref<4x8x1xf32, #tpu.memory_space<vmem>>, vector<1x8x1xf32>,
      %101 = vector.extract_strided_slice %8 {offsets = [0, 16], sizes = [8, 8], strides = [1, 1]} : vector<8x32xbf16> to vector<8x8xbf16>
      %102 = vector.extract_strided_slice %10 {offsets = [0, 16], sizes = [8, 8], strides = [1, 1]} : vector<8x32xbf16> to vector<8x8xbf16>
      %103 = vector.extract_strided_slice %12 {offsets = [0, 16], sizes = [8, 8], strides = [1, 1]} : vector<8x32xbf16> to vector<8x8xbf16>
      "tpu.trace_start"() <{level = 10 : i32, message = "qd,kd->qk"}> : () -> ()
      %cst_55 = arith.constant dense<0.000000e+00> : vector<8x8xf32>
      %104 = tpu.matmul %101, %102, %cst_55 {dimension_numbers = #tpu.dot_dimension_numbers<[1], [1], [0], [0], [0, 0, 1, 0], [], []>} : vector<8x8xbf16>, vector<8x8xbf16>, vector<8x8xf32> -> vector<8x8xf32>
      "tpu.trace_stop"() : () -> ()
      %105 = tpu.iota {dimensions = array<i32: 0>} : vector<8x8xi32>
      %106 = tpu.iota {dimensions = array<i32: 1>} : vector<8x8xi32>
      %107 = arith.cmpi sle, %106, %105 : vector<8x8xi32>
      %cst_56 = arith.constant -1.000000e+30 : f32
      %108 = vector.broadcast %cst_56 : f32 to vector<8x8xf32>
      %109 = arith.select %107, %104, %108 : vector<8x8xi1>, vector<8x8xf32>
      %c2 = arith.constant 2 : index
      %c0_57 = arith.constant 0 : index
      %c0_58 = arith.constant 0 : index
      %110 = vector.load %arg9[%c2, %c0_57, %c0_58] : memref<4x8x1xf32, #tpu.memory_space<vmem>>, vector<1x8x1xf32>
      %111 = vector.shape_cast %110 : vector<1x8x1xf32> to vector<8x1xf32>
      %cst_59 = arith.constant dense<0xFF800000> : vector<8xf32>
      %112 = vector.multi_reduction <maximumf>, %109, %cst_59 [1] : vector<8x8xf32> to vector<8xf32>
      %113 = vector.shape_cast %112 : vector<8xf32> to vector<8x1xf32>
      %114 = arith.maximumf %111, %113 : vector<8x1xf32>
      %115 = arith.subf %111, %114 : vector<8x1xf32>
      %116 = math.exp %115 : vector<8x1xf32>
      %117 = vector.broadcast %114 : vector<8x1xf32> to vector<8x8xf32>
      %118 = arith.subf %109, %117 : vector<8x8xf32>
      %119 = math.exp %118 : vector<8x8xf32>
      %c2_60 = arith.constant 2 : index
      %c0_61 = arith.constant 0 : index
      %c0_62 = arith.constant 0 : index
      %120 = vector.load %arg10[%c2_60, %c0_61, %c0_62] : memref<4x8x1xf32, #tpu.memory_space<vmem>>, vector<1x8x1xf32>
      %121 = vector.shape_cast %120 : vector<1x8x1xf32> to vector<8x1xf32>
      %122 = arith.mulf %116, %121 : vector<8x1xf32>
      %cst_63 = arith.constant dense<0.000000e+00> : vector<8xf32>
      %123 = vector.multi_reduction <add>, %119, %cst_63 [1] : vector<8x8xf32> to vector<8xf32>
      %124 = vector.shape_cast %123 : vector<8xf32> to vector<8x1xf32>
      %125 = arith.addf %122, %124 : vector<8x1xf32>
      %c2_64 = arith.constant 2 : index
      %c0_65 = arith.constant 0 : index
      %c0_66 = arith.constant 0 : index
      %126 = vector.load %arg10[%c2_64, %c0_65, %c0_66] : memref<4x8x1xf32, #tpu.memory_space<vmem>>, vector<1x8x1xf32>
      %127 = vector.shape_cast %126 : vector<1x8x1xf32> to vector<8x1xf32>
      %128 = vector.shape_cast %125 : vector<8x1xf32> to vector<1x8x1xf32>
      tpu.vector_store %arg10[%c2_64, %c0_65, %c0_66], %128 {strides = array<i32>} : memref<4x8x1xf32, #tpu.memory_space<vmem>>, vector<1x8x1xf32>,
      %c2_67 = arith.constant 2 : index
      %c0_68 = arith.constant 0 : index
      %c0_69 = arith.constant 0 : index
      %129 = vector.load %arg11[%c2_67, %c0_68, %c0_69] : memref<4x8x8xf32, #tpu.memory_space<vmem>>, vector<1x8x8xf32>
      %130 = vector.shape_cast %129 : vector<1x8x8xf32> to vector<8x8xf32>
      %131 = vector.broadcast %116 : vector<8x1xf32> to vector<8x8xf32>
      %132 = arith.mulf %131, %130 : vector<8x8xf32>
      %133 = arith.truncf %119 : vector<8x8xf32> to vector<8x8xbf16>
      "tpu.trace_start"() <{level = 10 : i32, message = "qk,kd->qd"}> : () -> ()
      %cst_70 = arith.constant dense<0.000000e+00> : vector<8x8xf32>
      %134 = tpu.matmul %133, %103, %cst_70 {dimension_numbers = #tpu.dot_dimension_numbers<[1], [0], [0], [1], [0, 0, 1, 1], [], []>} : vector<8x8xbf16>, vector<8x8xbf16>, vector<8x8xf32> -> vector<8x8xf32>
      "tpu.trace_stop"() : () -> ()
      %135 = arith.addf %132, %134 : vector<8x8xf32>
      %c2_71 = arith.constant 2 : index
      %c0_72 = arith.constant 0 : index
      %c0_73 = arith.constant 0 : index
      %136 = vector.load %arg11[%c2_71, %c0_72, %c0_73] : memref<4x8x8xf32, #tpu.memory_space<vmem>>, vector<1x8x8xf32>
      %137 = vector.shape_cast %136 : vector<1x8x8xf32> to vector<8x8xf32>
      %138 = vector.shape_cast %135 : vector<8x8xf32> to vector<1x8x8xf32>
      tpu.vector_store %arg11[%c2_71, %c0_72, %c0_73], %138 {strides = array<i32>} : memref<4x8x8xf32, #tpu.memory_space<vmem>>, vector<1x8x8xf32>,
      %c2_74 = arith.constant 2 : index
      %c0_75 = arith.constant 0 : index
      %c0_76 = arith.constant 0 : index
      %139 = vector.load %arg9[%c2_74, %c0_75, %c0_76] : memref<4x8x1xf32, #tpu.memory_space<vmem>>, vector<1x8x1xf32>
      %140 = vector.shape_cast %139 : vector<1x8x1xf32> to vector<8x1xf32>
      %141 = vector.shape_cast %114 : vector<8x1xf32> to vector<1x8x1xf32>
      tpu.vector_store %arg9[%c2_74, %c0_75, %c0_76], %141 {strides = array<i32>} : memref<4x8x1xf32, #tpu.memory_space<vmem>>, vector<1x8x1xf32>,
      %142 = vector.extract_strided_slice %8 {offsets = [0, 24], sizes = [8, 8], strides = [1, 1]} : vector<8x32xbf16> to vector<8x8xbf16>
      %143 = vector.extract_strided_slice %10 {offsets = [0, 24], sizes = [8, 8], strides = [1, 1]} : vector<8x32xbf16> to vector<8x8xbf16>
      %144 = vector.extract_strided_slice %12 {offsets = [0, 24], sizes = [8, 8], strides = [1, 1]} : vector<8x32xbf16> to vector<8x8xbf16>
      "tpu.trace_start"() <{level = 10 : i32, message = "qd,kd->qk"}> : () -> ()
      %cst_77 = arith.constant dense<0.000000e+00> : vector<8x8xf32>
      %145 = tpu.matmul %142, %143, %cst_77 {dimension_numbers = #tpu.dot_dimension_numbers<[1], [1], [0], [0], [0, 0, 1, 0], [], []>} : vector<8x8xbf16>, vector<8x8xbf16>, vector<8x8xf32> -> vector<8x8xf32>
      "tpu.trace_stop"() : () -> ()
      %146 = tpu.iota {dimensions = array<i32: 0>} : vector<8x8xi32>
      %147 = tpu.iota {dimensions = array<i32: 1>} : vector<8x8xi32>
      %148 = arith.cmpi sle, %147, %146 : vector<8x8xi32>
      %cst_78 = arith.constant -1.000000e+30 : f32
      %149 = vector.broadcast %cst_78 : f32 to vector<8x8xf32>
      %150 = arith.select %148, %145, %149 : vector<8x8xi1>, vector<8x8xf32>
      %c3 = arith.constant 3 : index
      %c0_79 = arith.constant 0 : index
      %c0_80 = arith.constant 0 : index
      %151 = vector.load %arg9[%c3, %c0_79, %c0_80] : memref<4x8x1xf32, #tpu.memory_space<vmem>>, vector<1x8x1xf32>
      %152 = vector.shape_cast %151 : vector<1x8x1xf32> to vector<8x1xf32>
      %cst_81 = arith.constant dense<0xFF800000> : vector<8xf32>
      %153 = vector.multi_reduction <maximumf>, %150, %cst_81 [1] : vector<8x8xf32> to vector<8xf32>
      %154 = vector.shape_cast %153 : vector<8xf32> to vector<8x1xf32>
      %155 = arith.maximumf %152, %154 : vector<8x1xf32>
      %156 = arith.subf %152, %155 : vector<8x1xf32>
      %157 = math.exp %156 : vector<8x1xf32>
      %158 = vector.broadcast %155 : vector<8x1xf32> to vector<8x8xf32>
      %159 = arith.subf %150, %158 : vector<8x8xf32>
      %160 = math.exp %159 : vector<8x8xf32>
      %c3_82 = arith.constant 3 : index
      %c0_83 = arith.constant 0 : index
      %c0_84 = arith.constant 0 : index
      %161 = vector.load %arg10[%c3_82, %c0_83, %c0_84] : memref<4x8x1xf32, #tpu.memory_space<vmem>>, vector<1x8x1xf32>
      %162 = vector.shape_cast %161 : vector<1x8x1xf32> to vector<8x1xf32>
      %163 = arith.mulf %157, %162 : vector<8x1xf32>
      %cst_85 = arith.constant dense<0.000000e+00> : vector<8xf32>
      %164 = vector.multi_reduction <add>, %160, %cst_85 [1] : vector<8x8xf32> to vector<8xf32>
      %165 = vector.shape_cast %164 : vector<8xf32> to vector<8x1xf32>
      %166 = arith.addf %163, %165 : vector<8x1xf32>
      %c3_86 = arith.constant 3 : index
      %c0_87 = arith.constant 0 : index
      %c0_88 = arith.constant 0 : index
      %167 = vector.load %arg10[%c3_86, %c0_87, %c0_88] : memref<4x8x1xf32, #tpu.memory_space<vmem>>, vector<1x8x1xf32>
      %168 = vector.shape_cast %167 : vector<1x8x1xf32> to vector<8x1xf32>
      %169 = vector.shape_cast %166 : vector<8x1xf32> to vector<1x8x1xf32>
      tpu.vector_store %arg10[%c3_86, %c0_87, %c0_88], %169 {strides = array<i32>} : memref<4x8x1xf32, #tpu.memory_space<vmem>>, vector<1x8x1xf32>,
      %c3_89 = arith.constant 3 : index
      %c0_90 = arith.constant 0 : index
      %c0_91 = arith.constant 0 : index
      %170 = vector.load %arg11[%c3_89, %c0_90, %c0_91] : memref<4x8x8xf32, #tpu.memory_space<vmem>>, vector<1x8x8xf32>
      %171 = vector.shape_cast %170 : vector<1x8x8xf32> to vector<8x8xf32>
      %172 = vector.broadcast %157 : vector<8x1xf32> to vector<8x8xf32>
      %173 = arith.mulf %172, %171 : vector<8x8xf32>
      %174 = arith.truncf %160 : vector<8x8xf32> to vector<8x8xbf16>
      "tpu.trace_start"() <{level = 10 : i32, message = "qk,kd->qd"}> : () -> ()
      %cst_92 = arith.constant dense<0.000000e+00> : vector<8x8xf32>
      %175 = tpu.matmul %174, %144, %cst_92 {dimension_numbers = #tpu.dot_dimension_numbers<[1], [0], [0], [1], [0, 0, 1, 1], [], []>} : vector<8x8xbf16>, vector<8x8xbf16>, vector<8x8xf32> -> vector<8x8xf32>
      "tpu.trace_stop"() : () -> ()
      %176 = arith.addf %173, %175 : vector<8x8xf32>
      %c3_93 = arith.constant 3 : index
      %c0_94 = arith.constant 0 : index
      %c0_95 = arith.constant 0 : index
      %177 = vector.load %arg11[%c3_93, %c0_94, %c0_95] : memref<4x8x8xf32, #tpu.memory_space<vmem>>, vector<1x8x8xf32>
      %178 = vector.shape_cast %177 : vector<1x8x8xf32> to vector<8x8xf32>
      %179 = vector.shape_cast %176 : vector<8x8xf32> to vector<1x8x8xf32>
      tpu.vector_store %arg11[%c3_93, %c0_94, %c0_95], %179 {strides = array<i32>} : memref<4x8x8xf32, #tpu.memory_space<vmem>>, vector<1x8x8xf32>,
      %c3_96 = arith.constant 3 : index
      %c0_97 = arith.constant 0 : index
      %c0_98 = arith.constant 0 : index
      %180 = vector.load %arg9[%c3_96, %c0_97, %c0_98] : memref<4x8x1xf32, #tpu.memory_space<vmem>>, vector<1x8x1xf32>
      %181 = vector.shape_cast %180 : vector<1x8x1xf32> to vector<8x1xf32>
      %182 = vector.shape_cast %155 : vector<8x1xf32> to vector<1x8x1xf32>
      tpu.vector_store %arg9[%c3_96, %c0_97, %c0_98], %182 {strides = array<i32>} : memref<4x8x1xf32, #tpu.memory_space<vmem>>, vector<1x8x1xf32>,
      %c0_99 = arith.constant 0 : index
      %c0_100 = arith.constant 0 : index
      %c0_101 = arith.constant 0 : index
      %183 = vector.load %arg10[%c0_99, %c0_100, %c0_101] : memref<4x8x1xf32, #tpu.memory_space<vmem>>, vector<1x8x1xf32>
      %184 = vector.shape_cast %183 : vector<1x8x1xf32> to vector<8x1xf32>
      %185 = tpu.reciprocal %184 {approx = true} : vector<8x1xf32> -> vector<8x1xf32>
      %c0_102 = arith.constant 0 : index
      %c0_103 = arith.constant 0 : index
      %c0_104 = arith.constant 0 : index
      %186 = vector.load %arg11[%c0_102, %c0_103, %c0_104] : memref<4x8x8xf32, #tpu.memory_space<vmem>>, vector<1x8x8xf32>
      %187 = vector.shape_cast %186 : vector<1x8x8xf32> to vector<8x8xf32>
      %188 = vector.broadcast %185 : vector<8x1xf32> to vector<8x8xf32>
      %189 = arith.mulf %187, %188 : vector<8x8xf32>
      %190 = arith.truncf %189 : vector<8x8xf32> to vector<8x8xbf16>
      %c1_105 = arith.constant 1 : index
      %c0_106 = arith.constant 0 : index
      %c0_107 = arith.constant 0 : index
      %191 = vector.load %arg10[%c1_105, %c0_106, %c0_107] : memref<4x8x1xf32, #tpu.memory_space<vmem>>, vector<1x8x1xf32>
      %192 = vector.shape_cast %191 : vector<1x8x1xf32> to vector<8x1xf32>
      %193 = tpu.reciprocal %192 {approx = true} : vector<8x1xf32> -> vector<8x1xf32>
      %c1_108 = arith.constant 1 : index
      %c0_109 = arith.constant 0 : index
      %c0_110 = arith.constant 0 : index
      %194 = vector.load %arg11[%c1_108, %c0_109, %c0_110] : memref<4x8x8xf32, #tpu.memory_space<vmem>>, vector<1x8x8xf32>
      %195 = vector.shape_cast %194 : vector<1x8x8xf32> to vector<8x8xf32>
      %196 = vector.broadcast %193 : vector<8x1xf32> to vector<8x8xf32>
      %197 = arith.mulf %195, %196 : vector<8x8xf32>
      %198 = arith.truncf %197 : vector<8x8xf32> to vector<8x8xbf16>
      %c2_111 = arith.constant 2 : index
      %c0_112 = arith.constant 0 : index
      %c0_113 = arith.constant 0 : index
      %199 = vector.load %arg10[%c2_111, %c0_112, %c0_113] : memref<4x8x1xf32, #tpu.memory_space<vmem>>, vector<1x8x1xf32>
      %200 = vector.shape_cast %199 : vector<1x8x1xf32> to vector<8x1xf32>
      %201 = tpu.reciprocal %200 {approx = true} : vector<8x1xf32> -> vector<8x1xf32>
      %c2_114 = arith.constant 2 : index
      %c0_115 = arith.constant 0 : index
      %c0_116 = arith.constant 0 : index
      %202 = vector.load %arg11[%c2_114, %c0_115, %c0_116] : memref<4x8x8xf32, #tpu.memory_space<vmem>>, vector<1x8x8xf32>
      %203 = vector.shape_cast %202 : vector<1x8x8xf32> to vector<8x8xf32>
      %204 = vector.broadcast %201 : vector<8x1xf32> to vector<8x8xf32>
      %205 = arith.mulf %203, %204 : vector<8x8xf32>
      %206 = arith.truncf %205 : vector<8x8xf32> to vector<8x8xbf16>
      %c3_117 = arith.constant 3 : index
      %c0_118 = arith.constant 0 : index
      %c0_119 = arith.constant 0 : index
      %207 = vector.load %arg10[%c3_117, %c0_118, %c0_119] : memref<4x8x1xf32, #tpu.memory_space<vmem>>, vector<1x8x1xf32>
      %208 = vector.shape_cast %207 : vector<1x8x1xf32> to vector<8x1xf32>
      %209 = tpu.reciprocal %208 {approx = true} : vector<8x1xf32> -> vector<8x1xf32>
      %c3_120 = arith.constant 3 : index
      %c0_121 = arith.constant 0 : index
      %c0_122 = arith.constant 0 : index
      %210 = vector.load %arg11[%c3_120, %c0_121, %c0_122] : memref<4x8x8xf32, #tpu.memory_space<vmem>>, vector<1x8x8xf32>
      %211 = vector.shape_cast %210 : vector<1x8x8xf32> to vector<8x8xf32>
      %212 = vector.broadcast %209 : vector<8x1xf32> to vector<8x8xf32>
      %213 = arith.mulf %211, %212 : vector<8x8xf32>
      %214 = arith.truncf %213 : vector<8x8xf32> to vector<8x8xbf16>
      %215 = tpu.concatenate %190, %198, %206, %214 in 1 : vector<8x8xbf16>, vector<8x8xbf16>, vector<8x8xbf16>, vector<8x8xbf16> -> vector<8x32xbf16>
      %c0_123 = arith.constant 0 : index
      %c0_124 = arith.constant 0 : index
      %c0_125 = arith.constant 0 : index
      %216 = vector.load %arg8[%c0_123, %c0_124, %c0_125] : memref<1x8x32xbf16, #tpu.memory_space<vmem>>, vector<1x8x32xbf16>
      %217 = vector.shape_cast %216 : vector<1x8x32xbf16> to vector<8x32xbf16>
      %218 = vector.shape_cast %215 : vector<8x32xbf16> to vector<1x8x32xbf16>
      tpu.vector_store %arg8[%c0_123, %c0_124, %c0_125], %218 {strides = array<i32>} : memref<1x8x32xbf16, #tpu.memory_space<vmem>>, vector<1x8x32xbf16>,
    } else {
    }
    return
  }
  func.func @transform_0(%arg0: i32, %arg1: i32, %arg2: i32, %arg3: memref<1xi32, #tpu.memory_space<smem>>, %arg4: memref<1xi32, #tpu.memory_space<smem>>) -> (i32, i32, i32) {
    %0 = arith.index_cast %arg2 : i32 to index
    %1 = memref.load %arg3[%0] : memref<1xi32, #tpu.memory_space<smem>>
    %c0_i32 = arith.constant 0 : i32
    return %arg0, %1, %arg1 : i32, i32, i32
  }
  func.func @transform_1(%arg0: i32, %arg1: i32, %arg2: i32, %arg3: memref<1xi32, #tpu.memory_space<smem>>, %arg4: memref<1xi32, #tpu.memory_space<smem>>) -> (i32, i32, i32) {
    %0 = arith.index_cast %arg2 : i32 to index
    %1 = memref.load %arg4[%0] : memref<1xi32, #tpu.memory_space<smem>>
    %c0_i32 = arith.constant 0 : i32
    return %arg0, %1, %arg1 : i32, i32, i32
  }
  func.func @transform_2(%arg0: i32, %arg1: i32, %arg2: i32, %arg3: memref<1xi32, #tpu.memory_space<smem>>, %arg4: memref<1xi32, #tpu.memory_space<smem>>) -> (i32, i32, i32) {
    %0 = arith.index_cast %arg2 : i32 to index
    %1 = memref.load %arg4[%0] : memref<1xi32, #tpu.memory_space<smem>>
    %c0_i32 = arith.constant 0 : i32
    return %arg0, %1, %arg1 : i32, i32, i32
  }
  func.func @transform_3(%arg0: i32, %arg1: i32, %arg2: i32, %arg3: memref<1xi32, #tpu.memory_space<smem>>, %arg4: memref<1xi32, #tpu.memory_space<smem>>) -> (i32, i32, i32) {
    %0 = arith.index_cast %arg2 : i32 to index
    %1 = memref.load %arg3[%0] : memref<1xi32, #tpu.memory_space<smem>>
    %c0_i32 = arith.constant 0 : i32
    return %arg0, %1, %arg1 : i32, i32, i32
  }
}

module attributes {stable_mosaic.version = 11 : i64} {
  func.func @proj_ffn_kernel(%arg0: i32, %arg1: i32, %arg2: i32, %arg3: memref<1x8x32xbf16, #tpu.memory_space<vmem>>, %arg4: memref<1x8x32xf32, #tpu.memory_space<vmem>>, %arg5: memref<32x32xbf16, #tpu.memory_space<vmem>>, %arg6: memref<1x32xf32, #tpu.memory_space<vmem>>, %arg7: memref<1x32xf32, #tpu.memory_space<vmem>>, %arg8: memref<1x32xf32, #tpu.memory_space<vmem>>, %arg9: memref<32x128xbf16, #tpu.memory_space<vmem>>, %arg10: memref<1x128xf32, #tpu.memory_space<vmem>>, %arg11: memref<128x32xbf16, #tpu.memory_space<vmem>>, %arg12: memref<1x32xf32, #tpu.memory_space<vmem>>, %arg13: memref<1x8x32xf32, #tpu.memory_space<vmem>>, %arg14: memref<8x32xbf16, #tpu.memory_space<vmem>>, %arg15: memref<8x32xf32, #tpu.memory_space<vmem>>, %arg16: memref<8x32xf32, #tpu.memory_space<vmem>>) attributes {dimension_semantics = [#tpu.dimension_semantics<parallel>, #tpu.dimension_semantics<parallel>, #tpu.dimension_semantics<arbitrary>], iteration_bounds = array<i64: 2, 1, 1>, scalar_prefetch = 0 : i64, scratch_operands = 3 : i64, tpu.core_type = #tpu.core_type<tc>, window_params = [{transform_indices = @transform_0, window_bounds = array<i64: 1, 8, 32>}, {transform_indices = @transform_1, window_bounds = array<i64: 1, 8, 32>}, {pipeline_mode = #tpu.pipeline_mode<synchronous>, transform_indices = @transform_2, window_bounds = array<i64: 32, 32>}, {pipeline_mode = #tpu.pipeline_mode<synchronous>, transform_indices = @transform_3, window_bounds = array<i64: 1, 32>}, {pipeline_mode = #tpu.pipeline_mode<synchronous>, transform_indices = @transform_4, window_bounds = array<i64: 1, 32>}, {pipeline_mode = #tpu.pipeline_mode<synchronous>, transform_indices = @transform_5, window_bounds = array<i64: 1, 32>}, {transform_indices = @transform_6, window_bounds = array<i64: 32, 128>}, {transform_indices = @transform_7, window_bounds = array<i64: 1, 128>}, {transform_indices = @transform_8, window_bounds = array<i64: 128, 32>}, {pipeline_mode = #tpu.pipeline_mode<synchronous>, transform_indices = @transform_9, window_bounds = array<i64: 1, 32>}, {transform_indices = @transform_10, window_bounds = array<i64: 1, 8, 32>}]} {
    %c0_i32 = arith.constant 0 : i32
    %0 = arith.cmpi eq, %arg2, %c0_i32 : i32
    %1 = arith.extui %0 : i1 to i32
    %c0_i32_0 = arith.constant 0 : i32
    %2 = arith.cmpi ne, %1, %c0_i32_0 : i32
    scf.if %2 {
      %c0_19 = arith.constant 0 : index
      %c0_20 = arith.constant 0 : index
      %c0_21 = arith.constant 0 : index
      %34 = vector.load %arg3[%c0_19, %c0_20, %c0_21] : memref<1x8x32xbf16, #tpu.memory_space<vmem>>, vector<1x8x32xbf16>
      %35 = vector.shape_cast %34 : vector<1x8x32xbf16> to vector<8x32xbf16>
      %c0_22 = arith.constant 0 : index
      %c0_23 = arith.constant 0 : index
      %36 = vector.load %arg5[%c0_22, %c0_23] : memref<32x32xbf16, #tpu.memory_space<vmem>>, vector<32x32xbf16>
      %cst_24 = arith.constant dense<0.000000e+00> : vector<8x32xf32>
      %37 = tpu.matmul %35, %36, %cst_24 {dimension_numbers = #tpu.dot_dimension_numbers<[1], [0], [0], [1], [0, 0, 1, 1], [], []>} : vector<8x32xbf16>, vector<32x32xbf16>, vector<8x32xf32> -> vector<8x32xf32>
      %c0_25 = arith.constant 0 : index
      %c0_26 = arith.constant 0 : index
      %38 = vector.load %arg6[%c0_25, %c0_26] : memref<1x32xf32, #tpu.memory_space<vmem>>, vector<1x32xf32>
      %39 = vector.shape_cast %38 : vector<1x32xf32> to vector<32xf32>
      %40 = vector.shape_cast %39 : vector<32xf32> to vector<1x32xf32>
      %41 = vector.broadcast %40 : vector<1x32xf32> to vector<8x32xf32>
      %42 = arith.addf %37, %41 : vector<8x32xf32>
      %c0_27 = arith.constant 0 : index
      %c0_28 = arith.constant 0 : index
      %c0_29 = arith.constant 0 : index
      %43 = vector.load %arg4[%c0_27, %c0_28, %c0_29] : memref<1x8x32xf32, #tpu.memory_space<vmem>>, vector<1x8x32xf32>
      %44 = vector.shape_cast %43 : vector<1x8x32xf32> to vector<8x32xf32>
      %45 = arith.addf %44, %42 : vector<8x32xf32>
      %c0_30 = arith.constant 0 : index
      %c0_31 = arith.constant 0 : index
      %46 = vector.load %arg15[%c0_30, %c0_31] : memref<8x32xf32, #tpu.memory_space<vmem>>, vector<8x32xf32>
      tpu.vector_store %arg15[%c0_30, %c0_31], %45 {strides = array<i32>} : memref<8x32xf32, #tpu.memory_space<vmem>>, vector<8x32xf32>,
      %c0_32 = arith.constant 0 : index
      %c0_33 = arith.constant 0 : index
      %47 = vector.load %arg7[%c0_32, %c0_33] : memref<1x32xf32, #tpu.memory_space<vmem>>, vector<1x32xf32>
      %48 = vector.shape_cast %47 : vector<1x32xf32> to vector<32xf32>
      %c0_34 = arith.constant 0 : index
      %c0_35 = arith.constant 0 : index
      %49 = vector.load %arg8[%c0_34, %c0_35] : memref<1x32xf32, #tpu.memory_space<vmem>>, vector<1x32xf32>
      %50 = vector.shape_cast %49 : vector<1x32xf32> to vector<32xf32>
      %cst_36 = arith.constant dense<0.000000e+00> : vector<8xf32>
      %51 = vector.multi_reduction <add>, %45, %cst_36 [1] : vector<8x32xf32> to vector<8xf32>
      %52 = vector.shape_cast %51 : vector<8xf32> to vector<8x1xf32>
      %cst_37 = arith.constant 3.200000e+01 : f32
      %53 = vector.broadcast %cst_37 : f32 to vector<8x1xf32>
      %54 = arith.divf %52, %53 : vector<8x1xf32>
      %55 = vector.broadcast %54 : vector<8x1xf32> to vector<8x32xf32>
      %56 = arith.subf %45, %55 : vector<8x32xf32>
      %57 = arith.mulf %56, %56 : vector<8x32xf32>
      %cst_38 = arith.constant dense<0.000000e+00> : vector<8xf32>
      %58 = vector.multi_reduction <add>, %57, %cst_38 [1] : vector<8x32xf32> to vector<8xf32>
      %59 = vector.shape_cast %58 : vector<8xf32> to vector<8x1xf32>
      %cst_39 = arith.constant 3.200000e+01 : f32
      %60 = vector.broadcast %cst_39 : f32 to vector<8x1xf32>
      %61 = arith.divf %59, %60 : vector<8x1xf32>
      %62 = vector.broadcast %54 : vector<8x1xf32> to vector<8x32xf32>
      %63 = arith.subf %45, %62 : vector<8x32xf32>
      %cst_40 = arith.constant 9.99999974E-6 : f32
      %64 = vector.broadcast %cst_40 : f32 to vector<8x1xf32>
      %65 = arith.addf %61, %64 : vector<8x1xf32>
      %66 = math.sqrt %65 : vector<8x1xf32>
      %67 = vector.broadcast %66 : vector<8x1xf32> to vector<8x32xf32>
      %68 = arith.divf %63, %67 : vector<8x32xf32>
      %69 = vector.shape_cast %48 : vector<32xf32> to vector<1x32xf32>
      %70 = vector.broadcast %69 : vector<1x32xf32> to vector<8x32xf32>
      %71 = arith.mulf %70, %68 : vector<8x32xf32>
      %72 = vector.shape_cast %50 : vector<32xf32> to vector<1x32xf32>
      %73 = vector.broadcast %72 : vector<1x32xf32> to vector<8x32xf32>
      %74 = arith.addf %71, %73 : vector<8x32xf32>
      %75 = arith.truncf %74 : vector<8x32xf32> to vector<8x32xbf16>
      %c0_41 = arith.constant 0 : index
      %c0_42 = arith.constant 0 : index
      %76 = vector.load %arg14[%c0_41, %c0_42] : memref<8x32xbf16, #tpu.memory_space<vmem>>, vector<8x32xbf16>
      tpu.vector_store %arg14[%c0_41, %c0_42], %75 {strides = array<i32>} : memref<8x32xbf16, #tpu.memory_space<vmem>>, vector<8x32xbf16>,
      %cst_43 = arith.constant 0.000000e+00 : f32
      %77 = vector.broadcast %cst_43 : f32 to vector<8x32xf32>
      %c0_44 = arith.constant 0 : index
      %c0_45 = arith.constant 0 : index
      %78 = vector.load %arg16[%c0_44, %c0_45] : memref<8x32xf32, #tpu.memory_space<vmem>>, vector<8x32xf32>
      tpu.vector_store %arg16[%c0_44, %c0_45], %77 {strides = array<i32>} : memref<8x32xf32, #tpu.memory_space<vmem>>, vector<8x32xf32>,
    } else {
    }
    %c0 = arith.constant 0 : index
    %c0_1 = arith.constant 0 : index
    %3 = vector.load %arg14[%c0, %c0_1] : memref<8x32xbf16, #tpu.memory_space<vmem>>, vector<8x32xbf16>
    %c0_2 = arith.constant 0 : index
    %c0_3 = arith.constant 0 : index
    %4 = vector.load %arg9[%c0_2, %c0_3] : memref<32x128xbf16, #tpu.memory_space<vmem>>, vector<32x128xbf16>
    %cst = arith.constant dense<0.000000e+00> : vector<8x128xf32>
    %5 = tpu.matmul %3, %4, %cst {dimension_numbers = #tpu.dot_dimension_numbers<[1], [0], [0], [1], [0, 0, 1, 1], [], []>} : vector<8x32xbf16>, vector<32x128xbf16>, vector<8x128xf32> -> vector<8x128xf32>
    %c0_4 = arith.constant 0 : index
    %c0_5 = arith.constant 0 : index
    %6 = vector.load %arg10[%c0_4, %c0_5] : memref<1x128xf32, #tpu.memory_space<vmem>>, vector<1x128xf32>
    %7 = vector.shape_cast %6 : vector<1x128xf32> to vector<128xf32>
    %8 = vector.shape_cast %7 : vector<128xf32> to vector<1x128xf32>
    %9 = vector.broadcast %8 : vector<1x128xf32> to vector<8x128xf32>
    %10 = arith.addf %5, %9 : vector<8x128xf32>
    %cst_6 = arith.constant 5.000000e-01 : f32
    %11 = vector.broadcast %cst_6 : f32 to vector<8x128xf32>
    %12 = arith.mulf %11, %10 : vector<8x128xf32>
    %cst_7 = arith.constant 0.636619746 : f32
    %13 = math.sqrt %cst_7 : f32
    %14 = arith.mulf %10, %10 : vector<8x128xf32>
    %15 = arith.mulf %10, %14 : vector<8x128xf32>
    %cst_8 = arith.constant 4.471500e-02 : f32
    %16 = vector.broadcast %cst_8 : f32 to vector<8x128xf32>
    %17 = arith.mulf %16, %15 : vector<8x128xf32>
    %18 = arith.addf %10, %17 : vector<8x128xf32>
    %19 = vector.broadcast %13 : f32 to vector<8x128xf32>
    %20 = arith.mulf %19, %18 : vector<8x128xf32>
    %21 = math.tanh %20 : vector<8x128xf32>
    %cst_9 = arith.constant 1.000000e+00 : f32
    %22 = vector.broadcast %cst_9 : f32 to vector<8x128xf32>
    %23 = arith.addf %22, %21 : vector<8x128xf32>
    %24 = arith.mulf %12, %23 : vector<8x128xf32>
    %25 = arith.truncf %24 : vector<8x128xf32> to vector<8x128xbf16>
    %c0_10 = arith.constant 0 : index
    %c0_11 = arith.constant 0 : index
    %26 = vector.load %arg16[%c0_10, %c0_11] : memref<8x32xf32, #tpu.memory_space<vmem>>, vector<8x32xf32>
    %c0_12 = arith.constant 0 : index
    %c0_13 = arith.constant 0 : index
    %27 = vector.load %arg11[%c0_12, %c0_13] : memref<128x32xbf16, #tpu.memory_space<vmem>>, vector<128x32xbf16>
    %cst_14 = arith.constant dense<0.000000e+00> : vector<8x32xf32>
    %28 = tpu.matmul %25, %27, %cst_14 {dimension_numbers = #tpu.dot_dimension_numbers<[1], [0], [0], [1], [0, 0, 1, 1], [], []>} : vector<8x128xbf16>, vector<128x32xbf16>, vector<8x32xf32> -> vector<8x32xf32>
    %29 = arith.addf %26, %28 : vector<8x32xf32>
    %c0_15 = arith.constant 0 : index
    %c0_16 = arith.constant 0 : index
    %30 = vector.load %arg16[%c0_15, %c0_16] : memref<8x32xf32, #tpu.memory_space<vmem>>, vector<8x32xf32>
    tpu.vector_store %arg16[%c0_15, %c0_16], %29 {strides = array<i32>} : memref<8x32xf32, #tpu.memory_space<vmem>>, vector<8x32xf32>,
    %c0_i32_17 = arith.constant 0 : i32
    %31 = arith.cmpi eq, %arg2, %c0_i32_17 : i32
    %32 = arith.extui %31 : i1 to i32
    %c0_i32_18 = arith.constant 0 : i32
    %33 = arith.cmpi ne, %32, %c0_i32_18 : i32
    scf.if %33 {
      %c0_19 = arith.constant 0 : index
      %c0_20 = arith.constant 0 : index
      %34 = vector.load %arg15[%c0_19, %c0_20] : memref<8x32xf32, #tpu.memory_space<vmem>>, vector<8x32xf32>
      %c0_21 = arith.constant 0 : index
      %c0_22 = arith.constant 0 : index
      %35 = vector.load %arg16[%c0_21, %c0_22] : memref<8x32xf32, #tpu.memory_space<vmem>>, vector<8x32xf32>
      %36 = arith.addf %34, %35 : vector<8x32xf32>
      %c0_23 = arith.constant 0 : index
      %c0_24 = arith.constant 0 : index
      %37 = vector.load %arg12[%c0_23, %c0_24] : memref<1x32xf32, #tpu.memory_space<vmem>>, vector<1x32xf32>
      %38 = vector.shape_cast %37 : vector<1x32xf32> to vector<32xf32>
      %39 = vector.shape_cast %38 : vector<32xf32> to vector<1x32xf32>
      %40 = vector.broadcast %39 : vector<1x32xf32> to vector<8x32xf32>
      %41 = arith.addf %36, %40 : vector<8x32xf32>
      %c0_25 = arith.constant 0 : index
      %c0_26 = arith.constant 0 : index
      %c0_27 = arith.constant 0 : index
      %42 = vector.load %arg13[%c0_25, %c0_26, %c0_27] : memref<1x8x32xf32, #tpu.memory_space<vmem>>, vector<1x8x32xf32>
      %43 = vector.shape_cast %42 : vector<1x8x32xf32> to vector<8x32xf32>
      %44 = vector.shape_cast %41 : vector<8x32xf32> to vector<1x8x32xf32>
      tpu.vector_store %arg13[%c0_25, %c0_26, %c0_27], %44 {strides = array<i32>} : memref<1x8x32xf32, #tpu.memory_space<vmem>>, vector<1x8x32xf32>,
    } else {
    }
    return
  }
  func.func @transform_0(%arg0: i32, %arg1: i32, %arg2: i32) -> (i32, i32, i32) {
    %c0_i32 = arith.constant 0 : i32
    %c0_i32_0 = arith.constant 0 : i32
    return %arg0, %arg1, %c0_i32 : i32, i32, i32
  }
  func.func @transform_1(%arg0: i32, %arg1: i32, %arg2: i32) -> (i32, i32, i32) {
    %c0_i32 = arith.constant 0 : i32
    %c0_i32_0 = arith.constant 0 : i32
    return %arg0, %arg1, %c0_i32 : i32, i32, i32
  }
  func.func @transform_2(%arg0: i32, %arg1: i32, %arg2: i32) -> (i32, i32) {
    %c0_i32 = arith.constant 0 : i32
    %c0_i32_0 = arith.constant 0 : i32
    %c0_i32_1 = arith.constant 0 : i32
    return %c0_i32, %c0_i32_0 : i32, i32
  }
  func.func @transform_3(%arg0: i32, %arg1: i32, %arg2: i32) -> (i32, i32) {
    %c0_i32 = arith.constant 0 : i32
    %c0_i32_0 = arith.constant 0 : i32
    %c0_i32_1 = arith.constant 0 : i32
    return %c0_i32, %c0_i32_0 : i32, i32
  }
  func.func @transform_4(%arg0: i32, %arg1: i32, %arg2: i32) -> (i32, i32) {
    %c0_i32 = arith.constant 0 : i32
    %c0_i32_0 = arith.constant 0 : i32
    %c0_i32_1 = arith.constant 0 : i32
    return %c0_i32, %c0_i32_0 : i32, i32
  }
  func.func @transform_5(%arg0: i32, %arg1: i32, %arg2: i32) -> (i32, i32) {
    %c0_i32 = arith.constant 0 : i32
    %c0_i32_0 = arith.constant 0 : i32
    %c0_i32_1 = arith.constant 0 : i32
    return %c0_i32, %c0_i32_0 : i32, i32
  }
  func.func @transform_6(%arg0: i32, %arg1: i32, %arg2: i32) -> (i32, i32) {
    %c0_i32 = arith.constant 0 : i32
    %c0_i32_0 = arith.constant 0 : i32
    return %c0_i32, %arg2 : i32, i32
  }
  func.func @transform_7(%arg0: i32, %arg1: i32, %arg2: i32) -> (i32, i32) {
    %c0_i32 = arith.constant 0 : i32
    %c0_i32_0 = arith.constant 0 : i32
    return %c0_i32, %arg2 : i32, i32
  }
  func.func @transform_8(%arg0: i32, %arg1: i32, %arg2: i32) -> (i32, i32) {
    %c0_i32 = arith.constant 0 : i32
    %c0_i32_0 = arith.constant 0 : i32
    return %arg2, %c0_i32 : i32, i32
  }
  func.func @transform_9(%arg0: i32, %arg1: i32, %arg2: i32) -> (i32, i32) {
    %c0_i32 = arith.constant 0 : i32
    %c0_i32_0 = arith.constant 0 : i32
    %c0_i32_1 = arith.constant 0 : i32
    return %c0_i32, %c0_i32_0 : i32, i32
  }
  func.func @transform_10(%arg0: i32, %arg1: i32, %arg2: i32) -> (i32, i32, i32) {
    %c0_i32 = arith.constant 0 : i32
    %c0_i32_0 = arith.constant 0 : i32
    return %arg0, %arg1, %c0_i32 : i32, i32, i32
  }
}

module attributes {stable_mosaic.version = 11 : i64} {
  func.func @qkv_proj_kernel(%arg0: i32, %arg1: i32, %arg2: memref<1x8x32xf32, #tpu.memory_space<vmem>>, %arg3: memref<1x32xf32, #tpu.memory_space<vmem>>, %arg4: memref<1x32xf32, #tpu.memory_space<vmem>>, %arg5: memref<32x96xbf16, #tpu.memory_space<vmem>>, %arg6: memref<1x8x32xbf16, #tpu.memory_space<vmem>>, %arg7: memref<1x8x32xbf16, #tpu.memory_space<vmem>>, %arg8: memref<1x8x32xbf16, #tpu.memory_space<vmem>>) attributes {dimension_semantics = [#tpu.dimension_semantics<parallel>, #tpu.dimension_semantics<parallel>], iteration_bounds = array<i64: 2, 1>, scalar_prefetch = 0 : i64, scratch_operands = 0 : i64, tpu.core_type = #tpu.core_type<tc>, window_params = [{transform_indices = @transform_0, window_bounds = array<i64: 1, 8, 32>}, {pipeline_mode = #tpu.pipeline_mode<synchronous>, transform_indices = @transform_1, window_bounds = array<i64: 1, 32>}, {pipeline_mode = #tpu.pipeline_mode<synchronous>, transform_indices = @transform_2, window_bounds = array<i64: 1, 32>}, {pipeline_mode = #tpu.pipeline_mode<synchronous>, transform_indices = @transform_3, window_bounds = array<i64: 32, 96>}, {transform_indices = @transform_4, window_bounds = array<i64: 1, 8, 32>}, {transform_indices = @transform_5, window_bounds = array<i64: 1, 8, 32>}, {transform_indices = @transform_6, window_bounds = array<i64: 1, 8, 32>}]} {
    %c0 = arith.constant 0 : index
    %c0_0 = arith.constant 0 : index
    %c0_1 = arith.constant 0 : index
    %0 = vector.load %arg2[%c0, %c0_0, %c0_1] : memref<1x8x32xf32, #tpu.memory_space<vmem>>, vector<1x8x32xf32>
    %1 = vector.shape_cast %0 : vector<1x8x32xf32> to vector<8x32xf32>
    %c0_2 = arith.constant 0 : index
    %c0_3 = arith.constant 0 : index
    %2 = vector.load %arg3[%c0_2, %c0_3] : memref<1x32xf32, #tpu.memory_space<vmem>>, vector<1x32xf32>
    %3 = vector.shape_cast %2 : vector<1x32xf32> to vector<32xf32>
    %c0_4 = arith.constant 0 : index
    %c0_5 = arith.constant 0 : index
    %4 = vector.load %arg4[%c0_4, %c0_5] : memref<1x32xf32, #tpu.memory_space<vmem>>, vector<1x32xf32>
    %5 = vector.shape_cast %4 : vector<1x32xf32> to vector<32xf32>
    %cst = arith.constant dense<0.000000e+00> : vector<8xf32>
    %6 = vector.multi_reduction <add>, %1, %cst [1] : vector<8x32xf32> to vector<8xf32>
    %7 = vector.shape_cast %6 : vector<8xf32> to vector<8x1xf32>
    %cst_6 = arith.constant 3.200000e+01 : f32
    %8 = vector.broadcast %cst_6 : f32 to vector<8x1xf32>
    %9 = arith.divf %7, %8 : vector<8x1xf32>
    %10 = vector.broadcast %9 : vector<8x1xf32> to vector<8x32xf32>
    %11 = arith.subf %1, %10 : vector<8x32xf32>
    %12 = arith.mulf %11, %11 : vector<8x32xf32>
    %cst_7 = arith.constant dense<0.000000e+00> : vector<8xf32>
    %13 = vector.multi_reduction <add>, %12, %cst_7 [1] : vector<8x32xf32> to vector<8xf32>
    %14 = vector.shape_cast %13 : vector<8xf32> to vector<8x1xf32>
    %cst_8 = arith.constant 3.200000e+01 : f32
    %15 = vector.broadcast %cst_8 : f32 to vector<8x1xf32>
    %16 = arith.divf %14, %15 : vector<8x1xf32>
    %17 = vector.broadcast %9 : vector<8x1xf32> to vector<8x32xf32>
    %18 = arith.subf %1, %17 : vector<8x32xf32>
    %cst_9 = arith.constant 9.99999974E-6 : f32
    %19 = vector.broadcast %cst_9 : f32 to vector<8x1xf32>
    %20 = arith.addf %16, %19 : vector<8x1xf32>
    %21 = math.sqrt %20 : vector<8x1xf32>
    %22 = vector.broadcast %21 : vector<8x1xf32> to vector<8x32xf32>
    %23 = arith.divf %18, %22 : vector<8x32xf32>
    %24 = vector.shape_cast %3 : vector<32xf32> to vector<1x32xf32>
    %25 = vector.broadcast %24 : vector<1x32xf32> to vector<8x32xf32>
    %26 = arith.mulf %25, %23 : vector<8x32xf32>
    %27 = vector.shape_cast %5 : vector<32xf32> to vector<1x32xf32>
    %28 = vector.broadcast %27 : vector<1x32xf32> to vector<8x32xf32>
    %29 = arith.addf %26, %28 : vector<8x32xf32>
    %30 = arith.truncf %29 : vector<8x32xf32> to vector<8x32xbf16>
    %c0_10 = arith.constant 0 : index
    %c0_11 = arith.constant 0 : index
    %31 = vector.load %arg5[%c0_10, %c0_11] : memref<32x96xbf16, #tpu.memory_space<vmem>>, vector<32x96xbf16>
    %cst_12 = arith.constant dense<0.000000e+00> : vector<8x96xf32>
    %32 = tpu.matmul %30, %31, %cst_12 {dimension_numbers = #tpu.dot_dimension_numbers<[1], [0], [0], [1], [0, 0, 1, 1], [], []>} : vector<8x32xbf16>, vector<32x96xbf16>, vector<8x96xf32> -> vector<8x96xf32>
    %33 = vector.extract_strided_slice %32 {offsets = [0, 0], sizes = [8, 32], strides = [1, 1]} : vector<8x96xf32> to vector<8x32xf32>
    %34 = arith.truncf %33 : vector<8x32xf32> to vector<8x32xbf16>
    %c0_13 = arith.constant 0 : index
    %c0_14 = arith.constant 0 : index
    %c0_15 = arith.constant 0 : index
    %35 = vector.load %arg6[%c0_13, %c0_14, %c0_15] : memref<1x8x32xbf16, #tpu.memory_space<vmem>>, vector<1x8x32xbf16>
    %36 = vector.shape_cast %35 : vector<1x8x32xbf16> to vector<8x32xbf16>
    %37 = vector.shape_cast %34 : vector<8x32xbf16> to vector<1x8x32xbf16>
    tpu.vector_store %arg6[%c0_13, %c0_14, %c0_15], %37 {strides = array<i32>} : memref<1x8x32xbf16, #tpu.memory_space<vmem>>, vector<1x8x32xbf16>,
    %38 = vector.extract_strided_slice %32 {offsets = [0, 32], sizes = [8, 32], strides = [1, 1]} : vector<8x96xf32> to vector<8x32xf32>
    %39 = arith.truncf %38 : vector<8x32xf32> to vector<8x32xbf16>
    %c0_16 = arith.constant 0 : index
    %c0_17 = arith.constant 0 : index
    %c0_18 = arith.constant 0 : index
    %40 = vector.load %arg7[%c0_16, %c0_17, %c0_18] : memref<1x8x32xbf16, #tpu.memory_space<vmem>>, vector<1x8x32xbf16>
    %41 = vector.shape_cast %40 : vector<1x8x32xbf16> to vector<8x32xbf16>
    %42 = vector.shape_cast %39 : vector<8x32xbf16> to vector<1x8x32xbf16>
    tpu.vector_store %arg7[%c0_16, %c0_17, %c0_18], %42 {strides = array<i32>} : memref<1x8x32xbf16, #tpu.memory_space<vmem>>, vector<1x8x32xbf16>,
    %43 = vector.extract_strided_slice %32 {offsets = [0, 64], sizes = [8, 32], strides = [1, 1]} : vector<8x96xf32> to vector<8x32xf32>
    %44 = arith.truncf %43 : vector<8x32xf32> to vector<8x32xbf16>
    %c0_19 = arith.constant 0 : index
    %c0_20 = arith.constant 0 : index
    %c0_21 = arith.constant 0 : index
    %45 = vector.load %arg8[%c0_19, %c0_20, %c0_21] : memref<1x8x32xbf16, #tpu.memory_space<vmem>>, vector<1x8x32xbf16>
    %46 = vector.shape_cast %45 : vector<1x8x32xbf16> to vector<8x32xbf16>
    %47 = vector.shape_cast %44 : vector<8x32xbf16> to vector<1x8x32xbf16>
    tpu.vector_store %arg8[%c0_19, %c0_20, %c0_21], %47 {strides = array<i32>} : memref<1x8x32xbf16, #tpu.memory_space<vmem>>, vector<1x8x32xbf16>,
    return
  }
  func.func @transform_0(%arg0: i32, %arg1: i32) -> (i32, i32, i32) {
    %c0_i32 = arith.constant 0 : i32
    %c0_i32_0 = arith.constant 0 : i32
    return %arg0, %arg1, %c0_i32 : i32, i32, i32
  }
  func.func @transform_1(%arg0: i32, %arg1: i32) -> (i32, i32) {
    %c0_i32 = arith.constant 0 : i32
    %c0_i32_0 = arith.constant 0 : i32
    %c0_i32_1 = arith.constant 0 : i32
    return %c0_i32, %c0_i32_0 : i32, i32
  }
  func.func @transform_2(%arg0: i32, %arg1: i32) -> (i32, i32) {
    %c0_i32 = arith.constant 0 : i32
    %c0_i32_0 = arith.constant 0 : i32
    %c0_i32_1 = arith.constant 0 : i32
    return %c0_i32, %c0_i32_0 : i32, i32
  }
  func.func @transform_3(%arg0: i32, %arg1: i32) -> (i32, i32) {
    %c0_i32 = arith.constant 0 : i32
    %c0_i32_0 = arith.constant 0 : i32
    %c0_i32_1 = arith.constant 0 : i32
    return %c0_i32, %c0_i32_0 : i32, i32
  }
  func.func @transform_4(%arg0: i32, %arg1: i32) -> (i32, i32, i32) {
    %c0_i32 = arith.constant 0 : i32
    %c0_i32_0 = arith.constant 0 : i32
    return %arg0, %arg1, %c0_i32 : i32, i32, i32
  }
  func.func @transform_5(%arg0: i32, %arg1: i32) -> (i32, i32, i32) {
    %c0_i32 = arith.constant 0 : i32
    %c0_i32_0 = arith.constant 0 : i32
    return %arg0, %arg1, %c0_i32 : i32, i32, i32
  }
  func.func @transform_6(%arg0: i32, %arg1: i32) -> (i32, i32, i32) {
    %c0_i32 = arith.constant 0 : i32
    %c0_i32_0 = arith.constant 0 : i32
    return %arg0, %arg1, %c0_i32 : i32, i32, i32
  }
}

module attributes {stable_mosaic.version = 11 : i64} {
  func.func @final_head_kernel(%arg0: i32, %arg1: i32, %arg2: i32, %arg3: memref<1x8x32xf32, #tpu.memory_space<vmem>>, %arg4: memref<1x32xf32, #tpu.memory_space<vmem>>, %arg5: memref<1x32xf32, #tpu.memory_space<vmem>>, %arg6: memref<32x128xbf16, #tpu.memory_space<vmem>>, %arg7: memref<1x8x128xf32, #tpu.memory_space<vmem>>) attributes {dimension_semantics = [#tpu.dimension_semantics<parallel>, #tpu.dimension_semantics<parallel>, #tpu.dimension_semantics<parallel>], iteration_bounds = array<i64: 1, 2, 1>, scalar_prefetch = 0 : i64, scratch_operands = 0 : i64, tpu.core_type = #tpu.core_type<tc>, window_params = [{transform_indices = @transform_0, window_bounds = array<i64: 1, 8, 32>}, {pipeline_mode = #tpu.pipeline_mode<synchronous>, transform_indices = @transform_1, window_bounds = array<i64: 1, 32>}, {pipeline_mode = #tpu.pipeline_mode<synchronous>, transform_indices = @transform_2, window_bounds = array<i64: 1, 32>}, {transform_indices = @transform_3, window_bounds = array<i64: 32, 128>}, {transform_indices = @transform_4, window_bounds = array<i64: 1, 8, 128>}]} {
    %c0 = arith.constant 0 : index
    %c0_0 = arith.constant 0 : index
    %c0_1 = arith.constant 0 : index
    %0 = vector.load %arg3[%c0, %c0_0, %c0_1] : memref<1x8x32xf32, #tpu.memory_space<vmem>>, vector<1x8x32xf32>
    %1 = vector.shape_cast %0 : vector<1x8x32xf32> to vector<8x32xf32>
    %c0_2 = arith.constant 0 : index
    %c0_3 = arith.constant 0 : index
    %2 = vector.load %arg4[%c0_2, %c0_3] : memref<1x32xf32, #tpu.memory_space<vmem>>, vector<1x32xf32>
    %3 = vector.shape_cast %2 : vector<1x32xf32> to vector<32xf32>
    %c0_4 = arith.constant 0 : index
    %c0_5 = arith.constant 0 : index
    %4 = vector.load %arg5[%c0_4, %c0_5] : memref<1x32xf32, #tpu.memory_space<vmem>>, vector<1x32xf32>
    %5 = vector.shape_cast %4 : vector<1x32xf32> to vector<32xf32>
    %cst = arith.constant dense<0.000000e+00> : vector<8xf32>
    %6 = vector.multi_reduction <add>, %1, %cst [1] : vector<8x32xf32> to vector<8xf32>
    %7 = vector.shape_cast %6 : vector<8xf32> to vector<8x1xf32>
    %cst_6 = arith.constant 3.200000e+01 : f32
    %8 = vector.broadcast %cst_6 : f32 to vector<8x1xf32>
    %9 = arith.divf %7, %8 : vector<8x1xf32>
    %10 = vector.broadcast %9 : vector<8x1xf32> to vector<8x32xf32>
    %11 = arith.subf %1, %10 : vector<8x32xf32>
    %12 = arith.mulf %11, %11 : vector<8x32xf32>
    %cst_7 = arith.constant dense<0.000000e+00> : vector<8xf32>
    %13 = vector.multi_reduction <add>, %12, %cst_7 [1] : vector<8x32xf32> to vector<8xf32>
    %14 = vector.shape_cast %13 : vector<8xf32> to vector<8x1xf32>
    %cst_8 = arith.constant 3.200000e+01 : f32
    %15 = vector.broadcast %cst_8 : f32 to vector<8x1xf32>
    %16 = arith.divf %14, %15 : vector<8x1xf32>
    %17 = vector.broadcast %9 : vector<8x1xf32> to vector<8x32xf32>
    %18 = arith.subf %1, %17 : vector<8x32xf32>
    %cst_9 = arith.constant 9.99999974E-6 : f32
    %19 = vector.broadcast %cst_9 : f32 to vector<8x1xf32>
    %20 = arith.addf %16, %19 : vector<8x1xf32>
    %21 = math.sqrt %20 : vector<8x1xf32>
    %22 = vector.broadcast %21 : vector<8x1xf32> to vector<8x32xf32>
    %23 = arith.divf %18, %22 : vector<8x32xf32>
    %24 = vector.shape_cast %3 : vector<32xf32> to vector<1x32xf32>
    %25 = vector.broadcast %24 : vector<1x32xf32> to vector<8x32xf32>
    %26 = arith.mulf %25, %23 : vector<8x32xf32>
    %27 = vector.shape_cast %5 : vector<32xf32> to vector<1x32xf32>
    %28 = vector.broadcast %27 : vector<1x32xf32> to vector<8x32xf32>
    %29 = arith.addf %26, %28 : vector<8x32xf32>
    %30 = arith.truncf %29 : vector<8x32xf32> to vector<8x32xbf16>
    %c0_10 = arith.constant 0 : index
    %c0_11 = arith.constant 0 : index
    %31 = vector.load %arg6[%c0_10, %c0_11] : memref<32x128xbf16, #tpu.memory_space<vmem>>, vector<32x128xbf16>
    %cst_12 = arith.constant dense<0.000000e+00> : vector<8x128xf32>
    %32 = tpu.matmul %30, %31, %cst_12 {dimension_numbers = #tpu.dot_dimension_numbers<[1], [0], [0], [1], [0, 0, 1, 1], [], []>} : vector<8x32xbf16>, vector<32x128xbf16>, vector<8x128xf32> -> vector<8x128xf32>
    %c0_13 = arith.constant 0 : index
    %c0_14 = arith.constant 0 : index
    %c0_15 = arith.constant 0 : index
    %33 = vector.load %arg7[%c0_13, %c0_14, %c0_15] : memref<1x8x128xf32, #tpu.memory_space<vmem>>, vector<1x8x128xf32>
    %34 = vector.shape_cast %33 : vector<1x8x128xf32> to vector<8x128xf32>
    %35 = vector.shape_cast %32 : vector<8x128xf32> to vector<1x8x128xf32>
    tpu.vector_store %arg7[%c0_13, %c0_14, %c0_15], %35 {strides = array<i32>} : memref<1x8x128xf32, #tpu.memory_space<vmem>>, vector<1x8x128xf32>,
    return
  }
  func.func @transform_0(%arg0: i32, %arg1: i32, %arg2: i32) -> (i32, i32, i32) {
    %c0_i32 = arith.constant 0 : i32
    %c0_i32_0 = arith.constant 0 : i32
    return %arg1, %arg2, %c0_i32 : i32, i32, i32
  }
  func.func @transform_1(%arg0: i32, %arg1: i32, %arg2: i32) -> (i32, i32) {
    %c0_i32 = arith.constant 0 : i32
    %c0_i32_0 = arith.constant 0 : i32
    %c0_i32_1 = arith.constant 0 : i32
    return %c0_i32, %c0_i32_0 : i32, i32
  }
  func.func @transform_2(%arg0: i32, %arg1: i32, %arg2: i32) -> (i32, i32) {
    %c0_i32 = arith.constant 0 : i32
    %c0_i32_0 = arith.constant 0 : i32
    %c0_i32_1 = arith.constant 0 : i32
    return %c0_i32, %c0_i32_0 : i32, i32
  }
  func.func @transform_3(%arg0: i32, %arg1: i32, %arg2: i32) -> (i32, i32) {
    %c0_i32 = arith.constant 0 : i32
    %c0_i32_0 = arith.constant 0 : i32
    return %c0_i32, %arg0 : i32, i32
  }
  func.func @transform_4(%arg0: i32, %arg1: i32, %arg2: i32) -> (i32, i32, i32) {
    %c0_i32 = arith.constant 0 : i32
    return %arg1, %arg2, %arg0 : i32, i32, i32
  }
}

</mosaic_0001>

<bundles_post_ra>
// kernel: _lambda_.8
= control target key start
LH: loop header
LB: loop body
LE: loop exit
PB: predicated region body
PF: predicated region fallthrough
CT: control target
= control target key end

     0   :  { %s1409_s22 = smov 0   ;;  %s1411_s23 = smov 0   ;;  %s1664_s0 = inlined_call_operand.<no memory space> [shape: s32[1], index: 0, kind: input, shape index: {}, may-alias: {0,1}]   ;;  %s1665_s1 = inlined_call_operand.<no memory space> [shape: s32[1], index: 1, kind: input, shape index: {}, may-alias: {0,1}]   ;;  %s1666_s2 = inlined_call_operand.vmem [shape: bf16[2,8,32], index: 2, kind: input, shape index: {}]   ;;  %s1667_s3 = inlined_call_operand.vmem [shape: bf16[2,8,32], index: 3, kind: input, shape index: {}]   ;;  %s1668_s4 = inlined_call_operand.vmem [shape: bf16[2,8,32], index: 4, kind: input, shape index: {}]   ;;  %s1669_s5 = inlined_call_operand.vmem [shape: bf16[2,8,32], index: 5, kind: output, shape index: {}]  }
   0x1   :  { %10 = sst [smem:[#allocation6]] %s1664_s0  ;;  %s1413_s24 = smov 0  }
   0x2   :  { %11 = sst [smem:[#allocation7]] %s1665_s1 }
   0x3 LB: > { %s36_s0 = sadd.s32 1, %s1354_s23  ;;  %p1227_p0 = scmp.ge.s32.totalorder %s1358_s24, 1  ;;  %s1358_s24 = sphi %s1413_s24, %s17_s24   ;;  %s1354_s23 = sphi %s1411_s23, %s1671_s23   ;;  %s1350_s22 = sphi %s1409_s22, %s1670_s22  }
   0x4   : > { %p38_p1 = scmp.ge.s32.totalorder %s36_s0, 2  ;;  %p225_p2 = scmp.lt.s32.totalorder %s1358_s24, 3 }
   0x6   : > { %s1673_s0 = smov (%p38_p1, %s36_s0), 0  ;;  %p226_p3 = pnand %p1227_p0, %p225_p2 }
   0x7   : > { %s1427_s1 = sld [smem:[#allocation6]] (!%p226_p3)  ;;  %p284_p4 = scmp.lt.s32.totalorder (!%p226_p3), %s1350_s22, 1 }
   0x8   : > { %229 = sbr.rel (%p226_p3) target bundleno = 2074 (0x81a), region = 32  ;;  %s1429_s25 = sld [smem:[#allocation7]] (!%p226_p3) }
   0xd   : > { %s1675_s22 = smov (!%p284_p4, %s1350_s22), 1  ;;  %p286_p5 = scmp.lt.s32.totalorder %s1427_s1, 0 }
   0xe   : > { %p298_p6 = scmp.lt.s32.totalorder %s1429_s25, 0  ;;  %p1232_p7 = scmp.ne.s32.totalorder %s1429_s25, 0 }
   0xf   : > { %s287_s26 = scalar_select %p286_p5, %s1427_s1, 0 }
  0x10   : > { %s299_s27 = scalar_select %p298_p6, %s1429_s25, 0 }
  0x11   : > { %s291_s28 = sadd.s32 %s287_s26, %s1675_s22  ;;  %337 = sbr.rel (%p1232_p7) target bundleno = 35 (0x23), region = 36 }
  0x12   : > { %s1435_s29 = sshll.u32 %s291_s28, 2  ;;  %s303_s30 = sadd.s32 %s299_s27, %s1675_s22 }
  0x13   : > { %s293_s8 = scalar_lea.vmem %s1666_s2, %s1435_s29  ;;  %s1229_s9 = sshll.u32 %s303_s30, 2 }
  0x14   : > { %s305_s12 = scalar_lea.vmem %s1667_s3, %s1229_s9  ;;  %s317_s15 = scalar_lea.vmem %s1668_s4, %s1229_s9 }
  0x15   : > { %s329_s18 = scalar_lea.vmem %s1669_s5, %s1435_s29 }
  0x16   : > { %vm338_vm0 = vcmask 7168   ;;  %v1360_v0 = vmov -inf   ;;  %v1361_v1 = vmov 0.0   ;;  %vm347_vm1 = vcmask 64512  }
  0x17   : > { %339 = vst.msk [vmem:[#allocation2] sm:$0xff] %vm338_vm0, %v1360_v0 }
  0x18   : > { %340 = vst.msk [vmem:[#allocation2 + $0x8] sm:$0xff] %vm338_vm0, %v1360_v0 }
  0x19   : > { %341 = vst.msk [vmem:[#allocation2 + $0x10] sm:$0xff] %vm338_vm0, %v1360_v0 }
  0x1a   : > { %342 = vst.msk [vmem:[#allocation2 + $0x18] sm:$0xff] %vm338_vm0, %v1360_v0 }
  0x1b   : > { %343 = vst.msk [vmem:[#allocation3] sm:$0xff] %vm338_vm0, %v1361_v1 }
  0x1c   : > { %344 = vst.msk [vmem:[#allocation3 + $0x8] sm:$0xff] %vm338_vm0, %v1361_v1 }
  0x1d   : > { %345 = vst.msk [vmem:[#allocation3 + $0x10] sm:$0xff] %vm338_vm0, %v1361_v1 }
  0x1e   : > { %346 = vst.msk [vmem:[#allocation3 + $0x18] sm:$0xff] %vm338_vm0, %v1361_v1 }
  0x1f   : > { %348 = vst.msk [vmem:[#allocation4] sm:$0xff] %vm347_vm1, %v1361_v1 }
  0x20   : > { %349 = vst.msk [vmem:[#allocation4 + $0x8] sm:$0xff] %vm347_vm1, %v1361_v1 }
  0x21   : > { %350 = vst.msk [vmem:[#allocation4 + $0x10] sm:$0xff] %vm347_vm1, %v1361_v1 }
  0x22   : > { %351 = vst.msk [vmem:[#allocation4 + $0x18] sm:$0xff] %vm347_vm1, %v1361_v1 }
  0x23 PF: > { %v1452_v2 = vld [vmem:[%s293_s8] sm:$0xf]  ;;  %p1233_p8 = scmp.ge.s32.totalorder %s1429_s25, %s1427_s1 }
  0x24   : > { %v1454_v3 = vld [vmem:[%s305_s12] sm:$0xf]  ;;  %s1363_s19 = smov (!%p1233_p8), 120   ;;  %s1364_s20 = smov (!%p1233_p8), 112  }
  0x25   : > { %v1456_v4 = vld [vmem:[%s317_s15] sm:$0xf]  ;;  %358 = sbr.rel (%p1233_p8) target bundleno = 953 (0x3b9), region = 40  ;;  %s1365_s21 = smov (!%p1233_p8), 104  }
  0x2a   : > { %vm359_vm2 = vcmask 64512   ;;  %v440_v9 = vunpack.c.l.b16 %v1454_v3  ;;  %v1362_v11 = vmov 0   ;;  %v435_v12 = vunpack.c.l.b16 %v1452_v2  ;;  %v1471_v14 = vld [vmem:[#allocation2] sm:$0xff]  ;;  %v1507_v47 = vld [vmem:[#allocation2 + $0x18] sm:$0xff]  ;;  %v464_v51 = vld [vmem:[#allocation2 + $0x8] sm:$0xff] }
  0x2b   : > { %v364_v5 = vsel %vm359_vm2, %v1454_v3, 0  ;;  %1290 = vset.pattern.permute.xlu1 %v1362_v11  ;;  %1291 = vset.pattern.permute.xlu2 %v1362_v11  ;;  %vm401_vm3 = vcmask 7168   ;;  %vm414_vm4 = vcmask 1043456   ;;  %v498_v43 = vunpack.c.l.b16 %v1456_v4  ;;  %v548_v54 = vld [vmem:[#allocation2 + $0x10] sm:$0xff] }
  0x2c   : > { %373 = vmatpush.bf16.xpose.msra.mxu0 %v364_v5  ;;  %v441_v10 = vpack.c.b16 %v440_v9, %v440_v9  ;;  %1292 = vset.pattern.permute.xlu0 %v1362_v11  ;;  %v436_v13 = vpack.c.b16 %v435_v12, %v435_v12  ;;  %v416_v21 = vsel %vm414_vm4, %v1456_v4, 0 }
  0x2d   : > { %425 = vmatpush.bf16.msra.mxu1 %v416_v21  ;;  %v499_v45 = vpack.c.b16 %v498_v43, %v498_v43  ;;  %v646_v43 = vld [vmem:[#allocation3 + $0x18] sm:$0xff] }
  0x2e   : > { %526 = vrot.lane.b32.xlu2 %v441_v10, %s1364_s20 }
  0x33   : > { %1234 = vmatmul.msk.bf16.vlgmr.msra.gmra.mxu0 %vm359_vm2, %v1452_v2 }
  0x36   : > { %607 = vrot.lane.b32.xlu2 %v441_v10, %s1365_s21 }
  0x3e   : > { %605 = vrot.lane.b32.xlu2 %v436_v13, %s1365_s21 }
  0x88   : > { %v527_v20 = vpop.permute.xlu2 %526 }
  0x89   : > { %v532_v23 = vsel %vm359_vm2, %v527_v20, 0 }
  0x8a   : > { %541 = vmatpush.bf16.xpose.msrb.mxu1 %v532_v23 }
  0x90   : > { %v608_v22 = vpop.permute.xlu2 %607 }
  0x91   : > { %v613_v24 = vsel %vm359_vm2, %v608_v22, 0 }
  0x92   : > { %622 = vmatpush.bf16.xpose.msrb.mxu0 %v613_v24 }
  0x98   : > { %v606_v25 = vpop.permute.xlu2 %605 }
  0x99   : > { %1240 = vmatmul.msk.bf16.vlgmr.msrb.gmra.mxu0 %vm359_vm2, %v606_v25 }
  0xb0   : > { %v375_v6 = vpop.f32.mrf.mxu0 }
  0xb1   : > { %v380_v7 = vsel %vm359_vm2, %v375_v6, -inf }
  0xb2   : > { %381 = vmax.xlane.f32.xlu0 %v380_v7 }
  0xb8   : > { %v377_v8 = vpop.f32.mrf.mxu0 }
  0xc6   : > { %442 = vrot.lane.b32.xlu0 %v441_v10, %s1363_s19 }
 0x116   : > { %v1492_v33 = vpop.f32.mrf.mxu0 }
 0x117   : > { %v630_v34 = vsel %vm359_vm2, %v1492_v33, -inf }
 0x118   : > { %631 = vmax.xlane.f32.xlu0 %v630_v34 }
 0x11e   : > { %v626_v35 = vpop.f32.mrf.mxu0 }
 0x125   : > { %v382_v15 = vpop.xlane.xlu0 %381 }
 0x126   : > { %v1474_v16 = vmax.f32 %v1471_v14, %v382_v15 }
 0x128   : > { %v384_v17 = vsub.f32 %v1471_v14, %v1474_v16  ;;  %433 = vst.msk [vmem:[#allocation2] sm:$0xff] %vm401_vm3, %v1474_v16  ;;  %389 = vperm.xlu1 %1290, %v1474_v16  }
 0x12a   : > { %v385_v56 = vmul.f32 1.442695, %v384_v17 }
 0x130   : > { %437 = vrot.lane.b32.xlu1 %v436_v13, %s1363_s19 }
 0x138   : > { %524 = vrot.lane.b32.xlu1 %v436_v13, %s1364_s20  ;;  %v443_v18 = vpop.permute.xlu0 %442 }
 0x139   : > { %v448_v19 = vsel %vm359_vm2, %v443_v18, 0 }
 0x13a   : > { %457 = vmatpush.bf16.xpose.msra.mxu2 %v448_v19 }
 0x18b   : > { %v632_v48 = vpop.xlane.xlu0 %631 }
 0x18c   : > { %v1510_v49 = vmax.f32 %v1507_v47, %v632_v48 }
 0x18e   : > { %v634_v50 = vsub.f32 %v1507_v47, %v1510_v49  ;;  %685 = vst.msk [vmem:[#allocation2 + $0x18] sm:$0xff] %vm401_vm3, %v1510_v49 }
 0x19a   : > { %v390_v26 = vpop.permute.xlu1 %389 }
 0x19b   : > { %v392_v27 = vsub.f32 %v375_v6, %v390_v26  ;;  %v395_v6 = vld [vmem:[#allocation3] sm:$0xff] }
 0x19c   : > { %v403_v26 = vld [vmem:[#allocation4] sm:$0xff] }
 0x19d   : > { %v393_v28 = vmul.f32 1.442695, %v392_v27 }
 0x19f   : > { %1293 = vpow2.f32 %v393_v28 }
 0x1a0   : > { %1295 = vpow2.f32 %v385_v56 }
 0x1a2   : > { %v438_v29 = vpop.permute.xlu1 %437 }
 0x1a3   : > { %1236 = vmatmul.msk.bf16.vlgmr.msra.gmra.mxu2 %vm359_vm2, %v438_v29 }
 0x1a5   : > { %v1294_v30 = vpop.eup %1293 }
 0x1a6   : > { %v410_v31 = vpack.c.bf16 %v1294_v30, %v1294_v30  ;;  %v397_v46 = vsel %vm359_vm2, %v1294_v30, 0.0  ;;  %v1296_v62 = vpop.eup %1295  ;;  %v635_v30 = vmul.f32 1.442695, %v634_v50 }
 0x1a7   : > { %v396_v8 = vmul.f32 %v1296_v62, %v395_v6 }
 0x1a8   : > { %1235 = vmatmul.msk.bf16.vlgmr.msra.gmra.mxu1 %vm359_vm2, %v410_v31 }
 0x1aa   : > { %v525_v32 = vpop.permute.xlu1 %524 }
 0x1b8   : > { %1238 = vmatmul.msk.bf16.vlgmr.msrb.gmra.mxu1 %vm359_vm2, %v525_v32 }
 0x225   : > { %v1496_v36 = vpop.f32.mrf.mxu1 }
 0x226   : > { %v459_v37 = vpop.f32.mrf.mxu2 }
 0x227   : > { %v465_v38 = vsel %vm359_vm2, %v459_v37, -inf }
 0x228   : > { %466 = vmax.xlane.f32.xlu1 %v465_v38 }
 0x22d   : > { %v429_v39 = vpop.f32.mrf.mxu1 }
 0x22e   : > { %v461_v40 = vpop.f32.mrf.mxu2 }
 0x235   : > { %v1499_v41 = vpop.f32.mrf.mxu1 }
 0x236   : > { %v549_v42 = vsel %vm359_vm2, %v1499_v41, -inf }
 0x237   : > { %550 = vmax.xlane.f32.xlu2 %v549_v42 }
 0x23d   : > { %v545_v44 = vpop.f32.mrf.mxu1 }
 0x241   : > { %500 = vrot.lane.b32.xlu1 %v499_v45, %s1363_s19 }
 0x249   : > { %581 = vrot.lane.b32.xlu1 %v499_v45, %s1364_s20 }
 0x273   : > { %398 = vadd.xlane.f32.xlu1 %v397_v46  ;;  %v489_v46 = vld [vmem:[#allocation4 + $0x8] sm:$0xff] }
 0x29b   : > { %v467_v52 = vpop.xlane.xlu1 %466 }
 0x29c   : > { %v468_v53 = vmax.f32 %v464_v51, %v467_v52 }
 0x29e   : > { %523 = vst.msk [vmem:[#allocation2 + $0x8] sm:$0xff] %vm401_vm3, %v468_v53  ;;  %474 = vperm.xlu2 %1291, %v468_v53   ;;  %v469_v59 = vsub.f32 %v464_v51, %v468_v53  ;;  %v654_v53 = vld [vmem:[#allocation4 + $0x18] sm:$0xff] }
 0x2a0   : > { %v470_v61 = vmul.f32 1.442695, %v469_v59 }
 0x2a6   : > { %639 = vperm.xlu2 %1291, %v1510_v49  }
 0x2aa   : > { %v551_v55 = vpop.xlane.xlu2 %550 }
 0x2ab   : > { %v552_v57 = vmax.f32 %v548_v54, %v551_v55 }
 0x2ad   : > { %v553_v58 = vsub.f32 %v548_v54, %v552_v57  ;;  %604 = vst.msk [vmem:[#allocation2 + $0x10] sm:$0xff] %vm401_vm3, %v552_v57  ;;  %558 = vperm.xlu0 %1292, %v552_v57  }
 0x2ae   : > { %662 = vrot.lane.b32.xlu2 %v499_v45, %s1365_s21 }
 0x2af   : > { %v554_v60 = vmul.f32 1.442695, %v553_v58  ;;  %v565_v58 = vld [vmem:[#allocation3 + $0x10] sm:$0xff] }
 0x2b1   : > { %1297 = vpow2.f32 %v554_v60 }
 0x2b2   : > { %1299 = vpow2.f32 %v470_v61 }
 0x2b3   : > { %v501_v1 = vpop.permute.xlu1 %500 }
 0x2b4   : > { %v506_v7 = vsel %vm414_vm4, %v501_v1, 0 }
 0x2b5   : > { %515 = vmatpush.bf16.msra.mxu3 %v506_v7 }
 0x2b6   : > { %406 = vperm.xlu2 %1291, %v1296_v62   ;;  %v573_v62 = vld [vmem:[#allocation4 + $0x10] sm:$0xff] }
 0x2b7   : > { %v1520_v63 = vpop.eup %1297 }
 0x2b8   : > { %576 = vperm.xlu1 %1290, %v1520_v63   ;;  %v1300_v0 = vpop.eup %1299  ;;  %v566_v59 = vmul.f32 %v1520_v63, %v565_v58 }
 0x2bb   : > { %v582_v5 = vpop.permute.xlu1 %581 }
 0x2bc   : > { %v587_v13 = vsel %vm414_vm4, %v582_v5, 0 }
 0x2bd   : > { %596 = vmatpush.bf16.msrb.mxu3 %v587_v13 }
 0x2be   : > { %492 = vperm.xlu2 %1291, %v1300_v0  }
 0x2e6   : > { %v399_v9 = vpop.xlane.xlu1 %398 }
 0x2e7   : > { %v400_v10 = vadd.f32 %v399_v9, %v396_v8 }
 0x2e9   : > { %402 = vst.msk [vmem:[#allocation3] sm:$0xff] %vm401_vm3, %v400_v10 }
 0x2f8   : > { %v475_v11 = vpop.permute.xlu2 %474 }
 0x2f9   : > { %v477_v12 = vsub.f32 %v459_v37, %v475_v11 }
 0x2fb   : > { %v478_v14 = vmul.f32 1.442695, %v477_v12 }
 0x2fd   : > { %1301 = vpow2.f32 %v478_v14 }
 0x300   : > { %v640_v15 = vpop.permute.xlu2 %639 }
 0x301   : > { %v642_v16 = vsub.f32 %v1492_v33, %v640_v15 }
 0x303   : > { %v1302_v17 = vpop.eup %1301  ;;  %v643_v18 = vmul.f32 1.442695, %v642_v16 }
 0x304   : > { %v483_v19 = vsel %vm359_vm2, %v1302_v17, 0.0  ;;  %v496_v20 = vpack.c.bf16 %v1302_v17, %v1302_v17 }
 0x305   : > { %1303 = vpow2.f32 %v643_v18  ;;  %484 = vadd.xlane.f32.xlu0 %v483_v19 }
 0x306   : > { %1237 = vmatmul.msk.bf16.vlgmr.msra.gmra.mxu3 %vm359_vm2, %v496_v20  ;;  %1305 = vpow2.f32 %v635_v30 }
 0x308   : > { %v663_v21 = vpop.permute.xlu2 %662 }
 0x309   : > { %v668_v22 = vsel %vm414_vm4, %v663_v21, 0 }
 0x30a   : > { %677 = vmatpush.bf16.msrb.mxu2 %v668_v22 }
 0x30b   : > { %v1304_v23 = vpop.eup %1303 }
 0x30c   : > { %v648_v24 = vsel %vm359_vm2, %v1304_v23, 0.0  ;;  %v661_v25 = vpack.c.bf16 %v1304_v23, %v1304_v23  ;;  %v1306_v32 = vpop.eup %1305 }
 0x30d   : > { %649 = vadd.xlane.f32.xlu0 %v648_v24  ;;  %v647_v44 = vmul.f32 %v1306_v32, %v646_v43 }
 0x30e   : > { %1241 = vmatmul.msk.bf16.vlgmr.msrb.gmra.mxu2 %vm359_vm2, %v661_v25 }
 0x310   : > { %v407_v27 = vpop.permute.xlu2 %406 }
 0x311   : > { %v409_v28 = vmul.f32 %v407_v27, %v403_v26 }
 0x313   : > { %v431_v29 = vadd.f32 %v1496_v36, %v409_v28  ;;  %v481_v36 = vld [vmem:[#allocation3 + $0x8] sm:$0xff] }
 0x314   : > { %v482_v39 = vmul.f32 %v1300_v0, %v481_v36 }
 0x315   : > { %432 = vst.msk [vmem:[#allocation4] sm:$0xff] %vm359_vm2, %v431_v29 }
 0x318   : > { %v493_v47 = vpop.permute.xlu2 %492 }
 0x319   : > { %v495_v48 = vmul.f32 %v493_v47, %v489_v46 }
 0x31f   : > { %v559_v31 = vpop.permute.xlu0 %558 }
 0x320   : > { %v561_v33 = vsub.f32 %v1499_v41, %v559_v31 }
 0x321   : > { %657 = vperm.xlu0 %1292, %v1306_v32  }
 0x322   : > { %v562_v34 = vmul.f32 1.442695, %v561_v33 }
 0x324   : > { %1307 = vpow2.f32 %v562_v34 }
 0x32a   : > { %v1308_v35 = vpop.eup %1307  ;;  %v577_v0 = vpop.permute.xlu1 %576 }
 0x32b   : > { %v567_v37 = vsel %vm359_vm2, %v1308_v35, 0.0  ;;  %v580_v38 = vpack.c.bf16 %v1308_v35, %v1308_v35  ;;  %v579_v1 = vmul.f32 %v577_v0, %v573_v62 }
 0x32c   : > { %568 = vadd.xlane.f32.xlu2 %v567_v37 }
 0x32d   : > { %1239 = vmatmul.msk.bf16.vlgmr.msrb.gmra.mxu3 %vm359_vm2, %v580_v38 }
 0x378   : > { %v485_v40 = vpop.xlane.xlu0 %484 }
 0x379   : > { %v486_v42 = vadd.f32 %v485_v40, %v482_v39 }
 0x37b   : > { %487 = vst.msk [vmem:[#allocation3 + $0x8] sm:$0xff] %vm401_vm3, %v486_v42 }
 0x380   : > { %v650_v45 = vpop.xlane.xlu0 %649 }
 0x381   : > { %v651_v41 = vadd.f32 %v650_v45, %v647_v44 }
 0x383   : > { %652 = vst.msk [vmem:[#allocation3 + $0x18] sm:$0xff] %vm401_vm3, %v651_v41 }
 0x389   : > { %v517_v49 = vpop.f32.mrf.mxu3 }
 0x38a   : > { %v521_v50 = vadd.f32 %v517_v49, %v495_v48 }
 0x38c   : > { %522 = vst.msk [vmem:[#allocation4 + $0x8] sm:$0xff] %vm359_vm2, %v521_v50 }
 0x391   : > { %v519_v51 = vpop.f32.mrf.mxu3  ;;  %v679_v52 = vpop.f32.mrf.mxu2 }
 0x393   : > { %v658_v54 = vpop.permute.xlu0 %657 }
 0x394   : > { %v660_v55 = vmul.f32 %v658_v54, %v654_v53 }
 0x396   : > { %v683_v56 = vadd.f32 %v679_v52, %v660_v55 }
 0x398   : > { %684 = vst.msk [vmem:[#allocation4 + $0x18] sm:$0xff] %vm359_vm2, %v683_v56 }
 0x399   : > { %v681_v57 = vpop.f32.mrf.mxu2 }
 0x39f   : > { %v569_v60 = vpop.xlane.xlu2 %568 }
 0x3a0   : > { %v570_v61 = vadd.f32 %v569_v60, %v566_v59 }
 0x3a2   : > { %571 = vst.msk [vmem:[#allocation3 + $0x10] sm:$0xff] %vm401_vm3, %v570_v61 }
 0x3b0   : > { %v598_v5 = vpop.f32.mrf.mxu3 }
 0x3b1   : > { %v602_v6 = vadd.f32 %v598_v5, %v579_v1 }
 0x3b3   : > { %603 = vst.msk [vmem:[#allocation4 + $0x10] sm:$0xff] %vm359_vm2, %v602_v6 }
 0x3b8   : > { %v600_v7 = vpop.f32.mrf.mxu3 }
 0x3b9 PF: > { %p1242_p9 = scmp.ne.s32.totalorder %s1429_s25, %s1427_s1 }
 0x3ba   : > { %s1367_s22 = smov (!%p1242_p9), 120   ;;  %s1368_s1 = smov (!%p1242_p9), 112  }
 0x3bb   : > { %689 = sbr.rel (%p1242_p9) target bundleno = 2074 (0x81a), region = 44  ;;  %s1369_s25 = smov (!%p1242_p9), 104  }
 0x3bc   : > { %s1370_s26 = smov (!%p1242_p9), 8   ;;  %s1371_s27 = smov (!%p1242_p9), 24  }
 0x3bd   : > { %s1372_s28 = smov (!%p1242_p9), 16  }
 0x3c0   : > { %vm690_vm5 = vcmask 64512   ;;  %v710_v8 = vlaneseq  ;;  %v777_v15 = vunpack.c.l.b16 %v1454_v3  ;;  %v1366_v17 = vmov 0   ;;  %v1611_v54 = vld [vmem:[#allocation2 + $0x18] sm:$0xff]  ;;  %v887_v61 = vld [vmem:[#allocation2 + $0x10] sm:$0xff] }
 0x3c1   : > { %v695_v63 = vsel %vm690_vm5, %v1454_v3, 0  ;;  %1309 = vset.pattern.permute.xlu1 %v1366_v17  ;;  %1310 = vset.pattern.permute.xlu2 %v1366_v17  ;;  %v772_v18 = vunpack.c.l.b16 %v1452_v2  ;;  %v1569_v3 = vld [vmem:[#allocation2] sm:$0xff]  ;;  %vm738_vm7 = vcmask 7168   ;;  %vm751_vm8 = vcmask 1043456  }
 0x3c2   : > { %704 = vmatpush.bf16.xpose.msra.mxu0 %v695_v63  ;;  %v1553_v9 = vshrl.u32 %v710_v8, 7  ;;  %v1555_v10 = vand.u32 127, %v710_v8  ;;  %v778_v16 = vpack.c.b16 %v777_v15, %v777_v15  ;;  %1311 = vset.pattern.permute.xlu0 %v1366_v17  ;;  %v836_v50 = vunpack.c.l.b16 %v1456_v4  ;;  %v732_v8 = vld [vmem:[#allocation3] sm:$0xff] }
 0x3c3   : > { %v773_v19 = vpack.c.b16 %v772_v18, %v772_v18  ;;  %vm1084_vm9 = vcmask 130048   ;;  %vm1087_vm10 = vcmask 195584   ;;  %vm1091_vm11 = vcmask 257024  }
 0x3c4   : > { %vm714_vm6 = vcmp.le.s32.totalorder %v1555_v10, %v1553_v9  ;;  %864 = vrot.lane.b32.xlu2 %v778_v16, %s1368_s1  ;;  %v837_v52 = vpack.c.b16 %v836_v50, %v836_v50 }
 0x3c9   : > { %1243 = vmatmul.msk.bf16.vlgmr.msra.gmra.mxu0 %vm690_vm5, %v1452_v2  ;;  %v753_v2 = vsel %vm751_vm8, %v1456_v4, 0  ;;  %v802_v4 = vld [vmem:[#allocation2 + $0x8] sm:$0xff] }
 0x3ca   : > { %762 = vmatpush.bf16.msra.mxu1 %v753_v2 }
 0x3cc   : > { %946 = vrot.lane.b32.xlu2 %v778_v16, %s1369_s25 }
 0x3d4   : > { %944 = vrot.lane.b32.xlu2 %v773_v19, %s1369_s25 }
 0x41e   : > { %v865_v23 = vpop.permute.xlu2 %864 }
 0x41f   : > { %v870_v24 = vsel %vm690_vm5, %v865_v23, 0 }
 0x420   : > { %879 = vmatpush.bf16.xpose.msrb.mxu1 %v870_v24 }
 0x426   : > { %v947_v27 = vpop.permute.xlu2 %946 }
 0x427   : > { %v952_v28 = vsel %vm690_vm5, %v947_v27, 0 }
 0x428   : > { %961 = vmatpush.bf16.xpose.msrb.mxu0 %v952_v28 }
 0x42e   : > { %v945_v29 = vpop.permute.xlu2 %944 }
 0x42f   : > { %1249 = vmatmul.msk.bf16.vlgmr.msrb.gmra.mxu0 %vm690_vm5, %v945_v29 }
 0x446   : > { %v706_v11 = vpop.f32.mrf.mxu0 }
 0x447   : > { %v715_v12 = vsel %vm714_vm6, %v706_v11, -1e+30 }
 0x448   : > { %v717_v13 = vsel %vm690_vm5, %v715_v12, -inf }
 0x449   : > { %718 = vmax.xlane.f32.xlu0 %v717_v13 }
 0x44e   : > { %v708_v14 = vpop.f32.mrf.mxu0 }
 0x45d   : > { %779 = vrot.lane.b32.xlu0 %v778_v16, %s1367_s22 }
 0x4ac   : > { %v963_v38 = vpop.f32.mrf.mxu0 }
 0x4ad   : > { %v967_v36 = vsel %vm714_vm6, %v963_v38, -1e+30 }
 0x4ae   : > { %v970_v40 = vsel %vm690_vm5, %v967_v36, -inf }
 0x4af   : > { %971 = vmax.xlane.f32.xlu0 %v970_v40  ;;  %v819_v40 = vld [vmem:[#allocation3 + $0x8] sm:$0xff] }
 0x4b4   : > { %v965_v39 = vpop.f32.mrf.mxu0 }
 0x4bc   : > { %v719_v20 = vpop.xlane.xlu0 %718 }
 0x4bd   : > { %v1572_v21 = vmax.f32 %v1569_v3, %v719_v20 }
 0x4bf   : > { %v721_v22 = vsub.f32 %v1569_v3, %v1572_v21  ;;  %770 = vst.msk [vmem:[#allocation2] sm:$0xff] %vm738_vm7, %v1572_v21  ;;  %726 = vperm.xlu1 %1309, %v1572_v21  }
 0x4c1   : > { %v722_v6 = vmul.f32 1.442695, %v721_v22 }
 0x4c7   : > { %774 = vrot.lane.b32.xlu1 %v773_v19, %s1367_s22 }
 0x4cf   : > { %862 = vrot.lane.b32.xlu1 %v773_v19, %s1368_s1  ;;  %v780_v25 = vpop.permute.xlu0 %779 }
 0x4d0   : > { %v785_v26 = vsel %vm690_vm5, %v780_v25, 0 }
 0x4d1   : > { %794 = vmatpush.bf16.xpose.msra.mxu2 %v785_v26 }
 0x522   : > { %v972_v55 = vpop.xlane.xlu0 %971 }
 0x523   : > { %v1614_v56 = vmax.f32 %v1611_v54, %v972_v55 }
 0x525   : > { %v974_v57 = vsub.f32 %v1611_v54, %v1614_v56  ;;  %1025 = vst.msk [vmem:[#allocation2 + $0x18] sm:$0xff] %vm738_vm7, %v1614_v56 }
 0x531   : > { %v727_v30 = vpop.permute.xlu1 %726 }
 0x532   : > { %v729_v31 = vsub.f32 %v715_v12, %v727_v30 }
 0x534   : > { %v730_v32 = vmul.f32 1.442695, %v729_v31 }
 0x536   : > { %1312 = vpow2.f32 %v730_v32 }
 0x537   : > { %1314 = vpow2.f32 %v722_v6 }
 0x539   : > { %v775_v33 = vpop.permute.xlu1 %774 }
 0x53a   : > { %1245 = vmatmul.msk.bf16.vlgmr.msra.gmra.mxu2 %vm690_vm5, %v775_v33 }
 0x53c   : > { %v1313_v34 = vpop.eup %1312 }
 0x53d   : > { %v747_v35 = vpack.c.bf16 %v1313_v34, %v1313_v34  ;;  %v734_v53 = vsel %vm690_vm5, %v1313_v34, 0.0  ;;  %v1315_v63 = vpop.eup %1314 }
 0x53e   : > { %v733_v10 = vmul.f32 %v1315_v63, %v732_v8  ;;  %v912_v8 = vld [vmem:[#allocation4 + $0x10] sm:$0xff] }
 0x53f   : > { %1244 = vmatmul.msk.bf16.vlgmr.msra.gmra.mxu1 %vm690_vm5, %v747_v35 }
 0x541   : > { %v863_v37 = vpop.permute.xlu1 %862 }
 0x54f   : > { %1247 = vmatmul.msk.bf16.vlgmr.msrb.gmra.mxu1 %vm690_vm5, %v863_v37 }
 0x5bc   : > { %v1594_v42 = vpop.f32.mrf.mxu1 }
 0x5bd   : > { %v796_v43 = vpop.f32.mrf.mxu2 }
 0x5be   : > { %v800_v44 = vsel %vm714_vm6, %v796_v43, -1e+30 }
 0x5bf   : > { %v803_v45 = vsel %vm690_vm5, %v800_v44, -inf }
 0x5c0   : > { %804 = vmax.xlane.f32.xlu1 %v803_v45 }
 0x5c4   : > { %v766_v41 = vpop.f32.mrf.mxu1 }
 0x5c5   : > { %v798_v46 = vpop.f32.mrf.mxu2  ;;  %v986_v41 = vld [vmem:[#allocation3 + $0x18] sm:$0xff] }
 0x5cc   : > { %v881_v47 = vpop.f32.mrf.mxu1 }
 0x5cd   : > { %v1603_v48 = vsel %vm714_vm6, %v881_v47, -1e+30 }
 0x5ce   : > { %v888_v49 = vsel %vm690_vm5, %v1603_v48, -inf }
 0x5cf   : > { %889 = vmax.xlane.f32.xlu2 %v888_v49 }
 0x5d4   : > { %v883_v51 = vpop.f32.mrf.mxu1 }
 0x5d9   : > { %838 = vrot.lane.b32.xlu1 %v837_v52, %s1367_s22 }
 0x5e1   : > { %920 = vrot.lane.b32.xlu1 %v837_v52, %s1368_s1 }
 0x60b   : > { %735 = vadd.xlane.f32.xlu1 %v734_v53 }
 0x633   : > { %v805_v58 = vpop.xlane.xlu1 %804 }
 0x634   : > { %v806_v59 = vmax.f32 %v802_v4, %v805_v58 }
 0x636   : > { %v807_v60 = vsub.f32 %v802_v4, %v806_v59  ;;  %861 = vst.msk [vmem:[#allocation2 + $0x8] sm:$0xff] %vm738_vm7, %v806_v59  ;;  %812 = vperm.xlu2 %1310, %v806_v59  }
 0x638   : > { %v808_v29 = vmul.f32 1.442695, %v807_v60  ;;  %v904_v60 = vld [vmem:[#allocation3 + $0x10] sm:$0xff] }
 0x63e   : > { %979 = vperm.xlu2 %1310, %v1614_v56   ;;  %v827_v56 = vld [vmem:[#allocation4 + $0x8] sm:$0xff] }
 0x642   : > { %v890_v62 = vpop.xlane.xlu2 %889 }
 0x643   : > { %v891_v0 = vmax.f32 %v887_v61, %v890_v62 }
 0x645   : > { %v892_v1 = vsub.f32 %v887_v61, %v891_v0  ;;  %943 = vst.msk [vmem:[#allocation2 + $0x10] sm:$0xff] %vm738_vm7, %v891_v0  ;;  %897 = vperm.xlu0 %1311, %v891_v0  }
 0x646   : > { %1002 = vrot.lane.b32.xlu2 %v837_v52, %s1369_s25 }
 0x647   : > { %v893_v26 = vmul.f32 1.442695, %v892_v1  ;;  %v740_v1 = vld [vmem:[#allocation4] sm:$0xff] }
 0x64b   : > { %v839_v5 = vpop.permute.xlu1 %838 }
 0x64c   : > { %v844_v9 = vsel %vm751_vm8, %v839_v5, 0 }
 0x64d   : > { %853 = vmatpush.bf16.msra.mxu3 %v844_v9 }
 0x653   : > { %v921_v7 = vpop.permute.xlu1 %920 }
 0x654   : > { %v926_v21 = vsel %vm751_vm8, %v921_v7, 0 }
 0x655   : > { %935 = vmatpush.bf16.msrb.mxu3 %v926_v21 }
 0x67e   : > { %v736_v11 = vpop.xlane.xlu1 %735 }
 0x67f   : > { %v737_v12 = vadd.f32 %v736_v11, %v733_v10  ;;  %v994_v10 = vld [vmem:[#allocation4 + $0x18] sm:$0xff] }
 0x681   : > { %739 = vst.msk [vmem:[#allocation3] sm:$0xff] %vm738_vm7, %v737_v12 }
 0x688   : > { %v1026_v27 = vld [vmem:[#allocation3] sm:$0xff] }
 0x690   : > { %v813_v13 = vpop.permute.xlu2 %812 }
 0x691   : > { %v815_v14 = vsub.f32 %v800_v44, %v813_v13 }
 0x693   : > { %v816_v15 = vmul.f32 1.442695, %v815_v14 }
 0x695   : > { %1316 = vpow2.f32 %v816_v15 }
 0x698   : > { %v980_v16 = vpop.permute.xlu2 %979 }
 0x699   : > { %v982_v17 = vsub.f32 %v967_v36, %v980_v16  ;;  %v975_v36 = vmul.f32 1.442695, %v974_v57 }
 0x69b   : > { %v1317_v18 = vpop.eup %1316  ;;  %v983_v19 = vmul.f32 1.442695, %v982_v17 }
 0x69c   : > { %v821_v3 = vsel %vm690_vm5, %v1317_v18, 0.0  ;;  %v834_v20 = vpack.c.bf16 %v1317_v18, %v1317_v18 }
 0x69d   : > { %1318 = vpow2.f32 %v983_v19  ;;  %822 = vadd.xlane.f32.xlu0 %v821_v3 }
 0x69e   : > { %1246 = vmatmul.msk.bf16.vlgmr.msra.gmra.mxu3 %vm690_vm5, %v834_v20  ;;  %1320 = vpow2.f32 %v893_v26 }
 0x69f   : > { %1322 = vrcp.f32 %v1026_v27 }
 0x6a0   : > { %v1003_v22 = vpop.permute.xlu2 %1002  ;;  %1324 = vpow2.f32 %v808_v29 }
 0x6a1   : > { %v1008_v2 = vsel %vm751_vm8, %v1003_v22, 0 }
 0x6a2   : > { %1017 = vmatpush.bf16.msrb.mxu2 %v1008_v2 }
 0x6a3   : > { %v1319_v23 = vpop.eup %1318 }
 0x6a4   : > { %v988_v24 = vsel %vm690_vm5, %v1319_v23, 0.0  ;;  %v1001_v25 = vpack.c.bf16 %v1319_v23, %v1319_v23  ;;  %v1321_v28 = vpop.eup %1320 }
 0x6a5   : > { %989 = vadd.xlane.f32.xlu1 %v988_v24  ;;  %v1323_v31 = vpop.eup %1322  ;;  %v905_v61 = vmul.f32 %v1321_v28, %v904_v60 }
 0x6a6   : > { %1250 = vmatmul.msk.bf16.vlgmr.msrb.gmra.mxu2 %vm690_vm5, %v1001_v25  ;;  %v1325_v34 = vpop.eup %1324 }
 0x6a7   : > { %v820_v43 = vmul.f32 %v1325_v34, %v819_v40 }
 0x6b1   : > { %915 = vperm.xlu0 %1311, %v1321_v28  }
 0x6b7   : > { %v898_v30 = vpop.permute.xlu0 %897 }
 0x6b8   : > { %v900_v32 = vsub.f32 %v1603_v48, %v898_v30 }
 0x6b9   : > { %1031 = vperm.xlu0 %1311, %v1323_v31  }
 0x6ba   : > { %v901_v33 = vmul.f32 1.442695, %v900_v32 }
 0x6bc   : > { %1326 = vpow2.f32 %v901_v33 }
 0x6bd   : > { %1328 = vpow2.f32 %v975_v36 }
 0x6be   : > { %830 = vperm.xlu1 %1309, %v1325_v34  }
 0x6c2   : > { %v1327_v35 = vpop.eup %1326 }
 0x6c3   : > { %v906_v37 = vsel %vm690_vm5, %v1327_v35, 0.0  ;;  %v919_v38 = vpack.c.bf16 %v1327_v35, %v1327_v35  ;;  %v1329_v39 = vpop.eup %1328 }
 0x6c4   : > { %907 = vadd.xlane.f32.xlu2 %v906_v37  ;;  %v987_v46 = vmul.f32 %v1329_v39, %v986_v41 }
 0x6c5   : > { %1248 = vmatmul.msk.bf16.vlgmr.msrb.gmra.mxu3 %vm690_vm5, %v919_v38 }
 0x6dc   : > { %743 = vperm.xlu2 %1310, %v1315_v63  }
 0x6e4   : > { %997 = vperm.xlu2 %1310, %v1329_v39  }
 0x710   : > { %v823_v44 = vpop.xlane.xlu0 %822 }
 0x711   : > { %v824_v45 = vadd.f32 %v823_v44, %v820_v43 }
 0x713   : > { %825 = vst.msk [vmem:[#allocation3 + $0x8] sm:$0xff] %vm738_vm7, %v824_v45 }
 0x718   : > { %v990_v47 = vpop.xlane.xlu1 %989 }
 0x719   : > { %v991_v48 = vadd.f32 %v990_v47, %v987_v46 }
 0x71a   : > { %v1036_v49 = vld [vmem:[#allocation3 + $0x8] sm:$0xff] }
 0x71b   : > { %992 = vst.msk [vmem:[#allocation3 + $0x18] sm:$0xff] %vm738_vm7, %v991_v48  ;;  %1330 = vrcp.f32 %v1036_v49 }
 0x721   : > { %v1331_v50 = vpop.eup %1330  ;;  %v855_v51 = vpop.f32.mrf.mxu3 }
 0x722   : > { %1041 = vperm.xlu1 %1309, %v1331_v50   ;;  %v1056_v52 = vld [vmem:[#allocation3 + $0x18] sm:$0xff] }
 0x723   : > { %1332 = vrcp.f32 %v1056_v52  ;;  %v916_v9 = vpop.permute.xlu0 %915 }
 0x724   : > { %v918_v11 = vmul.f32 %v916_v9, %v912_v8 }
 0x729   : > { %v1333_v53 = vpop.eup %1332  ;;  %v857_v54 = vpop.f32.mrf.mxu3 }
 0x72a   : > { %v1019_v55 = vpop.f32.mrf.mxu2  ;;  %1061 = vperm.xlu0 %1311, %v1333_v53  }
 0x730   : > { %v831_v57 = vpop.permute.xlu1 %830 }
 0x731   : > { %v833_v4 = vmul.f32 %v831_v57, %v827_v56 }
 0x732   : > { %v1021_v58 = vpop.f32.mrf.mxu2 }
 0x733   : > { %v859_v59 = vadd.f32 %v855_v51, %v833_v4 }
 0x735   : > { %860 = vst.msk [vmem:[#allocation4 + $0x8] sm:$0xff] %vm690_vm5, %v859_v59 }
 0x737   : > { %v908_v62 = vpop.xlane.xlu2 %907 }
 0x738   : > { %v909_v0 = vadd.f32 %v908_v62, %v905_v61 }
 0x73a   : > { %910 = vst.msk [vmem:[#allocation3 + $0x10] sm:$0xff] %vm738_vm7, %v909_v0 }
 0x73c   : > { %v1038_v19 = vld [vmem:[#allocation4 + $0x8] sm:$0xff] }
 0x73f   : > { %v744_v5 = vpop.permute.xlu2 %743 }
 0x740   : > { %v746_v6 = vmul.f32 %v744_v5, %v740_v1 }
 0x741   : > { %v1046_v7 = vld [vmem:[#allocation3 + $0x10] sm:$0xff] }
 0x742   : > { %v768_v63 = vadd.f32 %v1594_v42, %v746_v6  ;;  %1334 = vrcp.f32 %v1046_v7  ;;  %v1032_v42 = vpop.permute.xlu0 %1031 }
 0x744   : > { %769 = vst.msk [vmem:[#allocation4] sm:$0xff] %vm690_vm5, %v768_v63 }
 0x747   : > { %v998_v12 = vpop.permute.xlu2 %997 }
 0x748   : > { %v1335_v13 = vpop.eup %1334  ;;  %v1000_v14 = vmul.f32 %v998_v12, %v994_v10  ;;  %v937_v15 = vpop.f32.mrf.mxu3 }
 0x749   : > { %v941_v16 = vadd.f32 %v937_v15, %v918_v11  ;;  %1051 = vperm.xlu2 %1310, %v1335_v13  }
 0x74a   : > { %v1023_v17 = vadd.f32 %v1019_v55, %v1000_v14 }
 0x74b   : > { %942 = vst.msk [vmem:[#allocation4 + $0x10] sm:$0xff] %vm690_vm5, %v941_v16  ;;  %v1028_v35 = vld [vmem:[#allocation4] sm:$0xff] }
 0x74c   : > { %1024 = vst.msk [vmem:[#allocation4 + $0x18] sm:$0xff] %vm690_vm5, %v1023_v17  ;;  %v1034_v37 = vmul.f32 %v1032_v42, %v1028_v35 }
 0x74e   : > { %v1035_v36 = vpack.c.bf16 %v1034_v37, %v1034_v37 }
 0x750   : > { %v939_v18 = vpop.f32.mrf.mxu3 }
 0x752   : > { %v1048_v30 = vld [vmem:[#allocation4 + $0x10] sm:$0xff] }
 0x753   : > { %v1058_v23 = vld [vmem:[#allocation4 + $0x18] sm:$0xff] }
 0x794   : > { %v1042_v3 = vpop.permute.xlu1 %1041 }
 0x795   : > { %v1044_v20 = vmul.f32 %v1042_v3, %v1038_v19 }
 0x797   : > { %v1045_v21 = vpack.c.bf16 %v1044_v20, %v1044_v20 }
 0x799   : > { %v1067_v22 = vunpack.c.l.b16 %v1045_v21 }
 0x79b   : > { %v1068_v2 = vpack.c.b16 %v1067_v22, %v1067_v22 }
 0x79c   : > { %v1062_v24 = vpop.permute.xlu0 %1061 }
 0x79d   : > { %v1064_v25 = vmul.f32 %v1062_v24, %v1058_v23  ;;  %1069 = vrot.lane.b32.xlu1 %v1068_v2, %s1370_s26 }
 0x79f   : > { %v1065_v26 = vpack.c.bf16 %v1064_v25, %v1064_v25 }
 0x7a1   : > { %v1077_v27 = vunpack.c.l.b16 %v1065_v26 }
 0x7a3   : > { %v1078_v28 = vpack.c.b16 %v1077_v27, %v1077_v27  ;;  %v1052_v29 = vpop.permute.xlu2 %1051 }
 0x7a4   : > { %v1054_v31 = vmul.f32 %v1052_v29, %v1048_v30 }
 0x7a5   : > { %1079 = vrot.lane.b32.xlu0 %v1078_v28, %s1371_s27 }
 0x7a6   : > { %v1055_v32 = vpack.c.bf16 %v1054_v31, %v1054_v31 }
 0x7a8   : > { %v1072_v33 = vunpack.c.l.b16 %v1055_v32 }
 0x7aa   : > { %v1073_v34 = vpack.c.b16 %v1072_v33, %v1072_v33 }
 0x7ac   : > { %1074 = vrot.lane.b32.xlu2 %v1073_v34, %s1372_s28 }
 0x806   : > { %v1075_v40 = vpop.permute.xlu2 %1074 }
 0x80f   : > { %v1070_v38 = vpop.permute.xlu1 %1069 }
 0x810   : > { %v1083_v39 = vsel %vm690_vm5, %v1035_v36, %v1070_v38 }
 0x811   : > { %v1086_v43 = vsel %vm1084_vm9, %v1083_v39, %v1075_v40 }
 0x817   : > { %v1080_v44 = vpop.permute.xlu0 %1079 }
 0x818   : > { %v1089_v45 = vsel %vm1087_vm10, %v1086_v43, %v1080_v44 }
 0x819   : > { %1092 = vst.msk [vmem:[%s329_s18] sm:$0xf] %vm1091_vm11, %v1089_v45 }
 0x81a PF: > { %s17_s24 = sadd.s32 1, %s1358_s24   ;;  %s1670_s22 = smov %s1354_s23 }
 0x81b   : > { %p14_p10 = scmp.ge.s32.totalorder %s17_s24, 4   ;;  %s1671_s23 = smov %s1673_s0 }
 0x81d   :  { %16 = sbr.rel (!%p14_p10) target bundleno = 3 (0x3), region = 98 }

// kernel: _lambda_.9
= control target key start
LH: loop header
LB: loop body
LE: loop exit
PB: predicated region body
PF: predicated region fallthrough
CT: control target
= control target key end

     0   :  { %s1049_s13 = smov 0   ;;  %s1051_s14 = smov 0   ;;  %s1152_s0 = inlined_call_operand.vmem [shape: bf16[2,8,32], index: 0, kind: input, shape index: {}]   ;;  %s1153_s1 = inlined_call_operand.vmem [shape: f32[2,8,32], index: 1, kind: input, shape index: {}, may-alias: {1,10}]   ;;  %s1154_s2 = inlined_call_operand.vmem [shape: bf16[32,32], index: 2, kind: input, shape index: {}]   ;;  %s1155_s3 = inlined_call_operand.vmem [shape: f32[1,32], index: 3, kind: input, shape index: {}]   ;;  %s1156_s4 = inlined_call_operand.vmem [shape: f32[1,32], index: 4, kind: input, shape index: {}]   ;;  %s1157_s5 = inlined_call_operand.vmem [shape: f32[1,32], index: 5, kind: input, shape index: {}]   ;;  %s1158_s6 = inlined_call_operand.vmem [shape: bf16[32,128], index: 6, kind: input, shape index: {}]   ;;  %s1159_s7 = inlined_call_operand.vmem [shape: f32[1,128], index: 7, kind: input, shape index: {}]   ;;  %s1160_s8 = inlined_call_operand.vmem [shape: bf16[128,32], index: 8, kind: input, shape index: {}]   ;;  %s1161_s9 = inlined_call_operand.vmem [shape: f32[1,32], index: 9, kind: input, shape index: {}]   ;;  %s1162_s10 = inlined_call_operand.vmem [shape: f32[2,8,32], index: 10, kind: output, shape index: {}, may-alias: {1,10}]  }
   0x1   :  { %s1053_s15 = smov 0  }
   0x2 LB: > { %s39_s16 = sadd.s32 1, %s986_s14  ;;  %p861_p0 = scmp.ge.s32.totalorder %s990_s15, 1  ;;  %s990_s15 = sphi %s1053_s15, %s20_s15   ;;  %s986_s14 = sphi %s1051_s14, %s1164_s14   ;;  %s982_s13 = sphi %s1049_s13, %s1163_s13  }
   0x3   : > { %p41_p1 = scmp.ge.s32.totalorder %s39_s16, 2  ;;  %p379_p2 = scmp.lt.s32.totalorder %s990_s15, 3 }
   0x5   : > { %s1166_s16 = smov (%p41_p1, %s39_s16), 0  ;;  %p380_p3 = pnand %p861_p0, %p379_p2 }
   0x6   : > { %p440_p4 = scmp.lt.s32.totalorder (!%p380_p3), %s982_s13, 1 }
   0x7   : > { %383 = sbr.rel (%p380_p3) target bundleno = 746 (0x2ea), region = 60 }
   0xc   : > { %v918_v0 = vld [vmem:[%s1154_s2 + $0x8] sm:$0xff]  ;;  %v917_v1 = vld [vmem:[%s1154_s2] sm:$0xff]  ;;  %s1168_s13 = smov (!%p440_p4, %s982_s13), 1  ;;  %vm500_vm0 = vcmask 261120   ;;  %v992_v10 = vmov 32.0   ;;  %v928_v37 = vld [vmem:[%s1160_s8 + $0x38] sm:$0xff] }
   0xd   : > { %510 = vmatpush.bf16.msra.mxu0 %v918_v0  ;;  %s862_s21 = sshll.u32 %s1168_s13, 2  ;;  %s863_s25 = sshll.u32 %s1168_s13, 3  ;;  %v955_v3 = vld [vmem:[%s1155_s3] ss:$0 sm:$0xff]  ;;  %960 = vrcp.f32 %v992_v10  ;;  %v920_v26 = vld [vmem:[%s1158_s6 + $0x8] sm:$0xff]  ;;  %692 = vmatpush.bf16.msra.mxu2 %v928_v37  ;;  %v927_v38 = vld [vmem:[%s1160_s8 + $0x30] sm:$0xff] }
   0xe   : > { %s446_s24 = scalar_lea.vmem %s1152_s0, %s862_s21  ;;  %s453_s28 = scalar_lea.vmem %s1153_s1, %s863_s25  ;;  %610 = vmatpush.bf16.msra.mxu1 %v920_v26  ;;  %v919_v28 = vld [vmem:[%s1158_s6] sm:$0xff]  ;;  %vm576_vm8 = vcmask 257024   ;;  %v926_v56 = vld [vmem:[%s1160_s8 + $0x28] sm:$0xff]  ;;  %v924_v58 = vld [vmem:[%s1160_s8 + $0x18] sm:$0xff]  ;;  %v993_v62 = vmov 0.0  }
   0xf   : > { %v479_v2 = vld [vmem:[%s446_s24] sm:$0xf]  ;;  %v923_v59 = vld [vmem:[%s1160_s8 + $0x10] sm:$0xff]  ;;  %v922_v60 = vld [vmem:[%s1160_s8 + $0x8] sm:$0xff]  ;;  %578 = vst.msk [vmem:[#allocation4] sm:$0xff] %vm500_vm0, %v993_v62  ;;  %s473_s11 = scalar_lea.vmem %s1162_s10, %s863_s25 }
  0x10   : > { %v517_v5 = vld [vmem:[%s453_s28] sm:$0xff] }
  0x11   : > { %511 = vmatpush.bf16.msra.mxu0 %v917_v1  ;;  %693 = vmatpush.bf16.msra.mxu2 %v927_v38  ;;  %v956_v48 = vld [vmem:[%s1156_s4] ss:$0 sm:$0xff] }
  0x12   : > { %611 = vmatpush.bf16.msra.mxu1 %v919_v28  ;;  %v957_v51 = vld [vmem:[%s1157_s5] ss:$0 sm:$0xff] }
  0x13   : > { %v961_v11 = vpop.eup %960  ;;  %v925_v57 = vld [vmem:[%s1160_s8 + $0x20] sm:$0xff] }
  0x14   : > { %873 = vmatmul.msk.bf16.vlgmr.msra.gmra.mxu0 %vm500_vm0, %v479_v2  ;;  %v526_v12 = vmul.f32 32.0, %v961_v11  ;;  %vm530_vm1 = vweird.f32 %v961_v11  ;;  %v921_v61 = vld [vmem:[%s1160_s8] sm:$0xff] }
  0x15   : > { %694 = vmatpush.bf16.msra.mxu2 %v926_v56  ;;  %v958_v63 = vld [vmem:[%s1159_s7] ss:$0 sm:$0xff] }
  0x16   : > { %v527_v13 = vsub.f32 1.0, %v526_v12 }
  0x18   : > { %v528_v14 = vmul.f32 %v961_v11, %v527_v13  ;;  %v627_v13 = vld [vmem:[#allocation4] sm:$0xff] }
  0x19   : > { %695 = vmatpush.bf16.msra.mxu2 %v925_v57 }
  0x1a   : > { %v529_v15 = vadd.f32 %v961_v11, %v528_v14 }
  0x1c   : > { %v531_v16 = vsel %vm530_vm1, %v961_v11, %v529_v15 }
  0x1d   : > { %696 = vmatpush.bf16.msra.mxu2 %v924_v58 }
  0x21   : > { %697 = vmatpush.bf16.msra.mxu2 %v923_v59 }
  0x25   : > { %698 = vmatpush.bf16.msra.mxu2 %v922_v60 }
  0x29   : > { %699 = vmatpush.bf16.msra.mxu2 %v921_v61 }
  0x91   : > { %v513_v4 = vpop.f32.mrf.mxu0 }
  0x92   : > { %v514_v6 = vadd.f32 %v955_v3, %v513_v4 }
  0x94   : > { %v518_v7 = vadd.f32 %v517_v5, %v514_v6 }
  0x96   : > { %519 = vst.msk [vmem:[#allocation3] sm:$0xff] %vm500_vm0, %v518_v7  ;;  %v522_v8 = vsel %vm500_vm0, %v518_v7, 0.0 }
  0x97   : > { %523 = vadd.xlane.f32.xlu0 %v522_v8 }
  0x99   : > { %v515_v9 = vpop.f32.mrf.mxu0 }
 0x10a   : > { %v524_v17 = vpop.xlane.xlu0 %523 }
 0x10b   : > { %v532_v18 = vmul.f32 %v531_v16, %v524_v17  ;;  %v959_v17 = vld [vmem:[%s1161_s9] ss:$0 sm:$0xff] }
 0x10d   : > { %v533_v19 = vsub.f32 %v518_v7, %v532_v18  ;;  %v710_v18 = vld [vmem:[#allocation3] sm:$0xff] }
 0x10f   : > { %v534_v20 = vmul.f32 %v533_v19, %v533_v19 }
 0x111   : > { %v535_v21 = vsel %vm500_vm0, %v534_v20, 0.0 }
 0x112   : > { %536 = vadd.xlane.f32.xlu0 %v535_v21 }
 0x185   : > { %v537_v22 = vpop.xlane.xlu0 %536 }
 0x186   : > { %v538_v23 = vmul.f32 %v537_v22, %v531_v16 }
 0x188   : > { %v539_v24 = vadd.f32 1e-05, %v538_v23 }
 0x18a   : > { %962 = vrsqrt.f32 %v539_v24  ;;  %vm547_vm2 = vcmp.eq.f32.partialorder %v539_v24, inf  ;;  %v550_v34 = vand.u32 2147483648, %v539_v24  ;;  %vm549_vm3 = vcmp.eq.f32.partialorder %v539_v24, 0.0 }
 0x190   : > { %v963_v25 = vpop.eup %962 }
 0x191   : > { %v541_v27 = vmul.f32 %v963_v25, %v539_v24 }
 0x193   : > { %v542_v29 = vmul.f32 %v963_v25, %v541_v27 }
 0x195   : > { %v543_v30 = vmul.f32 0.5, %v542_v29 }
 0x197   : > { %v544_v31 = vsub.f32 1.5, %v543_v30 }
 0x199   : > { %v545_v32 = vmul.f32 %v963_v25, %v544_v31 }
 0x19b   : > { %v546_v33 = vmul.f32 %v545_v32, %v539_v24 }
 0x19d   : > { %v548_v35 = vsel %vm547_vm2, %v539_v24, %v546_v33 }
 0x19e   : > { %v551_v36 = vsel %vm549_vm3, %v550_v34, %v548_v35 }
 0x19f   : > { %964 = vrcp.f32 %v551_v36  ;;  %v563_v42 = vand.u32 2147483648, %v551_v36  ;;  %v561_v44 = vand.u32 2147483647, %v551_v36  ;;  %vm557_vm5 = vweird.f32 %v551_v36 }
 0x1a1   : > { %v564_v46 = vor.u32 1.1754944e-38, %v563_v42  ;;  %vm562_vm7 = vcmp.eq.f32.partialorder %v561_v44, 8.507059e+37 }
 0x1a5   : > { %v965_v39 = vpop.eup %964 }
 0x1a6   : > { %v553_v40 = vmul.f32 %v965_v39, %v551_v36  ;;  %vm558_vm4 = vweird.f32 %v965_v39 }
 0x1a7   : > { %vm559_vm6 = vmor %vm557_vm5, %vm558_vm4 }
 0x1a8   : > { %v554_v41 = vsub.f32 1.0, %v553_v40 }
 0x1aa   : > { %v555_v43 = vmul.f32 %v965_v39, %v554_v41 }
 0x1ac   : > { %v556_v45 = vadd.f32 %v965_v39, %v555_v43 }
 0x1ae   : > { %v560_v47 = vsel %vm559_vm6, %v965_v39, %v556_v45 }
 0x1af   : > { %v565_v49 = vsel %vm562_vm7, %v564_v46, %v560_v47 }
 0x1b0   : > { %v566_v50 = vmul.f32 %v565_v49, %v533_v19 }
 0x1b2   : > { %v570_v52 = vmul.f32 %v956_v48, %v566_v50 }
 0x1b4   : > { %v574_v53 = vadd.f32 %v957_v51, %v570_v52 }
 0x1b6   : > { %v575_v54 = vpack.c.bf16 %v574_v53, %v574_v53 }
 0x1b8   : > { %577 = vst.msk [vmem:[#allocation2] sm:$0xf] %vm576_vm8, %v575_v54 }
 0x1bf   : > { %v579_v55 = vld [vmem:[#allocation2] sm:$0xf] }
 0x1c0   : > { %882 = vmatmul.msk.bf16.vlgmr.msra.gmra.mxu1 %vm500_vm0, %v579_v55 }
 0x23d   : > { %v613_v0 = vpop.f32.mrf.mxu1 }
 0x23e   : > { %v614_v1 = vadd.f32 %v958_v63, %v613_v0 }
 0x240   : > { %v618_v2 = vmul.f32 %v614_v1, %v614_v1  ;;  %v617_v9 = vmul.f32 0.5, %v614_v1 }
 0x242   : > { %v619_v3 = vmul.f32 %v618_v2, %v614_v1 }
 0x244   : > { %v620_v4 = vmul.f32 0.044715, %v619_v3 }
 0x245   : > { %v615_v5 = vpop.f32.mrf.mxu1 }
 0x246   : > { %v621_v6 = vadd.f32 %v620_v4, %v614_v1 }
 0x248   : > { %v622_v7 = vmul.f32 0.7978845, %v621_v6 }
 0x24a   : > { %966 = vtanh.f32 %v622_v7 }
 0x250   : > { %v967_v8 = vpop.eup %966 }
 0x251   : > { %v624_v10 = vadd.f32 1.0, %v967_v8 }
 0x253   : > { %v625_v11 = vmul.f32 %v624_v10, %v617_v9 }
 0x255   : > { %v626_v12 = vpack.c.bf16 %v625_v11, %v625_v11 }
 0x257   : > { %700 = vmatmul.bf16.vlgmr.msra.gmra.mxu2 %v626_v12 }
 0x2da   : > { %v701_v14 = vpop.f32.mrf.mxu2 }
 0x2db   : > { %v705_v15 = vadd.f32 %v701_v14, %v627_v13 }
 0x2dd   : > { %706 = vst.msk [vmem:[#allocation4] sm:$0xff] %vm500_vm0, %v705_v15 }
 0x2e2   : > { %v703_v16 = vpop.f32.mrf.mxu2 }
 0x2e4   : > { %v711_v19 = vld [vmem:[#allocation4] sm:$0xff] }
 0x2e5   : > { %v712_v20 = vadd.f32 %v711_v19, %v710_v18 }
 0x2e7   : > { %v717_v21 = vadd.f32 %v959_v17, %v712_v20 }
 0x2e9   : > { %718 = vst.msk [vmem:[%s473_s11] sm:$0xff] %vm500_vm0, %v717_v21 }
 0x2ea PF: > { %s20_s15 = sadd.s32 1, %s990_s15   ;;  %s1163_s13 = smov %s986_s14 }
 0x2eb   : > { %p17_p5 = scmp.ge.s32.totalorder %s20_s15, 4   ;;  %s1164_s14 = smov %s1166_s16 }
 0x2ed   :  { %19 = sbr.rel (!%p17_p5) target bundleno = 2 (0x2), region = 110 }

// kernel: _lambda_.7
= control target key start
LH: loop header
LB: loop body
LE: loop exit
PB: predicated region body
PF: predicated region fallthrough
CT: control target
= control target key end

     0   :  { %s693_s21 = smov 0   ;;  %s695_s22 = smov 0   ;;  %s751_s0 = inlined_call_operand.vmem [shape: f32[2,8,32], index: 0, kind: input, shape index: {}]   ;;  %s752_s1 = inlined_call_operand.vmem [shape: f32[1,32], index: 1, kind: input, shape index: {}]   ;;  %s753_s2 = inlined_call_operand.vmem [shape: f32[1,32], index: 2, kind: input, shape index: {}]   ;;  %s754_s3 = inlined_call_operand.vmem [shape: bf16[32,96], index: 3, kind: input, shape index: {}]   ;;  %s755_s4 = inlined_call_operand.vmem [shape: bf16[2,8,32], index: 4, kind: output, shape index: {0}]   ;;  %s756_s5 = inlined_call_operand.vmem [shape: bf16[2,8,32], index: 5, kind: output, shape index: {1}]   ;;  %s757_s6 = inlined_call_operand.vmem [shape: bf16[2,8,32], index: 6, kind: output, shape index: {2}]  }
   0x1   :  { %s697_s23 = smov 0  }
   0x2 LB: > { %s29_s24 = sadd.s32 1, %s649_s22  ;;  %p578_p0 = scmp.ge.s32.totalorder %s653_s23, 1  ;;  %s653_s23 = sphi %s697_s23, %s17_s23   ;;  %s649_s22 = sphi %s695_s22, %s759_s22   ;;  %s645_s21 = sphi %s693_s21, %s758_s21  }
   0x3   : > { %p31_p1 = scmp.ge.s32.totalorder %s29_s24, 2  ;;  %p239_p2 = scmp.lt.s32.totalorder %s653_s23, 3 }
   0x5   : > { %s761_s24 = smov (%p31_p1, %s29_s24), 0  ;;  %p240_p3 = pnand %p578_p0, %p239_p2 }
   0x6   : > { %p287_p4 = scmp.lt.s32.totalorder (!%p240_p3), %s645_s21, 1  ;;  %s656_s17 = smov (!%p240_p3), 96  }
   0x7   : > { %243 = sbr.rel (%p240_p3) target bundleno = 558 (0x22e), region = 36  ;;  %s657_s18 = smov (!%p240_p3), 64  }
   0xc   : > { %s763_s21 = smov (!%p287_p4, %s645_s21), 1  ;;  %vm319_vm0 = vcmask 261120   ;;  %v655_v2 = vmov 32.0   ;;  %v595_v14 = vld [vmem:[%s754_s3 + $0x8] sm:$0xff]  ;;  %v594_v15 = vld [vmem:[%s754_s3] sm:$0xff]  ;;  %vm407_vm8 = vcmask 257024  }
   0xd   : > { %s579_s25 = sshll.u32 %s763_s21, 3  ;;  %625 = vrcp.f32 %v655_v2  ;;  %399 = vmatpush.bf16.msra.mxu0 %v595_v14  ;;  %v623_v38 = vld [vmem:[%s752_s1] ss:$0 sm:$0xff]  ;;  %s580_s13 = sshll.u32 %s763_s21, 2 }
   0xe   : > { %s293_s28 = scalar_lea.vmem %s751_s0, %s579_s25  ;;  %v624_v41 = vld [vmem:[%s753_s2] ss:$0 sm:$0xff]  ;;  %s300_s16 = scalar_lea.vmem %s755_s4, %s580_s13 }
   0xf   : > { %v316_v0 = vld [vmem:[%s293_s28] sm:$0xff]  ;;  %s307_s25 = scalar_lea.vmem %s756_s5, %s580_s13  ;;  %s314_s27 = scalar_lea.vmem %s757_s6, %s580_s13 }
  0x10   : > { %v320_v1 = vsel %vm319_vm0, %v316_v0, 0.0 }
  0x11   : > { %321 = vadd.xlane.f32.xlu0 %v320_v1  ;;  %400 = vmatpush.bf16.msra.mxu0 %v594_v15 }
  0x13   : > { %v626_v3 = vpop.eup %625 }
  0x14   : > { %v324_v4 = vmul.f32 32.0, %v626_v3  ;;  %vm328_vm1 = vweird.f32 %v626_v3 }
  0x16   : > { %v325_v5 = vsub.f32 1.0, %v324_v4 }
  0x18   : > { %v326_v6 = vmul.f32 %v626_v3, %v325_v5 }
  0x1a   : > { %v327_v7 = vadd.f32 %v626_v3, %v326_v6 }
  0x1c   : > { %v329_v8 = vsel %vm328_vm1, %v626_v3, %v327_v7 }
  0x84   : > { %v322_v9 = vpop.xlane.xlu0 %321 }
  0x85   : > { %v330_v10 = vmul.f32 %v329_v8, %v322_v9 }
  0x87   : > { %v331_v11 = vsub.f32 %v316_v0, %v330_v10 }
  0x89   : > { %v332_v12 = vmul.f32 %v331_v11, %v331_v11 }
  0x8b   : > { %v333_v13 = vsel %vm319_vm0, %v332_v12, 0.0 }
  0x8c   : > { %334 = vadd.xlane.f32.xlu0 %v333_v13 }
  0xff   : > { %v335_v16 = vpop.xlane.xlu0 %334 }
 0x100   : > { %v336_v17 = vmul.f32 %v335_v16, %v329_v8 }
 0x102   : > { %v337_v18 = vadd.f32 1e-05, %v336_v17 }
 0x104   : > { %627 = vrsqrt.f32 %v337_v18  ;;  %vm345_vm2 = vcmp.eq.f32.partialorder %v337_v18, inf  ;;  %v348_v26 = vand.u32 2147483648, %v337_v18  ;;  %vm347_vm3 = vcmp.eq.f32.partialorder %v337_v18, 0.0 }
 0x10a   : > { %v628_v19 = vpop.eup %627 }
 0x10b   : > { %v339_v20 = vmul.f32 %v628_v19, %v337_v18 }
 0x10d   : > { %v340_v21 = vmul.f32 %v628_v19, %v339_v20 }
 0x10f   : > { %v341_v22 = vmul.f32 0.5, %v340_v21 }
 0x111   : > { %v342_v23 = vsub.f32 1.5, %v341_v22 }
 0x113   : > { %v343_v24 = vmul.f32 %v628_v19, %v342_v23 }
 0x115   : > { %v344_v25 = vmul.f32 %v343_v24, %v337_v18 }
 0x117   : > { %v346_v27 = vsel %vm345_vm2, %v337_v18, %v344_v25 }
 0x118   : > { %v349_v28 = vsel %vm347_vm3, %v348_v26, %v346_v27 }
 0x119   : > { %629 = vrcp.f32 %v349_v28  ;;  %v361_v32 = vand.u32 2147483648, %v349_v28  ;;  %v359_v34 = vand.u32 2147483647, %v349_v28  ;;  %vm355_vm5 = vweird.f32 %v349_v28 }
 0x11b   : > { %v362_v36 = vor.u32 1.1754944e-38, %v361_v32  ;;  %vm360_vm7 = vcmp.eq.f32.partialorder %v359_v34, 8.507059e+37 }
 0x11f   : > { %v630_v29 = vpop.eup %629 }
 0x120   : > { %v351_v30 = vmul.f32 %v630_v29, %v349_v28  ;;  %vm356_vm4 = vweird.f32 %v630_v29 }
 0x121   : > { %vm357_vm6 = vmor %vm355_vm5, %vm356_vm4 }
 0x122   : > { %v352_v31 = vsub.f32 1.0, %v351_v30 }
 0x124   : > { %v353_v33 = vmul.f32 %v630_v29, %v352_v31 }
 0x126   : > { %v354_v35 = vadd.f32 %v630_v29, %v353_v33 }
 0x128   : > { %v358_v37 = vsel %vm357_vm6, %v630_v29, %v354_v35 }
 0x129   : > { %v363_v39 = vsel %vm360_vm7, %v362_v36, %v358_v37 }
 0x12a   : > { %v364_v40 = vmul.f32 %v363_v39, %v331_v11 }
 0x12c   : > { %v368_v42 = vmul.f32 %v623_v38, %v364_v40 }
 0x12e   : > { %v372_v43 = vadd.f32 %v624_v41, %v368_v42 }
 0x130   : > { %v373_v44 = vpack.c.bf16 %v372_v43, %v372_v43 }
 0x132   : > { %591 = vmatmul.msk.bf16.vlgmr.msra.gmra.mxu0 %vm319_vm0, %v373_v44 }
 0x1af   : > { %v402_v45 = vpop.f32.mrf.mxu0 }
 0x1b0   : > { %v406_v46 = vpack.c.bf16 %v402_v45, %v402_v45 }
 0x1b2   : > { %410 = vrot.lane.b32.xlu1 %v406_v46, %s656_s17  ;;  %408 = vst.msk [vmem:[%s300_s16] sm:$0xf] %vm407_vm8, %v406_v46 }
 0x1b7   : > { %v404_v47 = vpop.f32.mrf.mxu0 }
 0x1ba   : > { %414 = vrot.lane.b32.xlu1 %v406_v46, %s657_s18 }
 0x224   : > { %v411_v48 = vpop.permute.xlu1 %410 }
 0x225   : > { %413 = vst.msk [vmem:[%s307_s25] sm:$0xf] %vm407_vm8, %v411_v48 }
 0x22c   : > { %v415_v49 = vpop.permute.xlu1 %414 }
 0x22d   : > { %417 = vst.msk [vmem:[%s314_s27] sm:$0xf] %vm407_vm8, %v415_v49 }
 0x22e PF: > { %s17_s23 = sadd.s32 1, %s653_s23   ;;  %s758_s21 = smov %s649_s22 }
 0x22f   : > { %p14_p5 = scmp.ge.s32.totalorder %s17_s23, 4   ;;  %s759_s22 = smov %s761_s24 }
 0x231   :  { %16 = sbr.rel (!%p14_p5) target bundleno = 2 (0x2), region = 90 }

// kernel: _lambda_.13
= control target key start
LH: loop header
LB: loop body
LE: loop exit
PB: predicated region body
PF: predicated region fallthrough
CT: control target
= control target key end

     0   :  { %9 = vsyncpa [#allocation3], 0  ;;  %s749_s0 = inlined_call_operand.vmem [shape: f32[2,8,32], index: 0, kind: input, shape index: {}]   ;;  %s750_s1 = inlined_call_operand.vmem [shape: f32[1,32], index: 1, kind: input, shape index: {}]   ;;  %s751_s2 = inlined_call_operand.vmem [shape: f32[1,32], index: 2, kind: input, shape index: {}]   ;;  %s752_s3 = inlined_call_operand.vmem [shape: bf16[32,128], index: 3, kind: input, shape index: {}]   ;;  %s753_s4 = inlined_call_operand.hbm [shape: f32[2,8,128], index: 4, kind: output, shape index: {}]  }
   0x1   :  { %11 = vsyncpa [#allocation3 + $0x1], 0  ;;  %s637_s15 = smov 0   ;;  %s639_s16 = smov 0  }
   0x2   :  { %s641_s17 = smov 0   ;;  %s643_s18 = smov 0  }
   0x3   :  { %s645_s19 = smov 0   ;;  %s647_s20 = smov 0  }
   0x4 LB: > { %s444_s21 = sadd.s32 4294967295, %s609_s20   ;;  %s445_s22 = sadd.s32 4294967294, %s609_s20   ;;  %s609_s20 = sphi %s647_s20, %s17_s20   ;;  %s605_s19 = sphi %s645_s19, %s760_s19   ;;  %s601_s18 = sphi %s643_s18, %s759_s18   ;;  %s597_s17 = sphi %s641_s17, %s758_s17   ;;  %s593_s16 = sphi %s639_s16, %s757_s16   ;;  %s589_s15 = sphi %s637_s15, %s756_s15  }
   0x5   : > { %s32_s23 = sadd.s32 1, %s605_s19  ;;  %s143_s24 = sadd.s32 1, %s597_s17 }
   0x6   : > { %p34_p0 = scmp.ge.s32.totalorder %s32_s23, 2  ;;  %p153_p1 = scmp.ne.s32.totalorder %s597_s17, %s593_s16 }
   0x7   : > { %p154_p2 = scmp.eq.s32.totalorder %s444_s21, 1  ;;  %p159_p3 = scmp.ne.s32.totalorder %s593_s16, %s589_s15 }
   0x8   : > { %s762_s23 = smov (%p34_p0, %s32_s23), 0  ;;  %p160_p5 = scmp.eq.s32.totalorder %s445_s22, 1 }
   0x9   : > { %p677_p4 = por %p154_p2, %p153_p1  ;;  %s136_s26 = ssub.s32 %s605_s19, %s762_s23 }
   0xa   : > { %p449_p6 = scmp.ge.s32.totalorder %s609_s20, 1  ;;  %p141_p7 = scmp.eq.s32.totalorder %s136_s26, 0 }
   0xb   : > { %p684_p8 = por %p160_p5, %p159_p3  ;;  %p201_p9 = scmp.lt.s32.totalorder %s609_s20, 3 }
   0xc   : > { %s690_s28 = scalar_select %p141_p7, %s597_s17, %s143_s24  }
   0xd   : > { %p202_p10 = pnand %p449_p6, %p201_p9 }
   0xe   : > { %p233_p11 = scmp.lt.s32.totalorder (!%p202_p10), %s601_s18, 1  ;;  %s230_s22 = sand.u32 (!%p202_p10), 1, %s593_s16  }
   0xf   : > { %205 = sbr.rel (%p202_p10) target bundleno = 449 (0x1c1), region = 36  ;;  %s462_s24 = sshll.u32 (!%p202_p10), %s601_s18, 3 }
  0x10   : > { %s450_s26 = sshll.u32 (!%p202_p10), %s230_s22, 3  ;;  %s349_s5 = scalar_lea.hbm (!%p202_p10), %s753_s4, %s462_s24 }
  0x11   : > { %s232_s6 = scalar_lea.vmem (!%p202_p10), [#allocation2], %s450_s26  ;;  %s353_s8 = sshll.u32 (!%p202_p10), %s349_s5, 4  ;;  %s354_s8 = int_to_ptr.hbm [resolvable:$true] %s353_s8 }
  0x12   : > { %s337_s9 = scalar_lea.sflag (!%p202_p10), [#allocation3], %s230_s22  ;;  %s545_s10 = sshra.s32 (!%p202_p10), %s354_s8, 4  ;;  %s546_s10 = int_to_ptr.hbm [resolvable:$true] %s545_s10 }
  0x13   : > { %s547_s11 = scalar_lea.hbm (!%p202_p10), %s546_s10, 8  ;;  %s551_s13 = scalar_lea.hbm (!%p202_p10), %s753_s4, 16 }
  0x14   : > { %s234_s29 = scalar_select %p233_p11, %s601_s18, 1  ;;  %vm248_vm0 = vcmask 261120   ;;  %v611_v2 = vmov 32.0   ;;  %v466_v14 = vld [vmem:[%s752_s3 + $0x8] sm:$0xff]  ;;  %v465_v15 = vld [vmem:[%s752_s3] sm:$0xff] }
  0x15   : > { %525 = vrcp.f32 %v611_v2  ;;  %328 = vmatpush.bf16.msra.mxu0 %v466_v14  ;;  %v523_v38 = vld [vmem:[%s750_s1] ss:$0 sm:$0xff]  ;;  %p548_p12 = scmp.ne.s32.totalorder %s546_s10, %s547_s11  ;;  %p552_p1 = scmp.lt.s32.totalorder %s546_s10, %s753_s4 }
  0x16   : > { %s451_s30 = sshll.u32 %s234_s29, 3  ;;  %v524_v41 = vld [vmem:[%s751_s2] ss:$0 sm:$0xff]  ;;  %p553_p2 = scmp.lt.s32.totalorder %s551_s13, %s547_s11 }
  0x17   : > { %s239_s7 = scalar_lea.vmem %s749_s0, %s451_s30  ;;  %p549_p13 = pnand %p548_p12, %p677_p4 }
  0x18   : > { %v245_v0 = vld [vmem:[%s239_s7] sm:$0xff]  ;;  %s351_s7 = sshll.u32 %s232_s6, 4  ;;  %p554_p3 = por %p553_p2, %p552_p1  ;;  %s352_s7 = int_to_ptr.vmem [resolvable:$true] %s351_s7 }
  0x19   : > { %v249_v1 = vsel %vm248_vm0, %v245_v0, 0.0  ;;  %329 = vmatpush.bf16.msra.mxu0 %v465_v15  ;;  %p550_p0 = pneg %p549_p13 }
  0x1a   : > { %250 = vadd.xlane.f32.xlu0 %v249_v1 }
  0x1b   : > { %v526_v3 = vpop.eup %525  ;;  %p555_p5 = pnand %p554_p3, %p550_p0 }
  0x1c   : > { %v253_v4 = vmul.f32 32.0, %v526_v3  ;;  %vm257_vm1 = vweird.f32 %v526_v3 }
  0x1e   : > { %v254_v5 = vsub.f32 1.0, %v253_v4 }
  0x20   : > { %v255_v6 = vmul.f32 %v526_v3, %v254_v5 }
  0x22   : > { %v256_v7 = vadd.f32 %v526_v3, %v255_v6 }
  0x24   : > { %v258_v8 = vsel %vm257_vm1, %v526_v3, %v256_v7 }
  0x8d   : > { %v251_v9 = vpop.xlane.xlu0 %250 }
  0x8e   : > { %v259_v10 = vmul.f32 %v258_v8, %v251_v9 }
  0x90   : > { %v260_v11 = vsub.f32 %v245_v0, %v259_v10 }
  0x92   : > { %v261_v12 = vmul.f32 %v260_v11, %v260_v11 }
  0x94   : > { %v262_v13 = vsel %vm248_vm0, %v261_v12, 0.0 }
  0x95   : > { %263 = vadd.xlane.f32.xlu0 %v262_v13 }
 0x108   : > { %v264_v16 = vpop.xlane.xlu0 %263 }
 0x109   : > { %v265_v17 = vmul.f32 %v264_v16, %v258_v8 }
 0x10b   : > { %v266_v18 = vadd.f32 1e-05, %v265_v17 }
 0x10d   : > { %527 = vrsqrt.f32 %v266_v18  ;;  %vm274_vm2 = vcmp.eq.f32.partialorder %v266_v18, inf  ;;  %v277_v26 = vand.u32 2147483648, %v266_v18  ;;  %vm276_vm3 = vcmp.eq.f32.partialorder %v266_v18, 0.0 }
 0x113   : > { %v528_v19 = vpop.eup %527 }
 0x114   : > { %v268_v20 = vmul.f32 %v528_v19, %v266_v18 }
 0x116   : > { %v269_v21 = vmul.f32 %v528_v19, %v268_v20 }
 0x118   : > { %v270_v22 = vmul.f32 0.5, %v269_v21 }
 0x11a   : > { %v271_v23 = vsub.f32 1.5, %v270_v22 }
 0x11c   : > { %v272_v24 = vmul.f32 %v528_v19, %v271_v23 }
 0x11e   : > { %v273_v25 = vmul.f32 %v272_v24, %v266_v18 }
 0x120   : > { %v275_v27 = vsel %vm274_vm2, %v266_v18, %v273_v25 }
 0x121   : > { %v278_v28 = vsel %vm276_vm3, %v277_v26, %v275_v27 }
 0x122   : > { %529 = vrcp.f32 %v278_v28  ;;  %v290_v32 = vand.u32 2147483648, %v278_v28  ;;  %v288_v34 = vand.u32 2147483647, %v278_v28  ;;  %vm284_vm5 = vweird.f32 %v278_v28 }
 0x124   : > { %v291_v36 = vor.u32 1.1754944e-38, %v290_v32  ;;  %vm289_vm7 = vcmp.eq.f32.partialorder %v288_v34, 8.507059e+37 }
 0x128   : > { %v530_v29 = vpop.eup %529 }
 0x129   : > { %v280_v30 = vmul.f32 %v530_v29, %v278_v28  ;;  %vm285_vm4 = vweird.f32 %v530_v29 }
 0x12a   : > { %vm286_vm6 = vmor %vm284_vm5, %vm285_vm4 }
 0x12b   : > { %v281_v31 = vsub.f32 1.0, %v280_v30 }
 0x12d   : > { %v282_v33 = vmul.f32 %v530_v29, %v281_v31 }
 0x12f   : > { %v283_v35 = vadd.f32 %v530_v29, %v282_v33 }
 0x131   : > { %v287_v37 = vsel %vm286_vm6, %v530_v29, %v283_v35 }
 0x132   : > { %v292_v39 = vsel %vm289_vm7, %v291_v36, %v287_v37 }
 0x133   : > { %v293_v40 = vmul.f32 %v292_v39, %v260_v11 }
 0x135   : > { %v297_v42 = vmul.f32 %v523_v38, %v293_v40 }
 0x137   : > { %v301_v43 = vadd.f32 %v524_v41, %v297_v42 }
 0x139   : > { %v302_v44 = vpack.c.bf16 %v301_v43, %v301_v43 }
 0x13b   : > { %460 = vmatmul.msk.bf16.vlgmr.msra.gmra.mxu0 %vm248_vm0, %v302_v44 }
 0x1b8   : > { %v331_v45 = vpop.f32.mrf.mxu0 }
 0x1b9   : > { %335 = vst [vmem:[%s232_s6] sm:$0xff] %v331_v45 }
 0x1ba   : > { %558 = shalt.err (!%p555_p5)
}
 0x1bb   : > { %467 = dma.vmem_to_hbm [thread:$0]  (%p677_p4), %s352_s7, 128, %s354_s8, %s337_s9  }
 0x1c0   : > { %v333_v46 = vpop.f32.mrf.mxu0 }
 0x1c1 PF: > { %p473_p6 = scmp.ge.s32.totalorder %s609_s20, 2  ;;  %s365_s22 = sand.u32 1, %s589_s15  }
 0x1c2   : > { %s366_s24 = scalar_lea.sflag [#allocation3], %s365_s22 }
 0x1c3   : > { %p470_p7 = pnand %p473_p6, %p684_p8 }
 0x1c5   : > { %p471_p9 = pneg %p470_p7 }
 0x1c7   : > { %584 = dma.done.wait (%p471_p9), %s366_s24, 128  }
 0x1c8   : > { %586 = vsyncadd (%p471_p9), %s366_s24, 4294967168  ;;  %s17_s20 = sadd.s32 1, %s609_s20   ;;  %s756_s15 = smov %s593_s16 }
 0x1c9   : > { %p14_p10 = scmp.ge.s32.totalorder %s17_s20, 4   ;;  %s757_s16 = smov %s597_s17 }
 0x1ca   : > { %s758_s17 = smov %s690_s28  ;;  %s759_s18 = smov %s605_s19 }
 0x1cb   : > { %s760_s19 = smov %s762_s23  ;;  %16 = sbr.rel (!%p14_p10) target bundleno = 4 (0x4), region = 74 }
 0x1d0   :  { %372 = vsyncpa [#allocation3], 1 }
 0x1d1   :  { %374 = vsyncpa [#allocation3 + $0x1], 1 }

</bundles_post_ra>
